<compile_context>
chip_gen: v7x
topology: tpu7x:2x2x1
jax: 0.10.0
libtpu: 0.0.40
codegen_flags: <defaults>
</compile_context>

<pallas_src>
import functools

import jax
import jax.numpy as jnp
from jax import lax
from jax.experimental import pallas as pl
from jax.experimental.pallas import tpu as pltpu


# ----------------------------------------------------------------------------
# Fused per-step kernel (B objects per grid step)
# ----------------------------------------------------------------------------
def _fused_kernel(o2i_ref,        # (O_pad,) int32  SMEM scalar prefetch
                  imgs_ref,       # (N, W, C*H)          bf16  VMEM-resident
                  wx_ref,         # (B, S, W)            bf16  per step
                  wy_ref,         # (B, H, S)            bf16  per step (Wy^T)
                  selbd1_ref,     # (K, B*Wo1, B*S)      bf16  resident
                  a1_ref,         # (K, C*S, C1*Ho1)     bf16  resident
                  b1_ref,         # (1, C1*Ho1)          f32   resident
                  selbd2_ref,     # (K, B*Wo2, B*Wo1)    bf16  resident
                  a2_ref,         # (K, C1*Ho1, C2*Ho2)  bf16  resident
                  b2_ref,         # (1, C2*Ho2)          f32   resident
                  pool_ref,       # (B, B*Wo2)           bf16  resident
                  whead_ref,      # (C2*Ho2, HEAD_PAD)   bf16  resident (fc+heads folded)
                  bhead_ref,      # (1, HEAD_PAD)        f32   resident
                  crops_ref,      # out (B*S, C*S)       f32
                  head_ref,       # out (B, HEAD_PAD)    f32
                  *, num_taps, batch, channels, obj_size, img_h):
    f32, bf16 = jnp.float32, jnp.bfloat16
    B, C, S, H = batch, channels, obj_size, img_h
    g = pl.program_id(0)

    # ---- per-object bilinear crops, stacked into the (B*S, C*S) output slab ----
    # crop[b*S + j, c*S + i] = sum_{h,w} Wx[j,w] * Wy[i,h] * img[c,h,w]
    for b in range(B):
        n = o2i_ref[g * B + b]                        # dynamic image index (SMEM)
        img = imgs_ref[n]                             # (W, C*H) bf16
        u = jnp.dot(wx_ref[b], img,
                    preferred_element_type=f32).astype(bf16)      # (S, C*H)
        for c in range(C):
            crop_c = jnp.dot(u[:, c * H:(c + 1) * H], wy_ref[b],
                             preferred_element_type=f32)          # (S, S)
            crops_ref[b * S:(b + 1) * S, c * S:(c + 1) * S] = crop_c

    x = crops_ref[...].astype(bf16)                   # (B*S, C*S) conv1 input

    # ---- conv1: relu( sum_kj SelBD1[kj] @ x @ A1[kj] + b1 ) ----
    acc = None
    for kj in range(num_taps):
        t = jnp.dot(selbd1_ref[kj], x, preferred_element_type=f32).astype(bf16)
        term = jnp.dot(t, a1_ref[kj], preferred_element_type=f32)
        acc = term if acc is None else acc + term
    y1 = jnp.maximum(acc + b1_ref[...], 0.0).astype(bf16)         # (B*Wo1, C1*Ho1)

    # ---- conv2 ----
    acc = None
    for kj in range(num_taps):
        t = jnp.dot(selbd2_ref[kj], y1, preferred_element_type=f32).astype(bf16)
        term = jnp.dot(t, a2_ref[kj], preferred_element_type=f32)
        acc = term if acc is None else acc + term
    y2 = jnp.maximum(acc + b2_ref[...], 0.0).astype(bf16)         # (B*Wo2, C2*Ho2)

    # ---- GlobalAvgPool over W (per-object row-sum matmul); the H-sum, the
    #      1/(Ho2*Wo2) scale, Linear(D,1024) and both heads are folded into
    #      whead/bhead in the wrapper ----
    pooled = jnp.dot(pool_ref[...], y2, preferred_element_type=f32)   # (B, C2*Ho2)
    head = jnp.dot(pooled.astype(bf16), whead_ref[...],
                   preferred_element_type=f32) + bhead_ref[...]       # (B, HEAD_PAD)
    head_ref[...] = head


# ----------------------------------------------------------------------------
# Wrapper-side layout / constant construction (pure JAX glue, one-time)
# ----------------------------------------------------------------------------
def _interp_matrix(coords, size):
    # sg2im crop_bbox_batch semantics (old grid_sample, align_corners=True,
    # zero padding via all-zero one_hot rows for out-of-range indices).
    pix = (coords + 1.0) * (size - 1) / 2.0
    i0 = jnp.floor(pix)
    w1 = pix - i0
    w0 = 1.0 - w1
    i0 = i0.astype(jnp.int32)
    i1 = i0 + 1
    m0 = jax.nn.one_hot(i0, size, dtype=jnp.float32)
    m1 = jax.nn.one_hot(i1, size, dtype=jnp.float32)
    return w0[..., None] * m0 + w1[..., None] * m1          # (O, S, size)


def _crop_matrices(boxes, S, H, W):
    f32 = jnp.float32
    t = jnp.arange(S, dtype=f32) / max(S - 1, 1)            # tensor_linspace
    bn = 2.0 * boxes.astype(f32) - 1.0                      # [0,1] -> [-1,1]
    x0, y0, x1, y1 = bn[:, 0], bn[:, 1], bn[:, 2], bn[:, 3]
    X = x0[:, None] + (x1 - x0)[:, None] * t[None, :]       # (O, S)
    Y = y0[:, None] + (y1 - y0)[:, None] * t[None, :]       # (O, S)
    return _interp_matrix(X, W), _interp_matrix(Y, H)       # Wx (O,S,W), Wy (O,S,H)


def _conv_sel(K, stride, pad, in_size, out_size):
    # Sel[k, p, i] = 1.0 iff i == stride*p + k - pad (zero rows == zero padding)
    k = jnp.arange(K)[:, None, None]
    p = jnp.arange(out_size)[None, :, None]
    i = jnp.arange(in_size)[None, None, :]
    return (i == stride * p + k - pad).astype(jnp.float32)


def _conv_out(n, K=3, stride=2, pad=1):
    return (n + 2 * pad - K) // stride + 1


def ac_crop_discriminator_forward(params, imgs, objs, boxes, obj_to_img,
                                  object_size=16, head_pad=128, obj_batch=16):
    """Fused AcCropDiscriminator.forward (crop -> conv1 -> conv2 -> GAP -> heads).

    Objects do NOT need to be sorted by obj_to_img: the whole image batch is
    kept VMEM-resident (bf16, DMA'd once) and each object indexes it
    dynamically via the SMEM-prefetched obj_to_img table.
    """
    del objs  # `y` is accepted but never used by AcDiscriminator.forward
    f32, bf16 = jnp.float32, jnp.bfloat16
    N, C, H, W = imgs.shape
    O = boxes.shape[0]
    S = object_size
    K = params['conv1_w'].shape[2]
    C1 = params['conv1_w'].shape[0]
    C2 = params['conv2_w'].shape[0]
    Ho1 = Wo1 = _conv_out(S)
    Ho2 = Wo2 = _conv_out(Ho1)
    num_objects = params['obj_w'].shape[1]
    assert 1 + num_objects <= head_pad
    B = obj_batch
    assert B % 8 == 0, "obj_batch must be a multiple of 8 (sublane alignment)"

    # ---- pad objects up to a multiple of B (padded rows sliced off below) ----
    O_pad = ((O + B - 1) // B) * B
    pad = O_pad - O
    if pad:
        boxes_p = jnp.concatenate(
            [boxes.astype(f32), jnp.tile(jnp.array([[0., 0., 1., 1.]], f32), (pad, 1))], 0)
        o2i_p = jnp.concatenate(
            [obj_to_img.astype(jnp.int32), jnp.zeros((pad,), jnp.int32)], 0)
    else:
        boxes_p = boxes.astype(f32)
        o2i_p = obj_to_img.astype(jnp.int32)

    # ---- per-object bilinear interpolation matrices (only ~1 KB/object) ----
    Wx_f, Wy_f = _crop_matrices(boxes_p, S, H, W)            # (O_pad,S,W), (O_pad,S,H)
    wx_b = Wx_f.astype(bf16)                                 # (O_pad, S, W)
    wy_tb = jnp.transpose(Wy_f, (0, 2, 1)).astype(bf16)      # (O_pad, H, S)

    # Image batch in (N, W, C*H) layout -> crop is plain matmuls in-kernel.
    imgs_t = jnp.transpose(imgs, (0, 3, 1, 2)).reshape(N, W, C * H).astype(bf16)

    # ---- conv constants: weight/selection fusions + batched block-diag Sel ----
    sel1 = _conv_sel(K, 2, 1, S, Ho1)                        # (K, Ho1, S)
    sel2 = _conv_sel(K, 2, 1, Ho1, Ho2)                      # (K, Ho2, Ho1)
    # A[kj][cin*Sin + i, cout*Hout + p] = sum_ki w[cout,cin,ki,kj]*Sel[ki,p,i]
    a1 = jnp.einsum('ocka,kpi->aciop', params['conv1_w'], sel1
                    ).reshape(K, C * S, C1 * Ho1).astype(bf16)
    a2 = jnp.einsum('ocka,kpi->aciop', params['conv2_w'], sel2
                    ).reshape(K, C1 * Ho1, C2 * Ho2).astype(bf16)
    b1row = jnp.repeat(params['conv1_b'], Ho1)[None, :].astype(f32)
    b2row = jnp.repeat(params['conv2_b'], Ho2)[None, :].astype(f32)

    # Block-diagonal width-selection over the B stacked objects (zero rows at
    # object/pad boundaries reproduce zero padding with no cross-object leak).
    eyeB = jnp.eye(B, dtype=f32)
    selbd1 = jnp.einsum('bd,kpi->kbpdi', eyeB, sel1
                        ).reshape(K, B * Wo1, B * S).astype(bf16)
    selbd2 = jnp.einsum('bd,kpi->kbpdi', eyeB, sel2
                        ).reshape(K, B * Wo2, B * Wo1).astype(bf16)
    poolmat = jnp.einsum('bd,r->bdr', eyeB, jnp.ones((Wo2,), f32)
                         ).reshape(B, B * Wo2).astype(bf16)

    # ---- fold GAP scale + Linear(D,1024) + [real|obj] heads into ONE GEMM ----
    fc_big = jnp.repeat(params['fc_w'], Ho2, axis=0) / (Ho2 * Wo2)   # (C2*Ho2, hidden)
    hw = jnp.concatenate([params['real_w'], params['obj_w']], axis=1)  # (hidden, 1+no)
    hb = jnp.concatenate([params['real_b'], params['obj_b']])
    n_head = hw.shape[1]
    whead = jnp.pad(fc_big @ hw, ((0, 0), (0, head_pad - n_head))).astype(bf16)
    bhead = jnp.pad(params['fc_b'] @ hw + hb,
                    (0, head_pad - n_head))[None, :].astype(f32)

    grid_spec = pltpu.PrefetchScalarGridSpec(
        num_scalar_prefetch=1,
        grid=(O_pad // B,),
        in_specs=[
            # whole image batch: constant index_map -> DMA'd once, VMEM-resident
            pl.BlockSpec((N, W, C * H), lambda g, o2i: (0, 0, 0)),
            # per-step (B objects) interpolation matrices
            pl.BlockSpec((B, S, W), lambda g, o2i: (g, 0, 0)),
            pl.BlockSpec((B, H, S), lambda g, o2i: (g, 0, 0)),
            # VMEM-resident network/selection constants
            pl.BlockSpec((K, B * Wo1, B * S), lambda g, o2i: (0, 0, 0)),
            pl.BlockSpec((K, C * S, C1 * Ho1), lambda g, o2i: (0, 0, 0)),
            pl.BlockSpec((1, C1 * Ho1), lambda g, o2i: (0, 0)),
            pl.BlockSpec((K, B * Wo2, B * Wo1), lambda g, o2i: (0, 0, 0)),
            pl.BlockSpec((K, C1 * Ho1, C2 * Ho2), lambda g, o2i: (0, 0, 0)),
            pl.BlockSpec((1, C2 * Ho2), lambda g, o2i: (0, 0)),
            pl.BlockSpec((B, B * Wo2), lambda g, o2i: (0, 0)),
            pl.BlockSpec((C2 * Ho2, head_pad), lambda g, o2i: (0, 0)),
            pl.BlockSpec((1, head_pad), lambda g, o2i: (0, 0)),
        ],
        out_specs=[
            pl.BlockSpec((B * S, C * S), lambda g, o2i: (g, 0)),
            pl.BlockSpec((B, head_pad), lambda g, o2i: (g, 0)),
        ],
    )

    crops_flat, head_out = pl.pallas_call(
        functools.partial(_fused_kernel, num_taps=K, batch=B, channels=C,
                          obj_size=S, img_h=H),
        out_shape=(jax.ShapeDtypeStruct((O_pad * S, C * S), f32),
                   jax.ShapeDtypeStruct((O_pad, head_pad), f32)),
        grid_spec=grid_spec,
        compiler_params=pltpu.CompilerParams(
            dimension_semantics=("parallel",)),
    )(o2i_p, imgs_t, wx_b, wy_tb,
      selbd1, a1, b1row, selbd2, a2, b2row,
      poolmat, whead, bhead)

    # Layout plumbing only: kernel crop layout (o*S + j, c*S + i) -> NCHW.
    crops = crops_flat.reshape(O_pad, S, C, S).transpose(0, 2, 3, 1)[:O]  # (O,C,S,S)
    head = head_out[:O]
    real_scores = head[:, 0:1]
    obj_scores = head[:, 1:1 + num_objects]

    # TODO(synk): rec_feature branch (args.d_obj_rec_feat_weight > 0) not
    # implemented; with the default weight of 0 the module returns None here
    # (and the fc+head fold above is only valid while it stays disabled).
    rec_features = None
    return real_scores, obj_scores, crops, rec_features


# ----------------------------------------------------------------------------
# Pure-JAX f32 reference (tolerance test, per the performance review)
# ----------------------------------------------------------------------------
def _reference_forward(params, imgs, boxes, obj_to_img, object_size):
    N, C, H, W = imgs.shape
    S = object_size
    Wx, Wy = _crop_matrices(boxes, S, H, W)                   # f32
    per_obj = imgs[obj_to_img]                                # (O, C, H, W)
    crops = jnp.einsum('oih,ojw,ochw->ocij', Wy, Wx, per_obj)

    def conv(x, w, b):
        y = lax.conv_general_dilated(x, w, window_strides=(2, 2),
                                     padding=((1, 1), (1, 1)),
                                     dimension_numbers=('NCHW', 'OIHW', 'NCHW'))
        return jax.nn.relu(y + b[None, :, None, None])

    h = conv(conv(crops, params['conv1_w'], params['conv1_b']),
             params['conv2_w'], params['conv2_b'])
    vec = h.mean(axis=(2, 3)) @ params['fc_w'] + params['fc_b']
    real = vec @ params['real_w'] + params['real_b']
    obj = vec @ params['obj_w'] + params['obj_b']
    return real, obj, crops


# ----------------------------------------------------------------------------
# Parameter init (deterministic, synthetic)
# ----------------------------------------------------------------------------
def init_params(key, in_channels=3, c1=32, c2=64, hidden=1024, num_objects=6):
    ks = jax.random.split(key, 8)
    s = 0.05
    return {
        'conv1_w': s * jax.random.normal(ks[0], (c1, in_channels, 3, 3), jnp.float32),
        'conv1_b': jnp.zeros((c1,), jnp.float32),
        'conv2_w': s * jax.random.normal(ks[1], (c2, c1, 3, 3), jnp.float32),
        'conv2_b': jnp.zeros((c2,), jnp.float32),
        'fc_w':   s * jax.random.normal(ks[2], (c2, hidden), jnp.float32),
        'fc_b':   s * jax.random.normal(ks[3], (hidden,), jnp.float32),
        'real_w': s * jax.random.normal(ks[4], (hidden, 1), jnp.float32),
        'real_b': s * jax.random.normal(ks[5], (1,), jnp.float32),
        'obj_w':  s * jax.random.normal(ks[6], (hidden, num_objects), jnp.float32),
        'obj_b':  s * jax.random.normal(ks[7], (num_objects,), jnp.float32),
    }


if __name__ == "__main__":
    key = jax.random.PRNGKey(0)
    k_img, k_box, k_par, k_o2i, k_lab = jax.random.split(key, 5)

    vocab = {'object_idx_to_name':
             ['__image__', 'person', 'car', 'tree', 'dog', 'sky', 'building']}
    num_objects = len(vocab['object_idx_to_name']) - 1   # 6

    N, C, H, W = 4, 3, 32, 32
    O = 48                    # objects across the batch
    S = 16                    # object_size
    B = 16                    # objects per grid step -> grid = 3 (>=2 for v7x)

    imgs = jax.random.normal(k_img, (N, C, H, W), jnp.float32)
    kb1, kb2 = jax.random.split(k_box)
    xy0 = jax.random.uniform(kb1, (O, 2), minval=0.0, maxval=0.4)
    wh = jax.random.uniform(kb2, (O, 2), minval=0.2, maxval=0.5)
    boxes = jnp.concatenate([xy0, xy0 + wh], axis=1)      # [x0, y0, x1, y1] in [0,1]
    obj_to_img = jax.random.randint(k_o2i, (O,), 0, N).astype(jnp.int32)
    objs = jax.random.randint(k_lab, (O,), 1, num_objects + 1)   # labels (unused)

    params = init_params(k_par, in_channels=C, num_objects=num_objects)

    fwd = jax.jit(functools.partial(ac_crop_discriminator_forward,
                                    object_size=S, obj_batch=B))
    real_scores, obj_scores, crops, rec_features = fwd(
        params, imgs, objs, boxes, obj_to_img)
    jax.block_until_ready((real_scores, obj_scores, crops))

    assert real_scores.shape == (O, 1)
    assert obj_scores.shape == (O, num_objects)
    assert crops.shape == (O, C, S, S)
    assert rec_features is None
    assert bool(jnp.all(jnp.isfinite(real_scores)))
    assert bool(jnp.all(jnp.isfinite(obj_scores)))
    assert bool(jnp.all(jnp.isfinite(crops)))

    # Tolerance test vs pure-JAX f32 reference (kernel uses bf16 MXU inputs
    # with f32 accumulation, so compare at bf16-level tolerance).
    ref_real, ref_obj, ref_crops = _reference_forward(params, imgs, boxes,
                                                      obj_to_img, S)

    def rel_err(a, b):
        return float(jnp.max(jnp.abs(a - b)) / (jnp.max(jnp.abs(b)) + 1e-6))

    assert rel_err(crops, ref_crops) < 5e-2, rel_err(crops, ref_crops)
    assert rel_err(real_scores, ref_real) < 1e-1, rel_err(real_scores, ref_real)
    assert rel_err(obj_scores, ref_obj) < 1e-1, rel_err(obj_scores, ref_obj)

    print("KERNEL_OK")
</pallas_src>

<mosaic_0001>
module attributes {stable_mosaic.version = 11 : i64} {
  func.func @_fused_kernel(%arg0: i32, %arg1: memref<48xi32, #tpu.memory_space<smem>>, %arg2: memref<4x32x96xbf16, #tpu.memory_space<vmem>>, %arg3: memref<16x16x32xbf16, #tpu.memory_space<vmem>>, %arg4: memref<16x32x16xbf16, #tpu.memory_space<vmem>>, %arg5: memref<3x128x256xbf16, #tpu.memory_space<vmem>>, %arg6: memref<3x48x256xbf16, #tpu.memory_space<vmem>>, %arg7: memref<1x256xf32, #tpu.memory_space<vmem>>, %arg8: memref<3x64x128xbf16, #tpu.memory_space<vmem>>, %arg9: memref<3x256x256xbf16, #tpu.memory_space<vmem>>, %arg10: memref<1x256xf32, #tpu.memory_space<vmem>>, %arg11: memref<16x64xbf16, #tpu.memory_space<vmem>>, %arg12: memref<256x128xbf16, #tpu.memory_space<vmem>>, %arg13: memref<1x128xf32, #tpu.memory_space<vmem>>, %arg14: memref<256x48xf32, #tpu.memory_space<vmem>>, %arg15: memref<16x128xf32, #tpu.memory_space<vmem>>) attributes {dimension_semantics = [#tpu.dimension_semantics<parallel>], iteration_bounds = array<i64: 3>, scalar_prefetch = 1 : i64, scratch_operands = 0 : i64, tpu.core_type = #tpu.core_type<tc>, window_params = [{pipeline_mode = #tpu.pipeline_mode<synchronous>, transform_indices = @transform_0, window_bounds = array<i64: 4, 32, 96>}, {transform_indices = @transform_1, window_bounds = array<i64: 16, 16, 32>}, {transform_indices = @transform_2, window_bounds = array<i64: 16, 32, 16>}, {pipeline_mode = #tpu.pipeline_mode<synchronous>, transform_indices = @transform_3, window_bounds = array<i64: 3, 128, 256>}, {pipeline_mode = #tpu.pipeline_mode<synchronous>, transform_indices = @transform_4, window_bounds = array<i64: 3, 48, 256>}, {pipeline_mode = #tpu.pipeline_mode<synchronous>, transform_indices = @transform_5, window_bounds = array<i64: 1, 256>}, {pipeline_mode = #tpu.pipeline_mode<synchronous>, transform_indices = @transform_6, window_bounds = array<i64: 3, 64, 128>}, {pipeline_mode = #tpu.pipeline_mode<synchronous>, transform_indices = @transform_7, window_bounds = array<i64: 3, 256, 256>}, {pipeline_mode = #tpu.pipeline_mode<synchronous>, transform_indices = @transform_8, window_bounds = array<i64: 1, 256>}, {pipeline_mode = #tpu.pipeline_mode<synchronous>, transform_indices = @transform_9, window_bounds = array<i64: 16, 64>}, {pipeline_mode = #tpu.pipeline_mode<synchronous>, transform_indices = @transform_10, window_bounds = array<i64: 256, 128>}, {pipeline_mode = #tpu.pipeline_mode<synchronous>, transform_indices = @transform_11, window_bounds = array<i64: 1, 128>}, {transform_indices = @transform_12, window_bounds = array<i64: 256, 48>}, {transform_indices = @transform_13, window_bounds = array<i64: 16, 128>}]} {
    %c16_i32 = arith.constant 16 : i32
    %0 = arith.muli %arg0, %c16_i32 : i32
    %c0_i32 = arith.constant 0 : i32
    %1 = arith.addi %0, %c0_i32 : i32
    %2 = arith.index_cast %1 : i32 to index
    %3 = memref.load %arg1[%2] : memref<48xi32, #tpu.memory_space<smem>>
    %4 = arith.index_cast %3 : i32 to index
    %c0 = arith.constant 0 : index
    %c0_0 = arith.constant 0 : index
    %5 = vector.load %arg2[%4, %c0, %c0_0] : memref<4x32x96xbf16, #tpu.memory_space<vmem>>, vector<1x32x96xbf16>
    %6 = vector.shape_cast %5 : vector<1x32x96xbf16> to vector<32x96xbf16>
    %c0_1 = arith.constant 0 : index
    %c0_2 = arith.constant 0 : index
    %c0_3 = arith.constant 0 : index
    %7 = vector.load %arg3[%c0_1, %c0_2, %c0_3] : memref<16x16x32xbf16, #tpu.memory_space<vmem>>, vector<1x16x32xbf16>
    %8 = vector.shape_cast %7 : vector<1x16x32xbf16> to vector<16x32xbf16>
    %cst = arith.constant dense<0.000000e+00> : vector<16x96xf32>
    %9 = tpu.matmul %8, %6, %cst {dimension_numbers = #tpu.dot_dimension_numbers<[1], [0], [0], [1], [0, 0, 1, 1], [], []>} : vector<16x32xbf16>, vector<32x96xbf16>, vector<16x96xf32> -> vector<16x96xf32>
    %10 = arith.truncf %9 : vector<16x96xf32> to vector<16x96xbf16>
    %11 = vector.extract_strided_slice %10 {offsets = [0, 0], sizes = [16, 32], strides = [1, 1]} : vector<16x96xbf16> to vector<16x32xbf16>
    %c0_4 = arith.constant 0 : index
    %c0_5 = arith.constant 0 : index
    %c0_6 = arith.constant 0 : index
    %12 = vector.load %arg4[%c0_4, %c0_5, %c0_6] : memref<16x32x16xbf16, #tpu.memory_space<vmem>>, vector<1x32x16xbf16>
    %13 = vector.shape_cast %12 : vector<1x32x16xbf16> to vector<32x16xbf16>
    %cst_7 = arith.constant dense<0.000000e+00> : vector<16x16xf32>
    %14 = tpu.matmul %11, %13, %cst_7 {dimension_numbers = #tpu.dot_dimension_numbers<[1], [0], [0], [1], [0, 0, 1, 1], [], []>} : vector<16x32xbf16>, vector<32x16xbf16>, vector<16x16xf32> -> vector<16x16xf32>
    %c0_8 = arith.constant 0 : index
    %c0_9 = arith.constant 0 : index
    %15 = vector.load %arg14[%c0_8, %c0_9] : memref<256x48xf32, #tpu.memory_space<vmem>>, vector<16x16xf32>
    tpu.vector_store %arg14[%c0_8, %c0_9], %14 {strides = array<i32>} : memref<256x48xf32, #tpu.memory_space<vmem>>, vector<16x16xf32>,
    %16 = vector.extract_strided_slice %10 {offsets = [0, 32], sizes = [16, 32], strides = [1, 1]} : vector<16x96xbf16> to vector<16x32xbf16>
    %c0_10 = arith.constant 0 : index
    %c0_11 = arith.constant 0 : index
    %c0_12 = arith.constant 0 : index
    %17 = vector.load %arg4[%c0_10, %c0_11, %c0_12] : memref<16x32x16xbf16, #tpu.memory_space<vmem>>, vector<1x32x16xbf16>
    %18 = vector.shape_cast %17 : vector<1x32x16xbf16> to vector<32x16xbf16>
    %cst_13 = arith.constant dense<0.000000e+00> : vector<16x16xf32>
    %19 = tpu.matmul %16, %18, %cst_13 {dimension_numbers = #tpu.dot_dimension_numbers<[1], [0], [0], [1], [0, 0, 1, 1], [], []>} : vector<16x32xbf16>, vector<32x16xbf16>, vector<16x16xf32> -> vector<16x16xf32>
    %c0_14 = arith.constant 0 : index
    %c16 = arith.constant 16 : index
    %20 = vector.load %arg14[%c0_14, %c16] : memref<256x48xf32, #tpu.memory_space<vmem>>, vector<16x16xf32>
    tpu.vector_store %arg14[%c0_14, %c16], %19 {strides = array<i32>} : memref<256x48xf32, #tpu.memory_space<vmem>>, vector<16x16xf32>,
    %21 = vector.extract_strided_slice %10 {offsets = [0, 64], sizes = [16, 32], strides = [1, 1]} : vector<16x96xbf16> to vector<16x32xbf16>
    %c0_15 = arith.constant 0 : index
    %c0_16 = arith.constant 0 : index
    %c0_17 = arith.constant 0 : index
    %22 = vector.load %arg4[%c0_15, %c0_16, %c0_17] : memref<16x32x16xbf16, #tpu.memory_space<vmem>>, vector<1x32x16xbf16>
    %23 = vector.shape_cast %22 : vector<1x32x16xbf16> to vector<32x16xbf16>
    %cst_18 = arith.constant dense<0.000000e+00> : vector<16x16xf32>
    %24 = tpu.matmul %21, %23, %cst_18 {dimension_numbers = #tpu.dot_dimension_numbers<[1], [0], [0], [1], [0, 0, 1, 1], [], []>} : vector<16x32xbf16>, vector<32x16xbf16>, vector<16x16xf32> -> vector<16x16xf32>
    %c0_19 = arith.constant 0 : index
    %c32 = arith.constant 32 : index
    %25 = vector.load %arg14[%c0_19, %c32] : memref<256x48xf32, #tpu.memory_space<vmem>>, vector<16x16xf32>
    tpu.vector_store %arg14[%c0_19, %c32], %24 {strides = array<i32>} : memref<256x48xf32, #tpu.memory_space<vmem>>, vector<16x16xf32>,
    %c16_i32_20 = arith.constant 16 : i32
    %26 = arith.muli %arg0, %c16_i32_20 : i32
    %c1_i32 = arith.constant 1 : i32
    %27 = arith.addi %26, %c1_i32 : i32
    %28 = arith.index_cast %27 : i32 to index
    %29 = memref.load %arg1[%28] : memref<48xi32, #tpu.memory_space<smem>>
    %30 = arith.index_cast %29 : i32 to index
    %c0_21 = arith.constant 0 : index
    %c0_22 = arith.constant 0 : index
    %31 = vector.load %arg2[%30, %c0_21, %c0_22] : memref<4x32x96xbf16, #tpu.memory_space<vmem>>, vector<1x32x96xbf16>
    %32 = vector.shape_cast %31 : vector<1x32x96xbf16> to vector<32x96xbf16>
    %c1 = arith.constant 1 : index
    %c0_23 = arith.constant 0 : index
    %c0_24 = arith.constant 0 : index
    %33 = vector.load %arg3[%c1, %c0_23, %c0_24] : memref<16x16x32xbf16, #tpu.memory_space<vmem>>, vector<1x16x32xbf16>
    %34 = vector.shape_cast %33 : vector<1x16x32xbf16> to vector<16x32xbf16>
    %cst_25 = arith.constant dense<0.000000e+00> : vector<16x96xf32>
    %35 = tpu.matmul %34, %32, %cst_25 {dimension_numbers = #tpu.dot_dimension_numbers<[1], [0], [0], [1], [0, 0, 1, 1], [], []>} : vector<16x32xbf16>, vector<32x96xbf16>, vector<16x96xf32> -> vector<16x96xf32>
    %36 = arith.truncf %35 : vector<16x96xf32> to vector<16x96xbf16>
    %37 = vector.extract_strided_slice %36 {offsets = [0, 0], sizes = [16, 32], strides = [1, 1]} : vector<16x96xbf16> to vector<16x32xbf16>
    %c1_26 = arith.constant 1 : index
    %c0_27 = arith.constant 0 : index
    %c0_28 = arith.constant 0 : index
    %38 = vector.load %arg4[%c1_26, %c0_27, %c0_28] : memref<16x32x16xbf16, #tpu.memory_space<vmem>>, vector<1x32x16xbf16>
    %39 = vector.shape_cast %38 : vector<1x32x16xbf16> to vector<32x16xbf16>
    %cst_29 = arith.constant dense<0.000000e+00> : vector<16x16xf32>
    %40 = tpu.matmul %37, %39, %cst_29 {dimension_numbers = #tpu.dot_dimension_numbers<[1], [0], [0], [1], [0, 0, 1, 1], [], []>} : vector<16x32xbf16>, vector<32x16xbf16>, vector<16x16xf32> -> vector<16x16xf32>
    %c16_30 = arith.constant 16 : index
    %c0_31 = arith.constant 0 : index
    %41 = vector.load %arg14[%c16_30, %c0_31] : memref<256x48xf32, #tpu.memory_space<vmem>>, vector<16x16xf32>
    tpu.vector_store %arg14[%c16_30, %c0_31], %40 {strides = array<i32>} : memref<256x48xf32, #tpu.memory_space<vmem>>, vector<16x16xf32>,
    %42 = vector.extract_strided_slice %36 {offsets = [0, 32], sizes = [16, 32], strides = [1, 1]} : vector<16x96xbf16> to vector<16x32xbf16>
    %c1_32 = arith.constant 1 : index
    %c0_33 = arith.constant 0 : index
    %c0_34 = arith.constant 0 : index
    %43 = vector.load %arg4[%c1_32, %c0_33, %c0_34] : memref<16x32x16xbf16, #tpu.memory_space<vmem>>, vector<1x32x16xbf16>
    %44 = vector.shape_cast %43 : vector<1x32x16xbf16> to vector<32x16xbf16>
    %cst_35 = arith.constant dense<0.000000e+00> : vector<16x16xf32>
    %45 = tpu.matmul %42, %44, %cst_35 {dimension_numbers = #tpu.dot_dimension_numbers<[1], [0], [0], [1], [0, 0, 1, 1], [], []>} : vector<16x32xbf16>, vector<32x16xbf16>, vector<16x16xf32> -> vector<16x16xf32>
    %c16_36 = arith.constant 16 : index
    %c16_37 = arith.constant 16 : index
    %46 = vector.load %arg14[%c16_36, %c16_37] : memref<256x48xf32, #tpu.memory_space<vmem>>, vector<16x16xf32>
    tpu.vector_store %arg14[%c16_36, %c16_37], %45 {strides = array<i32>} : memref<256x48xf32, #tpu.memory_space<vmem>>, vector<16x16xf32>,
    %47 = vector.extract_strided_slice %36 {offsets = [0, 64], sizes = [16, 32], strides = [1, 1]} : vector<16x96xbf16> to vector<16x32xbf16>
    %c1_38 = arith.constant 1 : index
    %c0_39 = arith.constant 0 : index
    %c0_40 = arith.constant 0 : index
    %48 = vector.load %arg4[%c1_38, %c0_39, %c0_40] : memref<16x32x16xbf16, #tpu.memory_space<vmem>>, vector<1x32x16xbf16>
    %49 = vector.shape_cast %48 : vector<1x32x16xbf16> to vector<32x16xbf16>
    %cst_41 = arith.constant dense<0.000000e+00> : vector<16x16xf32>
    %50 = tpu.matmul %47, %49, %cst_41 {dimension_numbers = #tpu.dot_dimension_numbers<[1], [0], [0], [1], [0, 0, 1, 1], [], []>} : vector<16x32xbf16>, vector<32x16xbf16>, vector<16x16xf32> -> vector<16x16xf32>
    %c16_42 = arith.constant 16 : index
    %c32_43 = arith.constant 32 : index
    %51 = vector.load %arg14[%c16_42, %c32_43] : memref<256x48xf32, #tpu.memory_space<vmem>>, vector<16x16xf32>
    tpu.vector_store %arg14[%c16_42, %c32_43], %50 {strides = array<i32>} : memref<256x48xf32, #tpu.memory_space<vmem>>, vector<16x16xf32>,
    %c16_i32_44 = arith.constant 16 : i32
    %52 = arith.muli %arg0, %c16_i32_44 : i32
    %c2_i32 = arith.constant 2 : i32
    %53 = arith.addi %52, %c2_i32 : i32
    %54 = arith.index_cast %53 : i32 to index
    %55 = memref.load %arg1[%54] : memref<48xi32, #tpu.memory_space<smem>>
    %56 = arith.index_cast %55 : i32 to index
    %c0_45 = arith.constant 0 : index
    %c0_46 = arith.constant 0 : index
    %57 = vector.load %arg2[%56, %c0_45, %c0_46] : memref<4x32x96xbf16, #tpu.memory_space<vmem>>, vector<1x32x96xbf16>
    %58 = vector.shape_cast %57 : vector<1x32x96xbf16> to vector<32x96xbf16>
    %c2 = arith.constant 2 : index
    %c0_47 = arith.constant 0 : index
    %c0_48 = arith.constant 0 : index
    %59 = vector.load %arg3[%c2, %c0_47, %c0_48] : memref<16x16x32xbf16, #tpu.memory_space<vmem>>, vector<1x16x32xbf16>
    %60 = vector.shape_cast %59 : vector<1x16x32xbf16> to vector<16x32xbf16>
    %cst_49 = arith.constant dense<0.000000e+00> : vector<16x96xf32>
    %61 = tpu.matmul %60, %58, %cst_49 {dimension_numbers = #tpu.dot_dimension_numbers<[1], [0], [0], [1], [0, 0, 1, 1], [], []>} : vector<16x32xbf16>, vector<32x96xbf16>, vector<16x96xf32> -> vector<16x96xf32>
    %62 = arith.truncf %61 : vector<16x96xf32> to vector<16x96xbf16>
    %63 = vector.extract_strided_slice %62 {offsets = [0, 0], sizes = [16, 32], strides = [1, 1]} : vector<16x96xbf16> to vector<16x32xbf16>
    %c2_50 = arith.constant 2 : index
    %c0_51 = arith.constant 0 : index
    %c0_52 = arith.constant 0 : index
    %64 = vector.load %arg4[%c2_50, %c0_51, %c0_52] : memref<16x32x16xbf16, #tpu.memory_space<vmem>>, vector<1x32x16xbf16>
    %65 = vector.shape_cast %64 : vector<1x32x16xbf16> to vector<32x16xbf16>
    %cst_53 = arith.constant dense<0.000000e+00> : vector<16x16xf32>
    %66 = tpu.matmul %63, %65, %cst_53 {dimension_numbers = #tpu.dot_dimension_numbers<[1], [0], [0], [1], [0, 0, 1, 1], [], []>} : vector<16x32xbf16>, vector<32x16xbf16>, vector<16x16xf32> -> vector<16x16xf32>
    %c32_54 = arith.constant 32 : index
    %c0_55 = arith.constant 0 : index
    %67 = vector.load %arg14[%c32_54, %c0_55] : memref<256x48xf32, #tpu.memory_space<vmem>>, vector<16x16xf32>
    tpu.vector_store %arg14[%c32_54, %c0_55], %66 {strides = array<i32>} : memref<256x48xf32, #tpu.memory_space<vmem>>, vector<16x16xf32>,
    %68 = vector.extract_strided_slice %62 {offsets = [0, 32], sizes = [16, 32], strides = [1, 1]} : vector<16x96xbf16> to vector<16x32xbf16>
    %c2_56 = arith.constant 2 : index
    %c0_57 = arith.constant 0 : index
    %c0_58 = arith.constant 0 : index
    %69 = vector.load %arg4[%c2_56, %c0_57, %c0_58] : memref<16x32x16xbf16, #tpu.memory_space<vmem>>, vector<1x32x16xbf16>
    %70 = vector.shape_cast %69 : vector<1x32x16xbf16> to vector<32x16xbf16>
    %cst_59 = arith.constant dense<0.000000e+00> : vector<16x16xf32>
    %71 = tpu.matmul %68, %70, %cst_59 {dimension_numbers = #tpu.dot_dimension_numbers<[1], [0], [0], [1], [0, 0, 1, 1], [], []>} : vector<16x32xbf16>, vector<32x16xbf16>, vector<16x16xf32> -> vector<16x16xf32>
    %c32_60 = arith.constant 32 : index
    %c16_61 = arith.constant 16 : index
    %72 = vector.load %arg14[%c32_60, %c16_61] : memref<256x48xf32, #tpu.memory_space<vmem>>, vector<16x16xf32>
    tpu.vector_store %arg14[%c32_60, %c16_61], %71 {strides = array<i32>} : memref<256x48xf32, #tpu.memory_space<vmem>>, vector<16x16xf32>,
    %73 = vector.extract_strided_slice %62 {offsets = [0, 64], sizes = [16, 32], strides = [1, 1]} : vector<16x96xbf16> to vector<16x32xbf16>
    %c2_62 = arith.constant 2 : index
    %c0_63 = arith.constant 0 : index
    %c0_64 = arith.constant 0 : index
    %74 = vector.load %arg4[%c2_62, %c0_63, %c0_64] : memref<16x32x16xbf16, #tpu.memory_space<vmem>>, vector<1x32x16xbf16>
    %75 = vector.shape_cast %74 : vector<1x32x16xbf16> to vector<32x16xbf16>
    %cst_65 = arith.constant dense<0.000000e+00> : vector<16x16xf32>
    %76 = tpu.matmul %73, %75, %cst_65 {dimension_numbers = #tpu.dot_dimension_numbers<[1], [0], [0], [1], [0, 0, 1, 1], [], []>} : vector<16x32xbf16>, vector<32x16xbf16>, vector<16x16xf32> -> vector<16x16xf32>
    %c32_66 = arith.constant 32 : index
    %c32_67 = arith.constant 32 : index
    %77 = vector.load %arg14[%c32_66, %c32_67] : memref<256x48xf32, #tpu.memory_space<vmem>>, vector<16x16xf32>
    tpu.vector_store %arg14[%c32_66, %c32_67], %76 {strides = array<i32>} : memref<256x48xf32, #tpu.memory_space<vmem>>, vector<16x16xf32>,
    %c16_i32_68 = arith.constant 16 : i32
    %78 = arith.muli %arg0, %c16_i32_68 : i32
    %c3_i32 = arith.constant 3 : i32
    %79 = arith.addi %78, %c3_i32 : i32
    %80 = arith.index_cast %79 : i32 to index
    %81 = memref.load %arg1[%80] : memref<48xi32, #tpu.memory_space<smem>>
    %82 = arith.index_cast %81 : i32 to index
    %c0_69 = arith.constant 0 : index
    %c0_70 = arith.constant 0 : index
    %83 = vector.load %arg2[%82, %c0_69, %c0_70] : memref<4x32x96xbf16, #tpu.memory_space<vmem>>, vector<1x32x96xbf16>
    %84 = vector.shape_cast %83 : vector<1x32x96xbf16> to vector<32x96xbf16>
    %c3 = arith.constant 3 : index
    %c0_71 = arith.constant 0 : index
    %c0_72 = arith.constant 0 : index
    %85 = vector.load %arg3[%c3, %c0_71, %c0_72] : memref<16x16x32xbf16, #tpu.memory_space<vmem>>, vector<1x16x32xbf16>
    %86 = vector.shape_cast %85 : vector<1x16x32xbf16> to vector<16x32xbf16>
    %cst_73 = arith.constant dense<0.000000e+00> : vector<16x96xf32>
    %87 = tpu.matmul %86, %84, %cst_73 {dimension_numbers = #tpu.dot_dimension_numbers<[1], [0], [0], [1], [0, 0, 1, 1], [], []>} : vector<16x32xbf16>, vector<32x96xbf16>, vector<16x96xf32> -> vector<16x96xf32>
    %88 = arith.truncf %87 : vector<16x96xf32> to vector<16x96xbf16>
    %89 = vector.extract_strided_slice %88 {offsets = [0, 0], sizes = [16, 32], strides = [1, 1]} : vector<16x96xbf16> to vector<16x32xbf16>
    %c3_74 = arith.constant 3 : index
    %c0_75 = arith.constant 0 : index
    %c0_76 = arith.constant 0 : index
    %90 = vector.load %arg4[%c3_74, %c0_75, %c0_76] : memref<16x32x16xbf16, #tpu.memory_space<vmem>>, vector<1x32x16xbf16>
    %91 = vector.shape_cast %90 : vector<1x32x16xbf16> to vector<32x16xbf16>
    %cst_77 = arith.constant dense<0.000000e+00> : vector<16x16xf32>
    %92 = tpu.matmul %89, %91, %cst_77 {dimension_numbers = #tpu.dot_dimension_numbers<[1], [0], [0], [1], [0, 0, 1, 1], [], []>} : vector<16x32xbf16>, vector<32x16xbf16>, vector<16x16xf32> -> vector<16x16xf32>
    %c48 = arith.constant 48 : index
    %c0_78 = arith.constant 0 : index
    %93 = vector.load %arg14[%c48, %c0_78] : memref<256x48xf32, #tpu.memory_space<vmem>>, vector<16x16xf32>
    tpu.vector_store %arg14[%c48, %c0_78], %92 {strides = array<i32>} : memref<256x48xf32, #tpu.memory_space<vmem>>, vector<16x16xf32>,
    %94 = vector.extract_strided_slice %88 {offsets = [0, 32], sizes = [16, 32], strides = [1, 1]} : vector<16x96xbf16> to vector<16x32xbf16>
    %c3_79 = arith.constant 3 : index
    %c0_80 = arith.constant 0 : index
    %c0_81 = arith.constant 0 : index
    %95 = vector.load %arg4[%c3_79, %c0_80, %c0_81] : memref<16x32x16xbf16, #tpu.memory_space<vmem>>, vector<1x32x16xbf16>
    %96 = vector.shape_cast %95 : vector<1x32x16xbf16> to vector<32x16xbf16>
    %cst_82 = arith.constant dense<0.000000e+00> : vector<16x16xf32>
    %97 = tpu.matmul %94, %96, %cst_82 {dimension_numbers = #tpu.dot_dimension_numbers<[1], [0], [0], [1], [0, 0, 1, 1], [], []>} : vector<16x32xbf16>, vector<32x16xbf16>, vector<16x16xf32> -> vector<16x16xf32>
    %c48_83 = arith.constant 48 : index
    %c16_84 = arith.constant 16 : index
    %98 = vector.load %arg14[%c48_83, %c16_84] : memref<256x48xf32, #tpu.memory_space<vmem>>, vector<16x16xf32>
    tpu.vector_store %arg14[%c48_83, %c16_84], %97 {strides = array<i32>} : memref<256x48xf32, #tpu.memory_space<vmem>>, vector<16x16xf32>,
    %99 = vector.extract_strided_slice %88 {offsets = [0, 64], sizes = [16, 32], strides = [1, 1]} : vector<16x96xbf16> to vector<16x32xbf16>
    %c3_85 = arith.constant 3 : index
    %c0_86 = arith.constant 0 : index
    %c0_87 = arith.constant 0 : index
    %100 = vector.load %arg4[%c3_85, %c0_86, %c0_87] : memref<16x32x16xbf16, #tpu.memory_space<vmem>>, vector<1x32x16xbf16>
    %101 = vector.shape_cast %100 : vector<1x32x16xbf16> to vector<32x16xbf16>
    %cst_88 = arith.constant dense<0.000000e+00> : vector<16x16xf32>
    %102 = tpu.matmul %99, %101, %cst_88 {dimension_numbers = #tpu.dot_dimension_numbers<[1], [0], [0], [1], [0, 0, 1, 1], [], []>} : vector<16x32xbf16>, vector<32x16xbf16>, vector<16x16xf32> -> vector<16x16xf32>
    %c48_89 = arith.constant 48 : index
    %c32_90 = arith.constant 32 : index
    %103 = vector.load %arg14[%c48_89, %c32_90] : memref<256x48xf32, #tpu.memory_space<vmem>>, vector<16x16xf32>
    tpu.vector_store %arg14[%c48_89, %c32_90], %102 {strides = array<i32>} : memref<256x48xf32, #tpu.memory_space<vmem>>, vector<16x16xf32>,
    %c16_i32_91 = arith.constant 16 : i32
    %104 = arith.muli %arg0, %c16_i32_91 : i32
    %c4_i32 = arith.constant 4 : i32
    %105 = arith.addi %104, %c4_i32 : i32
    %106 = arith.index_cast %105 : i32 to index
    %107 = memref.load %arg1[%106] : memref<48xi32, #tpu.memory_space<smem>>
    %108 = arith.index_cast %107 : i32 to index
    %c0_92 = arith.constant 0 : index
    %c0_93 = arith.constant 0 : index
    %109 = vector.load %arg2[%108, %c0_92, %c0_93] : memref<4x32x96xbf16, #tpu.memory_space<vmem>>, vector<1x32x96xbf16>
    %110 = vector.shape_cast %109 : vector<1x32x96xbf16> to vector<32x96xbf16>
    %c4 = arith.constant 4 : index
    %c0_94 = arith.constant 0 : index
    %c0_95 = arith.constant 0 : index
    %111 = vector.load %arg3[%c4, %c0_94, %c0_95] : memref<16x16x32xbf16, #tpu.memory_space<vmem>>, vector<1x16x32xbf16>
    %112 = vector.shape_cast %111 : vector<1x16x32xbf16> to vector<16x32xbf16>
    %cst_96 = arith.constant dense<0.000000e+00> : vector<16x96xf32>
    %113 = tpu.matmul %112, %110, %cst_96 {dimension_numbers = #tpu.dot_dimension_numbers<[1], [0], [0], [1], [0, 0, 1, 1], [], []>} : vector<16x32xbf16>, vector<32x96xbf16>, vector<16x96xf32> -> vector<16x96xf32>
    %114 = arith.truncf %113 : vector<16x96xf32> to vector<16x96xbf16>
    %115 = vector.extract_strided_slice %114 {offsets = [0, 0], sizes = [16, 32], strides = [1, 1]} : vector<16x96xbf16> to vector<16x32xbf16>
    %c4_97 = arith.constant 4 : index
    %c0_98 = arith.constant 0 : index
    %c0_99 = arith.constant 0 : index
    %116 = vector.load %arg4[%c4_97, %c0_98, %c0_99] : memref<16x32x16xbf16, #tpu.memory_space<vmem>>, vector<1x32x16xbf16>
    %117 = vector.shape_cast %116 : vector<1x32x16xbf16> to vector<32x16xbf16>
    %cst_100 = arith.constant dense<0.000000e+00> : vector<16x16xf32>
    %118 = tpu.matmul %115, %117, %cst_100 {dimension_numbers = #tpu.dot_dimension_numbers<[1], [0], [0], [1], [0, 0, 1, 1], [], []>} : vector<16x32xbf16>, vector<32x16xbf16>, vector<16x16xf32> -> vector<16x16xf32>
    %c64 = arith.constant 64 : index
    %c0_101 = arith.constant 0 : index
    %119 = vector.load %arg14[%c64, %c0_101] : memref<256x48xf32, #tpu.memory_space<vmem>>, vector<16x16xf32>
    tpu.vector_store %arg14[%c64, %c0_101], %118 {strides = array<i32>} : memref<256x48xf32, #tpu.memory_space<vmem>>, vector<16x16xf32>,
    %120 = vector.extract_strided_slice %114 {offsets = [0, 32], sizes = [16, 32], strides = [1, 1]} : vector<16x96xbf16> to vector<16x32xbf16>
    %c4_102 = arith.constant 4 : index
    %c0_103 = arith.constant 0 : index
    %c0_104 = arith.constant 0 : index
    %121 = vector.load %arg4[%c4_102, %c0_103, %c0_104] : memref<16x32x16xbf16, #tpu.memory_space<vmem>>, vector<1x32x16xbf16>
    %122 = vector.shape_cast %121 : vector<1x32x16xbf16> to vector<32x16xbf16>
    %cst_105 = arith.constant dense<0.000000e+00> : vector<16x16xf32>
    %123 = tpu.matmul %120, %122, %cst_105 {dimension_numbers = #tpu.dot_dimension_numbers<[1], [0], [0], [1], [0, 0, 1, 1], [], []>} : vector<16x32xbf16>, vector<32x16xbf16>, vector<16x16xf32> -> vector<16x16xf32>
    %c64_106 = arith.constant 64 : index
    %c16_107 = arith.constant 16 : index
    %124 = vector.load %arg14[%c64_106, %c16_107] : memref<256x48xf32, #tpu.memory_space<vmem>>, vector<16x16xf32>
    tpu.vector_store %arg14[%c64_106, %c16_107], %123 {strides = array<i32>} : memref<256x48xf32, #tpu.memory_space<vmem>>, vector<16x16xf32>,
    %125 = vector.extract_strided_slice %114 {offsets = [0, 64], sizes = [16, 32], strides = [1, 1]} : vector<16x96xbf16> to vector<16x32xbf16>
    %c4_108 = arith.constant 4 : index
    %c0_109 = arith.constant 0 : index
    %c0_110 = arith.constant 0 : index
    %126 = vector.load %arg4[%c4_108, %c0_109, %c0_110] : memref<16x32x16xbf16, #tpu.memory_space<vmem>>, vector<1x32x16xbf16>
    %127 = vector.shape_cast %126 : vector<1x32x16xbf16> to vector<32x16xbf16>
    %cst_111 = arith.constant dense<0.000000e+00> : vector<16x16xf32>
    %128 = tpu.matmul %125, %127, %cst_111 {dimension_numbers = #tpu.dot_dimension_numbers<[1], [0], [0], [1], [0, 0, 1, 1], [], []>} : vector<16x32xbf16>, vector<32x16xbf16>, vector<16x16xf32> -> vector<16x16xf32>
    %c64_112 = arith.constant 64 : index
    %c32_113 = arith.constant 32 : index
    %129 = vector.load %arg14[%c64_112, %c32_113] : memref<256x48xf32, #tpu.memory_space<vmem>>, vector<16x16xf32>
    tpu.vector_store %arg14[%c64_112, %c32_113], %128 {strides = array<i32>} : memref<256x48xf32, #tpu.memory_space<vmem>>, vector<16x16xf32>,
    %c16_i32_114 = arith.constant 16 : i32
    %130 = arith.muli %arg0, %c16_i32_114 : i32
    %c5_i32 = arith.constant 5 : i32
    %131 = arith.addi %130, %c5_i32 : i32
    %132 = arith.index_cast %131 : i32 to index
    %133 = memref.load %arg1[%132] : memref<48xi32, #tpu.memory_space<smem>>
    %134 = arith.index_cast %133 : i32 to index
    %c0_115 = arith.constant 0 : index
    %c0_116 = arith.constant 0 : index
    %135 = vector.load %arg2[%134, %c0_115, %c0_116] : memref<4x32x96xbf16, #tpu.memory_space<vmem>>, vector<1x32x96xbf16>
    %136 = vector.shape_cast %135 : vector<1x32x96xbf16> to vector<32x96xbf16>
    %c5 = arith.constant 5 : index
    %c0_117 = arith.constant 0 : index
    %c0_118 = arith.constant 0 : index
    %137 = vector.load %arg3[%c5, %c0_117, %c0_118] : memref<16x16x32xbf16, #tpu.memory_space<vmem>>, vector<1x16x32xbf16>
    %138 = vector.shape_cast %137 : vector<1x16x32xbf16> to vector<16x32xbf16>
    %cst_119 = arith.constant dense<0.000000e+00> : vector<16x96xf32>
    %139 = tpu.matmul %138, %136, %cst_119 {dimension_numbers = #tpu.dot_dimension_numbers<[1], [0], [0], [1], [0, 0, 1, 1], [], []>} : vector<16x32xbf16>, vector<32x96xbf16>, vector<16x96xf32> -> vector<16x96xf32>
    %140 = arith.truncf %139 : vector<16x96xf32> to vector<16x96xbf16>
    %141 = vector.extract_strided_slice %140 {offsets = [0, 0], sizes = [16, 32], strides = [1, 1]} : vector<16x96xbf16> to vector<16x32xbf16>
    %c5_120 = arith.constant 5 : index
    %c0_121 = arith.constant 0 : index
    %c0_122 = arith.constant 0 : index
    %142 = vector.load %arg4[%c5_120, %c0_121, %c0_122] : memref<16x32x16xbf16, #tpu.memory_space<vmem>>, vector<1x32x16xbf16>
    %143 = vector.shape_cast %142 : vector<1x32x16xbf16> to vector<32x16xbf16>
    %cst_123 = arith.constant dense<0.000000e+00> : vector<16x16xf32>
    %144 = tpu.matmul %141, %143, %cst_123 {dimension_numbers = #tpu.dot_dimension_numbers<[1], [0], [0], [1], [0, 0, 1, 1], [], []>} : vector<16x32xbf16>, vector<32x16xbf16>, vector<16x16xf32> -> vector<16x16xf32>
    %c80 = arith.constant 80 : index
    %c0_124 = arith.constant 0 : index
    %145 = vector.load %arg14[%c80, %c0_124] : memref<256x48xf32, #tpu.memory_space<vmem>>, vector<16x16xf32>
    tpu.vector_store %arg14[%c80, %c0_124], %144 {strides = array<i32>} : memref<256x48xf32, #tpu.memory_space<vmem>>, vector<16x16xf32>,
    %146 = vector.extract_strided_slice %140 {offsets = [0, 32], sizes = [16, 32], strides = [1, 1]} : vector<16x96xbf16> to vector<16x32xbf16>
    %c5_125 = arith.constant 5 : index
    %c0_126 = arith.constant 0 : index
    %c0_127 = arith.constant 0 : index
    %147 = vector.load %arg4[%c5_125, %c0_126, %c0_127] : memref<16x32x16xbf16, #tpu.memory_space<vmem>>, vector<1x32x16xbf16>
    %148 = vector.shape_cast %147 : vector<1x32x16xbf16> to vector<32x16xbf16>
    %cst_128 = arith.constant dense<0.000000e+00> : vector<16x16xf32>
    %149 = tpu.matmul %146, %148, %cst_128 {dimension_numbers = #tpu.dot_dimension_numbers<[1], [0], [0], [1], [0, 0, 1, 1], [], []>} : vector<16x32xbf16>, vector<32x16xbf16>, vector<16x16xf32> -> vector<16x16xf32>
    %c80_129 = arith.constant 80 : index
    %c16_130 = arith.constant 16 : index
    %150 = vector.load %arg14[%c80_129, %c16_130] : memref<256x48xf32, #tpu.memory_space<vmem>>, vector<16x16xf32>
    tpu.vector_store %arg14[%c80_129, %c16_130], %149 {strides = array<i32>} : memref<256x48xf32, #tpu.memory_space<vmem>>, vector<16x16xf32>,
    %151 = vector.extract_strided_slice %140 {offsets = [0, 64], sizes = [16, 32], strides = [1, 1]} : vector<16x96xbf16> to vector<16x32xbf16>
    %c5_131 = arith.constant 5 : index
    %c0_132 = arith.constant 0 : index
    %c0_133 = arith.constant 0 : index
    %152 = vector.load %arg4[%c5_131, %c0_132, %c0_133] : memref<16x32x16xbf16, #tpu.memory_space<vmem>>, vector<1x32x16xbf16>
    %153 = vector.shape_cast %152 : vector<1x32x16xbf16> to vector<32x16xbf16>
    %cst_134 = arith.constant dense<0.000000e+00> : vector<16x16xf32>
    %154 = tpu.matmul %151, %153, %cst_134 {dimension_numbers = #tpu.dot_dimension_numbers<[1], [0], [0], [1], [0, 0, 1, 1], [], []>} : vector<16x32xbf16>, vector<32x16xbf16>, vector<16x16xf32> -> vector<16x16xf32>
    %c80_135 = arith.constant 80 : index
    %c32_136 = arith.constant 32 : index
    %155 = vector.load %arg14[%c80_135, %c32_136] : memref<256x48xf32, #tpu.memory_space<vmem>>, vector<16x16xf32>
    tpu.vector_store %arg14[%c80_135, %c32_136], %154 {strides = array<i32>} : memref<256x48xf32, #tpu.memory_space<vmem>>, vector<16x16xf32>,
    %c16_i32_137 = arith.constant 16 : i32
    %156 = arith.muli %arg0, %c16_i32_137 : i32
    %c6_i32 = arith.constant 6 : i32
    %157 = arith.addi %156, %c6_i32 : i32
    %158 = arith.index_cast %157 : i32 to index
    %159 = memref.load %arg1[%158] : memref<48xi32, #tpu.memory_space<smem>>
    %160 = arith.index_cast %159 : i32 to index
    %c0_138 = arith.constant 0 : index
    %c0_139 = arith.constant 0 : index
    %161 = vector.load %arg2[%160, %c0_138, %c0_139] : memref<4x32x96xbf16, #tpu.memory_space<vmem>>, vector<1x32x96xbf16>
    %162 = vector.shape_cast %161 : vector<1x32x96xbf16> to vector<32x96xbf16>
    %c6 = arith.constant 6 : index
    %c0_140 = arith.constant 0 : index
    %c0_141 = arith.constant 0 : index
    %163 = vector.load %arg3[%c6, %c0_140, %c0_141] : memref<16x16x32xbf16, #tpu.memory_space<vmem>>, vector<1x16x32xbf16>
    %164 = vector.shape_cast %163 : vector<1x16x32xbf16> to vector<16x32xbf16>
    %cst_142 = arith.constant dense<0.000000e+00> : vector<16x96xf32>
    %165 = tpu.matmul %164, %162, %cst_142 {dimension_numbers = #tpu.dot_dimension_numbers<[1], [0], [0], [1], [0, 0, 1, 1], [], []>} : vector<16x32xbf16>, vector<32x96xbf16>, vector<16x96xf32> -> vector<16x96xf32>
    %166 = arith.truncf %165 : vector<16x96xf32> to vector<16x96xbf16>
    %167 = vector.extract_strided_slice %166 {offsets = [0, 0], sizes = [16, 32], strides = [1, 1]} : vector<16x96xbf16> to vector<16x32xbf16>
    %c6_143 = arith.constant 6 : index
    %c0_144 = arith.constant 0 : index
    %c0_145 = arith.constant 0 : index
    %168 = vector.load %arg4[%c6_143, %c0_144, %c0_145] : memref<16x32x16xbf16, #tpu.memory_space<vmem>>, vector<1x32x16xbf16>
    %169 = vector.shape_cast %168 : vector<1x32x16xbf16> to vector<32x16xbf16>
    %cst_146 = arith.constant dense<0.000000e+00> : vector<16x16xf32>
    %170 = tpu.matmul %167, %169, %cst_146 {dimension_numbers = #tpu.dot_dimension_numbers<[1], [0], [0], [1], [0, 0, 1, 1], [], []>} : vector<16x32xbf16>, vector<32x16xbf16>, vector<16x16xf32> -> vector<16x16xf32>
    %c96 = arith.constant 96 : index
    %c0_147 = arith.constant 0 : index
    %171 = vector.load %arg14[%c96, %c0_147] : memref<256x48xf32, #tpu.memory_space<vmem>>, vector<16x16xf32>
    tpu.vector_store %arg14[%c96, %c0_147], %170 {strides = array<i32>} : memref<256x48xf32, #tpu.memory_space<vmem>>, vector<16x16xf32>,
    %172 = vector.extract_strided_slice %166 {offsets = [0, 32], sizes = [16, 32], strides = [1, 1]} : vector<16x96xbf16> to vector<16x32xbf16>
    %c6_148 = arith.constant 6 : index
    %c0_149 = arith.constant 0 : index
    %c0_150 = arith.constant 0 : index
    %173 = vector.load %arg4[%c6_148, %c0_149, %c0_150] : memref<16x32x16xbf16, #tpu.memory_space<vmem>>, vector<1x32x16xbf16>
    %174 = vector.shape_cast %173 : vector<1x32x16xbf16> to vector<32x16xbf16>
    %cst_151 = arith.constant dense<0.000000e+00> : vector<16x16xf32>
    %175 = tpu.matmul %172, %174, %cst_151 {dimension_numbers = #tpu.dot_dimension_numbers<[1], [0], [0], [1], [0, 0, 1, 1], [], []>} : vector<16x32xbf16>, vector<32x16xbf16>, vector<16x16xf32> -> vector<16x16xf32>
    %c96_152 = arith.constant 96 : index
    %c16_153 = arith.constant 16 : index
    %176 = vector.load %arg14[%c96_152, %c16_153] : memref<256x48xf32, #tpu.memory_space<vmem>>, vector<16x16xf32>
    tpu.vector_store %arg14[%c96_152, %c16_153], %175 {strides = array<i32>} : memref<256x48xf32, #tpu.memory_space<vmem>>, vector<16x16xf32>,
    %177 = vector.extract_strided_slice %166 {offsets = [0, 64], sizes = [16, 32], strides = [1, 1]} : vector<16x96xbf16> to vector<16x32xbf16>
    %c6_154 = arith.constant 6 : index
    %c0_155 = arith.constant 0 : index
    %c0_156 = arith.constant 0 : index
    %178 = vector.load %arg4[%c6_154, %c0_155, %c0_156] : memref<16x32x16xbf16, #tpu.memory_space<vmem>>, vector<1x32x16xbf16>
    %179 = vector.shape_cast %178 : vector<1x32x16xbf16> to vector<32x16xbf16>
    %cst_157 = arith.constant dense<0.000000e+00> : vector<16x16xf32>
    %180 = tpu.matmul %177, %179, %cst_157 {dimension_numbers = #tpu.dot_dimension_numbers<[1], [0], [0], [1], [0, 0, 1, 1], [], []>} : vector<16x32xbf16>, vector<32x16xbf16>, vector<16x16xf32> -> vector<16x16xf32>
    %c96_158 = arith.constant 96 : index
    %c32_159 = arith.constant 32 : index
    %181 = vector.load %arg14[%c96_158, %c32_159] : memref<256x48xf32, #tpu.memory_space<vmem>>, vector<16x16xf32>
    tpu.vector_store %arg14[%c96_158, %c32_159], %180 {strides = array<i32>} : memref<256x48xf32, #tpu.memory_space<vmem>>, vector<16x16xf32>,
    %c16_i32_160 = arith.constant 16 : i32
    %182 = arith.muli %arg0, %c16_i32_160 : i32
    %c7_i32 = arith.constant 7 : i32
    %183 = arith.addi %182, %c7_i32 : i32
    %184 = arith.index_cast %183 : i32 to index
    %185 = memref.load %arg1[%184] : memref<48xi32, #tpu.memory_space<smem>>
    %186 = arith.index_cast %185 : i32 to index
    %c0_161 = arith.constant 0 : index
    %c0_162 = arith.constant 0 : index
    %187 = vector.load %arg2[%186, %c0_161, %c0_162] : memref<4x32x96xbf16, #tpu.memory_space<vmem>>, vector<1x32x96xbf16>
    %188 = vector.shape_cast %187 : vector<1x32x96xbf16> to vector<32x96xbf16>
    %c7 = arith.constant 7 : index
    %c0_163 = arith.constant 0 : index
    %c0_164 = arith.constant 0 : index
    %189 = vector.load %arg3[%c7, %c0_163, %c0_164] : memref<16x16x32xbf16, #tpu.memory_space<vmem>>, vector<1x16x32xbf16>
    %190 = vector.shape_cast %189 : vector<1x16x32xbf16> to vector<16x32xbf16>
    %cst_165 = arith.constant dense<0.000000e+00> : vector<16x96xf32>
    %191 = tpu.matmul %190, %188, %cst_165 {dimension_numbers = #tpu.dot_dimension_numbers<[1], [0], [0], [1], [0, 0, 1, 1], [], []>} : vector<16x32xbf16>, vector<32x96xbf16>, vector<16x96xf32> -> vector<16x96xf32>
    %192 = arith.truncf %191 : vector<16x96xf32> to vector<16x96xbf16>
    %193 = vector.extract_strided_slice %192 {offsets = [0, 0], sizes = [16, 32], strides = [1, 1]} : vector<16x96xbf16> to vector<16x32xbf16>
    %c7_166 = arith.constant 7 : index
    %c0_167 = arith.constant 0 : index
    %c0_168 = arith.constant 0 : index
    %194 = vector.load %arg4[%c7_166, %c0_167, %c0_168] : memref<16x32x16xbf16, #tpu.memory_space<vmem>>, vector<1x32x16xbf16>
    %195 = vector.shape_cast %194 : vector<1x32x16xbf16> to vector<32x16xbf16>
    %cst_169 = arith.constant dense<0.000000e+00> : vector<16x16xf32>
    %196 = tpu.matmul %193, %195, %cst_169 {dimension_numbers = #tpu.dot_dimension_numbers<[1], [0], [0], [1], [0, 0, 1, 1], [], []>} : vector<16x32xbf16>, vector<32x16xbf16>, vector<16x16xf32> -> vector<16x16xf32>
    %c112 = arith.constant 112 : index
    %c0_170 = arith.constant 0 : index
    %197 = vector.load %arg14[%c112, %c0_170] : memref<256x48xf32, #tpu.memory_space<vmem>>, vector<16x16xf32>
    tpu.vector_store %arg14[%c112, %c0_170], %196 {strides = array<i32>} : memref<256x48xf32, #tpu.memory_space<vmem>>, vector<16x16xf32>,
    %198 = vector.extract_strided_slice %192 {offsets = [0, 32], sizes = [16, 32], strides = [1, 1]} : vector<16x96xbf16> to vector<16x32xbf16>
    %c7_171 = arith.constant 7 : index
    %c0_172 = arith.constant 0 : index
    %c0_173 = arith.constant 0 : index
    %199 = vector.load %arg4[%c7_171, %c0_172, %c0_173] : memref<16x32x16xbf16, #tpu.memory_space<vmem>>, vector<1x32x16xbf16>
    %200 = vector.shape_cast %199 : vector<1x32x16xbf16> to vector<32x16xbf16>
    %cst_174 = arith.constant dense<0.000000e+00> : vector<16x16xf32>
    %201 = tpu.matmul %198, %200, %cst_174 {dimension_numbers = #tpu.dot_dimension_numbers<[1], [0], [0], [1], [0, 0, 1, 1], [], []>} : vector<16x32xbf16>, vector<32x16xbf16>, vector<16x16xf32> -> vector<16x16xf32>
    %c112_175 = arith.constant 112 : index
    %c16_176 = arith.constant 16 : index
    %202 = vector.load %arg14[%c112_175, %c16_176] : memref<256x48xf32, #tpu.memory_space<vmem>>, vector<16x16xf32>
    tpu.vector_store %arg14[%c112_175, %c16_176], %201 {strides = array<i32>} : memref<256x48xf32, #tpu.memory_space<vmem>>, vector<16x16xf32>,
    %203 = vector.extract_strided_slice %192 {offsets = [0, 64], sizes = [16, 32], strides = [1, 1]} : vector<16x96xbf16> to vector<16x32xbf16>
    %c7_177 = arith.constant 7 : index
    %c0_178 = arith.constant 0 : index
    %c0_179 = arith.constant 0 : index
    %204 = vector.load %arg4[%c7_177, %c0_178, %c0_179] : memref<16x32x16xbf16, #tpu.memory_space<vmem>>, vector<1x32x16xbf16>
    %205 = vector.shape_cast %204 : vector<1x32x16xbf16> to vector<32x16xbf16>
    %cst_180 = arith.constant dense<0.000000e+00> : vector<16x16xf32>
    %206 = tpu.matmul %203, %205, %cst_180 {dimension_numbers = #tpu.dot_dimension_numbers<[1], [0], [0], [1], [0, 0, 1, 1], [], []>} : vector<16x32xbf16>, vector<32x16xbf16>, vector<16x16xf32> -> vector<16x16xf32>
    %c112_181 = arith.constant 112 : index
    %c32_182 = arith.constant 32 : index
    %207 = vector.load %arg14[%c112_181, %c32_182] : memref<256x48xf32, #tpu.memory_space<vmem>>, vector<16x16xf32>
    tpu.vector_store %arg14[%c112_181, %c32_182], %206 {strides = array<i32>} : memref<256x48xf32, #tpu.memory_space<vmem>>, vector<16x16xf32>,
    %c16_i32_183 = arith.constant 16 : i32
    %208 = arith.muli %arg0, %c16_i32_183 : i32
    %c8_i32 = arith.constant 8 : i32
    %209 = arith.addi %208, %c8_i32 : i32
    %210 = arith.index_cast %209 : i32 to index
    %211 = memref.load %arg1[%210] : memref<48xi32, #tpu.memory_space<smem>>
    %212 = arith.index_cast %211 : i32 to index
    %c0_184 = arith.constant 0 : index
    %c0_185 = arith.constant 0 : index
    %213 = vector.load %arg2[%212, %c0_184, %c0_185] : memref<4x32x96xbf16, #tpu.memory_space<vmem>>, vector<1x32x96xbf16>
    %214 = vector.shape_cast %213 : vector<1x32x96xbf16> to vector<32x96xbf16>
    %c8 = arith.constant 8 : index
    %c0_186 = arith.constant 0 : index
    %c0_187 = arith.constant 0 : index
    %215 = vector.load %arg3[%c8, %c0_186, %c0_187] : memref<16x16x32xbf16, #tpu.memory_space<vmem>>, vector<1x16x32xbf16>
    %216 = vector.shape_cast %215 : vector<1x16x32xbf16> to vector<16x32xbf16>
    %cst_188 = arith.constant dense<0.000000e+00> : vector<16x96xf32>
    %217 = tpu.matmul %216, %214, %cst_188 {dimension_numbers = #tpu.dot_dimension_numbers<[1], [0], [0], [1], [0, 0, 1, 1], [], []>} : vector<16x32xbf16>, vector<32x96xbf16>, vector<16x96xf32> -> vector<16x96xf32>
    %218 = arith.truncf %217 : vector<16x96xf32> to vector<16x96xbf16>
    %219 = vector.extract_strided_slice %218 {offsets = [0, 0], sizes = [16, 32], strides = [1, 1]} : vector<16x96xbf16> to vector<16x32xbf16>
    %c8_189 = arith.constant 8 : index
    %c0_190 = arith.constant 0 : index
    %c0_191 = arith.constant 0 : index
    %220 = vector.load %arg4[%c8_189, %c0_190, %c0_191] : memref<16x32x16xbf16, #tpu.memory_space<vmem>>, vector<1x32x16xbf16>
    %221 = vector.shape_cast %220 : vector<1x32x16xbf16> to vector<32x16xbf16>
    %cst_192 = arith.constant dense<0.000000e+00> : vector<16x16xf32>
    %222 = tpu.matmul %219, %221, %cst_192 {dimension_numbers = #tpu.dot_dimension_numbers<[1], [0], [0], [1], [0, 0, 1, 1], [], []>} : vector<16x32xbf16>, vector<32x16xbf16>, vector<16x16xf32> -> vector<16x16xf32>
    %c128 = arith.constant 128 : index
    %c0_193 = arith.constant 0 : index
    %223 = vector.load %arg14[%c128, %c0_193] : memref<256x48xf32, #tpu.memory_space<vmem>>, vector<16x16xf32>
    tpu.vector_store %arg14[%c128, %c0_193], %222 {strides = array<i32>} : memref<256x48xf32, #tpu.memory_space<vmem>>, vector<16x16xf32>,
    %224 = vector.extract_strided_slice %218 {offsets = [0, 32], sizes = [16, 32], strides = [1, 1]} : vector<16x96xbf16> to vector<16x32xbf16>
    %c8_194 = arith.constant 8 : index
    %c0_195 = arith.constant 0 : index
    %c0_196 = arith.constant 0 : index
    %225 = vector.load %arg4[%c8_194, %c0_195, %c0_196] : memref<16x32x16xbf16, #tpu.memory_space<vmem>>, vector<1x32x16xbf16>
    %226 = vector.shape_cast %225 : vector<1x32x16xbf16> to vector<32x16xbf16>
    %cst_197 = arith.constant dense<0.000000e+00> : vector<16x16xf32>
    %227 = tpu.matmul %224, %226, %cst_197 {dimension_numbers = #tpu.dot_dimension_numbers<[1], [0], [0], [1], [0, 0, 1, 1], [], []>} : vector<16x32xbf16>, vector<32x16xbf16>, vector<16x16xf32> -> vector<16x16xf32>
    %c128_198 = arith.constant 128 : index
    %c16_199 = arith.constant 16 : index
    %228 = vector.load %arg14[%c128_198, %c16_199] : memref<256x48xf32, #tpu.memory_space<vmem>>, vector<16x16xf32>
    tpu.vector_store %arg14[%c128_198, %c16_199], %227 {strides = array<i32>} : memref<256x48xf32, #tpu.memory_space<vmem>>, vector<16x16xf32>,
    %229 = vector.extract_strided_slice %218 {offsets = [0, 64], sizes = [16, 32], strides = [1, 1]} : vector<16x96xbf16> to vector<16x32xbf16>
    %c8_200 = arith.constant 8 : index
    %c0_201 = arith.constant 0 : index
    %c0_202 = arith.constant 0 : index
    %230 = vector.load %arg4[%c8_200, %c0_201, %c0_202] : memref<16x32x16xbf16, #tpu.memory_space<vmem>>, vector<1x32x16xbf16>
    %231 = vector.shape_cast %230 : vector<1x32x16xbf16> to vector<32x16xbf16>
    %cst_203 = arith.constant dense<0.000000e+00> : vector<16x16xf32>
    %232 = tpu.matmul %229, %231, %cst_203 {dimension_numbers = #tpu.dot_dimension_numbers<[1], [0], [0], [1], [0, 0, 1, 1], [], []>} : vector<16x32xbf16>, vector<32x16xbf16>, vector<16x16xf32> -> vector<16x16xf32>
    %c128_204 = arith.constant 128 : index
    %c32_205 = arith.constant 32 : index
    %233 = vector.load %arg14[%c128_204, %c32_205] : memref<256x48xf32, #tpu.memory_space<vmem>>, vector<16x16xf32>
    tpu.vector_store %arg14[%c128_204, %c32_205], %232 {strides = array<i32>} : memref<256x48xf32, #tpu.memory_space<vmem>>, vector<16x16xf32>,
    %c16_i32_206 = arith.constant 16 : i32
    %234 = arith.muli %arg0, %c16_i32_206 : i32
    %c9_i32 = arith.constant 9 : i32
    %235 = arith.addi %234, %c9_i32 : i32
    %236 = arith.index_cast %235 : i32 to index
    %237 = memref.load %arg1[%236] : memref<48xi32, #tpu.memory_space<smem>>
    %238 = arith.index_cast %237 : i32 to index
    %c0_207 = arith.constant 0 : index
    %c0_208 = arith.constant 0 : index
    %239 = vector.load %arg2[%238, %c0_207, %c0_208] : memref<4x32x96xbf16, #tpu.memory_space<vmem>>, vector<1x32x96xbf16>
    %240 = vector.shape_cast %239 : vector<1x32x96xbf16> to vector<32x96xbf16>
    %c9 = arith.constant 9 : index
    %c0_209 = arith.constant 0 : index
    %c0_210 = arith.constant 0 : index
    %241 = vector.load %arg3[%c9, %c0_209, %c0_210] : memref<16x16x32xbf16, #tpu.memory_space<vmem>>, vector<1x16x32xbf16>
    %242 = vector.shape_cast %241 : vector<1x16x32xbf16> to vector<16x32xbf16>
    %cst_211 = arith.constant dense<0.000000e+00> : vector<16x96xf32>
    %243 = tpu.matmul %242, %240, %cst_211 {dimension_numbers = #tpu.dot_dimension_numbers<[1], [0], [0], [1], [0, 0, 1, 1], [], []>} : vector<16x32xbf16>, vector<32x96xbf16>, vector<16x96xf32> -> vector<16x96xf32>
    %244 = arith.truncf %243 : vector<16x96xf32> to vector<16x96xbf16>
    %245 = vector.extract_strided_slice %244 {offsets = [0, 0], sizes = [16, 32], strides = [1, 1]} : vector<16x96xbf16> to vector<16x32xbf16>
    %c9_212 = arith.constant 9 : index
    %c0_213 = arith.constant 0 : index
    %c0_214 = arith.constant 0 : index
    %246 = vector.load %arg4[%c9_212, %c0_213, %c0_214] : memref<16x32x16xbf16, #tpu.memory_space<vmem>>, vector<1x32x16xbf16>
    %247 = vector.shape_cast %246 : vector<1x32x16xbf16> to vector<32x16xbf16>
    %cst_215 = arith.constant dense<0.000000e+00> : vector<16x16xf32>
    %248 = tpu.matmul %245, %247, %cst_215 {dimension_numbers = #tpu.dot_dimension_numbers<[1], [0], [0], [1], [0, 0, 1, 1], [], []>} : vector<16x32xbf16>, vector<32x16xbf16>, vector<16x16xf32> -> vector<16x16xf32>
    %c144 = arith.constant 144 : index
    %c0_216 = arith.constant 0 : index
    %249 = vector.load %arg14[%c144, %c0_216] : memref<256x48xf32, #tpu.memory_space<vmem>>, vector<16x16xf32>
    tpu.vector_store %arg14[%c144, %c0_216], %248 {strides = array<i32>} : memref<256x48xf32, #tpu.memory_space<vmem>>, vector<16x16xf32>,
    %250 = vector.extract_strided_slice %244 {offsets = [0, 32], sizes = [16, 32], strides = [1, 1]} : vector<16x96xbf16> to vector<16x32xbf16>
    %c9_217 = arith.constant 9 : index
    %c0_218 = arith.constant 0 : index
    %c0_219 = arith.constant 0 : index
    %251 = vector.load %arg4[%c9_217, %c0_218, %c0_219] : memref<16x32x16xbf16, #tpu.memory_space<vmem>>, vector<1x32x16xbf16>
    %252 = vector.shape_cast %251 : vector<1x32x16xbf16> to vector<32x16xbf16>
    %cst_220 = arith.constant dense<0.000000e+00> : vector<16x16xf32>
    %253 = tpu.matmul %250, %252, %cst_220 {dimension_numbers = #tpu.dot_dimension_numbers<[1], [0], [0], [1], [0, 0, 1, 1], [], []>} : vector<16x32xbf16>, vector<32x16xbf16>, vector<16x16xf32> -> vector<16x16xf32>
    %c144_221 = arith.constant 144 : index
    %c16_222 = arith.constant 16 : index
    %254 = vector.load %arg14[%c144_221, %c16_222] : memref<256x48xf32, #tpu.memory_space<vmem>>, vector<16x16xf32>
    tpu.vector_store %arg14[%c144_221, %c16_222], %253 {strides = array<i32>} : memref<256x48xf32, #tpu.memory_space<vmem>>, vector<16x16xf32>,
    %255 = vector.extract_strided_slice %244 {offsets = [0, 64], sizes = [16, 32], strides = [1, 1]} : vector<16x96xbf16> to vector<16x32xbf16>
    %c9_223 = arith.constant 9 : index
    %c0_224 = arith.constant 0 : index
    %c0_225 = arith.constant 0 : index
    %256 = vector.load %arg4[%c9_223, %c0_224, %c0_225] : memref<16x32x16xbf16, #tpu.memory_space<vmem>>, vector<1x32x16xbf16>
    %257 = vector.shape_cast %256 : vector<1x32x16xbf16> to vector<32x16xbf16>
    %cst_226 = arith.constant dense<0.000000e+00> : vector<16x16xf32>
    %258 = tpu.matmul %255, %257, %cst_226 {dimension_numbers = #tpu.dot_dimension_numbers<[1], [0], [0], [1], [0, 0, 1, 1], [], []>} : vector<16x32xbf16>, vector<32x16xbf16>, vector<16x16xf32> -> vector<16x16xf32>
    %c144_227 = arith.constant 144 : index
    %c32_228 = arith.constant 32 : index
    %259 = vector.load %arg14[%c144_227, %c32_228] : memref<256x48xf32, #tpu.memory_space<vmem>>, vector<16x16xf32>
    tpu.vector_store %arg14[%c144_227, %c32_228], %258 {strides = array<i32>} : memref<256x48xf32, #tpu.memory_space<vmem>>, vector<16x16xf32>,
    %c16_i32_229 = arith.constant 16 : i32
    %260 = arith.muli %arg0, %c16_i32_229 : i32
    %c10_i32 = arith.constant 10 : i32
    %261 = arith.addi %260, %c10_i32 : i32
    %262 = arith.index_cast %261 : i32 to index
    %263 = memref.load %arg1[%262] : memref<48xi32, #tpu.memory_space<smem>>
    %264 = arith.index_cast %263 : i32 to index
    %c0_230 = arith.constant 0 : index
    %c0_231 = arith.constant 0 : index
    %265 = vector.load %arg2[%264, %c0_230, %c0_231] : memref<4x32x96xbf16, #tpu.memory_space<vmem>>, vector<1x32x96xbf16>
    %266 = vector.shape_cast %265 : vector<1x32x96xbf16> to vector<32x96xbf16>
    %c10 = arith.constant 10 : index
    %c0_232 = arith.constant 0 : index
    %c0_233 = arith.constant 0 : index
    %267 = vector.load %arg3[%c10, %c0_232, %c0_233] : memref<16x16x32xbf16, #tpu.memory_space<vmem>>, vector<1x16x32xbf16>
    %268 = vector.shape_cast %267 : vector<1x16x32xbf16> to vector<16x32xbf16>
    %cst_234 = arith.constant dense<0.000000e+00> : vector<16x96xf32>
    %269 = tpu.matmul %268, %266, %cst_234 {dimension_numbers = #tpu.dot_dimension_numbers<[1], [0], [0], [1], [0, 0, 1, 1], [], []>} : vector<16x32xbf16>, vector<32x96xbf16>, vector<16x96xf32> -> vector<16x96xf32>
    %270 = arith.truncf %269 : vector<16x96xf32> to vector<16x96xbf16>
    %271 = vector.extract_strided_slice %270 {offsets = [0, 0], sizes = [16, 32], strides = [1, 1]} : vector<16x96xbf16> to vector<16x32xbf16>
    %c10_235 = arith.constant 10 : index
    %c0_236 = arith.constant 0 : index
    %c0_237 = arith.constant 0 : index
    %272 = vector.load %arg4[%c10_235, %c0_236, %c0_237] : memref<16x32x16xbf16, #tpu.memory_space<vmem>>, vector<1x32x16xbf16>
    %273 = vector.shape_cast %272 : vector<1x32x16xbf16> to vector<32x16xbf16>
    %cst_238 = arith.constant dense<0.000000e+00> : vector<16x16xf32>
    %274 = tpu.matmul %271, %273, %cst_238 {dimension_numbers = #tpu.dot_dimension_numbers<[1], [0], [0], [1], [0, 0, 1, 1], [], []>} : vector<16x32xbf16>, vector<32x16xbf16>, vector<16x16xf32> -> vector<16x16xf32>
    %c160 = arith.constant 160 : index
    %c0_239 = arith.constant 0 : index
    %275 = vector.load %arg14[%c160, %c0_239] : memref<256x48xf32, #tpu.memory_space<vmem>>, vector<16x16xf32>
    tpu.vector_store %arg14[%c160, %c0_239], %274 {strides = array<i32>} : memref<256x48xf32, #tpu.memory_space<vmem>>, vector<16x16xf32>,
    %276 = vector.extract_strided_slice %270 {offsets = [0, 32], sizes = [16, 32], strides = [1, 1]} : vector<16x96xbf16> to vector<16x32xbf16>
    %c10_240 = arith.constant 10 : index
    %c0_241 = arith.constant 0 : index
    %c0_242 = arith.constant 0 : index
    %277 = vector.load %arg4[%c10_240, %c0_241, %c0_242] : memref<16x32x16xbf16, #tpu.memory_space<vmem>>, vector<1x32x16xbf16>
    %278 = vector.shape_cast %277 : vector<1x32x16xbf16> to vector<32x16xbf16>
    %cst_243 = arith.constant dense<0.000000e+00> : vector<16x16xf32>
    %279 = tpu.matmul %276, %278, %cst_243 {dimension_numbers = #tpu.dot_dimension_numbers<[1], [0], [0], [1], [0, 0, 1, 1], [], []>} : vector<16x32xbf16>, vector<32x16xbf16>, vector<16x16xf32> -> vector<16x16xf32>
    %c160_244 = arith.constant 160 : index
    %c16_245 = arith.constant 16 : index
    %280 = vector.load %arg14[%c160_244, %c16_245] : memref<256x48xf32, #tpu.memory_space<vmem>>, vector<16x16xf32>
    tpu.vector_store %arg14[%c160_244, %c16_245], %279 {strides = array<i32>} : memref<256x48xf32, #tpu.memory_space<vmem>>, vector<16x16xf32>,
    %281 = vector.extract_strided_slice %270 {offsets = [0, 64], sizes = [16, 32], strides = [1, 1]} : vector<16x96xbf16> to vector<16x32xbf16>
    %c10_246 = arith.constant 10 : index
    %c0_247 = arith.constant 0 : index
    %c0_248 = arith.constant 0 : index
    %282 = vector.load %arg4[%c10_246, %c0_247, %c0_248] : memref<16x32x16xbf16, #tpu.memory_space<vmem>>, vector<1x32x16xbf16>
    %283 = vector.shape_cast %282 : vector<1x32x16xbf16> to vector<32x16xbf16>
    %cst_249 = arith.constant dense<0.000000e+00> : vector<16x16xf32>
    %284 = tpu.matmul %281, %283, %cst_249 {dimension_numbers = #tpu.dot_dimension_numbers<[1], [0], [0], [1], [0, 0, 1, 1], [], []>} : vector<16x32xbf16>, vector<32x16xbf16>, vector<16x16xf32> -> vector<16x16xf32>
    %c160_250 = arith.constant 160 : index
    %c32_251 = arith.constant 32 : index
    %285 = vector.load %arg14[%c160_250, %c32_251] : memref<256x48xf32, #tpu.memory_space<vmem>>, vector<16x16xf32>
    tpu.vector_store %arg14[%c160_250, %c32_251], %284 {strides = array<i32>} : memref<256x48xf32, #tpu.memory_space<vmem>>, vector<16x16xf32>,
    %c16_i32_252 = arith.constant 16 : i32
    %286 = arith.muli %arg0, %c16_i32_252 : i32
    %c11_i32 = arith.constant 11 : i32
    %287 = arith.addi %286, %c11_i32 : i32
    %288 = arith.index_cast %287 : i32 to index
    %289 = memref.load %arg1[%288] : memref<48xi32, #tpu.memory_space<smem>>
    %290 = arith.index_cast %289 : i32 to index
    %c0_253 = arith.constant 0 : index
    %c0_254 = arith.constant 0 : index
    %291 = vector.load %arg2[%290, %c0_253, %c0_254] : memref<4x32x96xbf16, #tpu.memory_space<vmem>>, vector<1x32x96xbf16>
    %292 = vector.shape_cast %291 : vector<1x32x96xbf16> to vector<32x96xbf16>
    %c11 = arith.constant 11 : index
    %c0_255 = arith.constant 0 : index
    %c0_256 = arith.constant 0 : index
    %293 = vector.load %arg3[%c11, %c0_255, %c0_256] : memref<16x16x32xbf16, #tpu.memory_space<vmem>>, vector<1x16x32xbf16>
    %294 = vector.shape_cast %293 : vector<1x16x32xbf16> to vector<16x32xbf16>
    %cst_257 = arith.constant dense<0.000000e+00> : vector<16x96xf32>
    %295 = tpu.matmul %294, %292, %cst_257 {dimension_numbers = #tpu.dot_dimension_numbers<[1], [0], [0], [1], [0, 0, 1, 1], [], []>} : vector<16x32xbf16>, vector<32x96xbf16>, vector<16x96xf32> -> vector<16x96xf32>
    %296 = arith.truncf %295 : vector<16x96xf32> to vector<16x96xbf16>
    %297 = vector.extract_strided_slice %296 {offsets = [0, 0], sizes = [16, 32], strides = [1, 1]} : vector<16x96xbf16> to vector<16x32xbf16>
    %c11_258 = arith.constant 11 : index
    %c0_259 = arith.constant 0 : index
    %c0_260 = arith.constant 0 : index
    %298 = vector.load %arg4[%c11_258, %c0_259, %c0_260] : memref<16x32x16xbf16, #tpu.memory_space<vmem>>, vector<1x32x16xbf16>
    %299 = vector.shape_cast %298 : vector<1x32x16xbf16> to vector<32x16xbf16>
    %cst_261 = arith.constant dense<0.000000e+00> : vector<16x16xf32>
    %300 = tpu.matmul %297, %299, %cst_261 {dimension_numbers = #tpu.dot_dimension_numbers<[1], [0], [0], [1], [0, 0, 1, 1], [], []>} : vector<16x32xbf16>, vector<32x16xbf16>, vector<16x16xf32> -> vector<16x16xf32>
    %c176 = arith.constant 176 : index
    %c0_262 = arith.constant 0 : index
    %301 = vector.load %arg14[%c176, %c0_262] : memref<256x48xf32, #tpu.memory_space<vmem>>, vector<16x16xf32>
    tpu.vector_store %arg14[%c176, %c0_262], %300 {strides = array<i32>} : memref<256x48xf32, #tpu.memory_space<vmem>>, vector<16x16xf32>,
    %302 = vector.extract_strided_slice %296 {offsets = [0, 32], sizes = [16, 32], strides = [1, 1]} : vector<16x96xbf16> to vector<16x32xbf16>
    %c11_263 = arith.constant 11 : index
    %c0_264 = arith.constant 0 : index
    %c0_265 = arith.constant 0 : index
    %303 = vector.load %arg4[%c11_263, %c0_264, %c0_265] : memref<16x32x16xbf16, #tpu.memory_space<vmem>>, vector<1x32x16xbf16>
    %304 = vector.shape_cast %303 : vector<1x32x16xbf16> to vector<32x16xbf16>
    %cst_266 = arith.constant dense<0.000000e+00> : vector<16x16xf32>
    %305 = tpu.matmul %302, %304, %cst_266 {dimension_numbers = #tpu.dot_dimension_numbers<[1], [0], [0], [1], [0, 0, 1, 1], [], []>} : vector<16x32xbf16>, vector<32x16xbf16>, vector<16x16xf32> -> vector<16x16xf32>
    %c176_267 = arith.constant 176 : index
    %c16_268 = arith.constant 16 : index
    %306 = vector.load %arg14[%c176_267, %c16_268] : memref<256x48xf32, #tpu.memory_space<vmem>>, vector<16x16xf32>
    tpu.vector_store %arg14[%c176_267, %c16_268], %305 {strides = array<i32>} : memref<256x48xf32, #tpu.memory_space<vmem>>, vector<16x16xf32>,
    %307 = vector.extract_strided_slice %296 {offsets = [0, 64], sizes = [16, 32], strides = [1, 1]} : vector<16x96xbf16> to vector<16x32xbf16>
    %c11_269 = arith.constant 11 : index
    %c0_270 = arith.constant 0 : index
    %c0_271 = arith.constant 0 : index
    %308 = vector.load %arg4[%c11_269, %c0_270, %c0_271] : memref<16x32x16xbf16, #tpu.memory_space<vmem>>, vector<1x32x16xbf16>
    %309 = vector.shape_cast %308 : vector<1x32x16xbf16> to vector<32x16xbf16>
    %cst_272 = arith.constant dense<0.000000e+00> : vector<16x16xf32>
    %310 = tpu.matmul %307, %309, %cst_272 {dimension_numbers = #tpu.dot_dimension_numbers<[1], [0], [0], [1], [0, 0, 1, 1], [], []>} : vector<16x32xbf16>, vector<32x16xbf16>, vector<16x16xf32> -> vector<16x16xf32>
    %c176_273 = arith.constant 176 : index
    %c32_274 = arith.constant 32 : index
    %311 = vector.load %arg14[%c176_273, %c32_274] : memref<256x48xf32, #tpu.memory_space<vmem>>, vector<16x16xf32>
    tpu.vector_store %arg14[%c176_273, %c32_274], %310 {strides = array<i32>} : memref<256x48xf32, #tpu.memory_space<vmem>>, vector<16x16xf32>,
    %c16_i32_275 = arith.constant 16 : i32
    %312 = arith.muli %arg0, %c16_i32_275 : i32
    %c12_i32 = arith.constant 12 : i32
    %313 = arith.addi %312, %c12_i32 : i32
    %314 = arith.index_cast %313 : i32 to index
    %315 = memref.load %arg1[%314] : memref<48xi32, #tpu.memory_space<smem>>
    %316 = arith.index_cast %315 : i32 to index
    %c0_276 = arith.constant 0 : index
    %c0_277 = arith.constant 0 : index
    %317 = vector.load %arg2[%316, %c0_276, %c0_277] : memref<4x32x96xbf16, #tpu.memory_space<vmem>>, vector<1x32x96xbf16>
    %318 = vector.shape_cast %317 : vector<1x32x96xbf16> to vector<32x96xbf16>
    %c12 = arith.constant 12 : index
    %c0_278 = arith.constant 0 : index
    %c0_279 = arith.constant 0 : index
    %319 = vector.load %arg3[%c12, %c0_278, %c0_279] : memref<16x16x32xbf16, #tpu.memory_space<vmem>>, vector<1x16x32xbf16>
    %320 = vector.shape_cast %319 : vector<1x16x32xbf16> to vector<16x32xbf16>
    %cst_280 = arith.constant dense<0.000000e+00> : vector<16x96xf32>
    %321 = tpu.matmul %320, %318, %cst_280 {dimension_numbers = #tpu.dot_dimension_numbers<[1], [0], [0], [1], [0, 0, 1, 1], [], []>} : vector<16x32xbf16>, vector<32x96xbf16>, vector<16x96xf32> -> vector<16x96xf32>
    %322 = arith.truncf %321 : vector<16x96xf32> to vector<16x96xbf16>
    %323 = vector.extract_strided_slice %322 {offsets = [0, 0], sizes = [16, 32], strides = [1, 1]} : vector<16x96xbf16> to vector<16x32xbf16>
    %c12_281 = arith.constant 12 : index
    %c0_282 = arith.constant 0 : index
    %c0_283 = arith.constant 0 : index
    %324 = vector.load %arg4[%c12_281, %c0_282, %c0_283] : memref<16x32x16xbf16, #tpu.memory_space<vmem>>, vector<1x32x16xbf16>
    %325 = vector.shape_cast %324 : vector<1x32x16xbf16> to vector<32x16xbf16>
    %cst_284 = arith.constant dense<0.000000e+00> : vector<16x16xf32>
    %326 = tpu.matmul %323, %325, %cst_284 {dimension_numbers = #tpu.dot_dimension_numbers<[1], [0], [0], [1], [0, 0, 1, 1], [], []>} : vector<16x32xbf16>, vector<32x16xbf16>, vector<16x16xf32> -> vector<16x16xf32>
    %c192 = arith.constant 192 : index
    %c0_285 = arith.constant 0 : index
    %327 = vector.load %arg14[%c192, %c0_285] : memref<256x48xf32, #tpu.memory_space<vmem>>, vector<16x16xf32>
    tpu.vector_store %arg14[%c192, %c0_285], %326 {strides = array<i32>} : memref<256x48xf32, #tpu.memory_space<vmem>>, vector<16x16xf32>,
    %328 = vector.extract_strided_slice %322 {offsets = [0, 32], sizes = [16, 32], strides = [1, 1]} : vector<16x96xbf16> to vector<16x32xbf16>
    %c12_286 = arith.constant 12 : index
    %c0_287 = arith.constant 0 : index
    %c0_288 = arith.constant 0 : index
    %329 = vector.load %arg4[%c12_286, %c0_287, %c0_288] : memref<16x32x16xbf16, #tpu.memory_space<vmem>>, vector<1x32x16xbf16>
    %330 = vector.shape_cast %329 : vector<1x32x16xbf16> to vector<32x16xbf16>
    %cst_289 = arith.constant dense<0.000000e+00> : vector<16x16xf32>
    %331 = tpu.matmul %328, %330, %cst_289 {dimension_numbers = #tpu.dot_dimension_numbers<[1], [0], [0], [1], [0, 0, 1, 1], [], []>} : vector<16x32xbf16>, vector<32x16xbf16>, vector<16x16xf32> -> vector<16x16xf32>
    %c192_290 = arith.constant 192 : index
    %c16_291 = arith.constant 16 : index
    %332 = vector.load %arg14[%c192_290, %c16_291] : memref<256x48xf32, #tpu.memory_space<vmem>>, vector<16x16xf32>
    tpu.vector_store %arg14[%c192_290, %c16_291], %331 {strides = array<i32>} : memref<256x48xf32, #tpu.memory_space<vmem>>, vector<16x16xf32>,
    %333 = vector.extract_strided_slice %322 {offsets = [0, 64], sizes = [16, 32], strides = [1, 1]} : vector<16x96xbf16> to vector<16x32xbf16>
    %c12_292 = arith.constant 12 : index
    %c0_293 = arith.constant 0 : index
    %c0_294 = arith.constant 0 : index
    %334 = vector.load %arg4[%c12_292, %c0_293, %c0_294] : memref<16x32x16xbf16, #tpu.memory_space<vmem>>, vector<1x32x16xbf16>
    %335 = vector.shape_cast %334 : vector<1x32x16xbf16> to vector<32x16xbf16>
    %cst_295 = arith.constant dense<0.000000e+00> : vector<16x16xf32>
    %336 = tpu.matmul %333, %335, %cst_295 {dimension_numbers = #tpu.dot_dimension_numbers<[1], [0], [0], [1], [0, 0, 1, 1], [], []>} : vector<16x32xbf16>, vector<32x16xbf16>, vector<16x16xf32> -> vector<16x16xf32>
    %c192_296 = arith.constant 192 : index
    %c32_297 = arith.constant 32 : index
    %337 = vector.load %arg14[%c192_296, %c32_297] : memref<256x48xf32, #tpu.memory_space<vmem>>, vector<16x16xf32>
    tpu.vector_store %arg14[%c192_296, %c32_297], %336 {strides = array<i32>} : memref<256x48xf32, #tpu.memory_space<vmem>>, vector<16x16xf32>,
    %c16_i32_298 = arith.constant 16 : i32
    %338 = arith.muli %arg0, %c16_i32_298 : i32
    %c13_i32 = arith.constant 13 : i32
    %339 = arith.addi %338, %c13_i32 : i32
    %340 = arith.index_cast %339 : i32 to index
    %341 = memref.load %arg1[%340] : memref<48xi32, #tpu.memory_space<smem>>
    %342 = arith.index_cast %341 : i32 to index
    %c0_299 = arith.constant 0 : index
    %c0_300 = arith.constant 0 : index
    %343 = vector.load %arg2[%342, %c0_299, %c0_300] : memref<4x32x96xbf16, #tpu.memory_space<vmem>>, vector<1x32x96xbf16>
    %344 = vector.shape_cast %343 : vector<1x32x96xbf16> to vector<32x96xbf16>
    %c13 = arith.constant 13 : index
    %c0_301 = arith.constant 0 : index
    %c0_302 = arith.constant 0 : index
    %345 = vector.load %arg3[%c13, %c0_301, %c0_302] : memref<16x16x32xbf16, #tpu.memory_space<vmem>>, vector<1x16x32xbf16>
    %346 = vector.shape_cast %345 : vector<1x16x32xbf16> to vector<16x32xbf16>
    %cst_303 = arith.constant dense<0.000000e+00> : vector<16x96xf32>
    %347 = tpu.matmul %346, %344, %cst_303 {dimension_numbers = #tpu.dot_dimension_numbers<[1], [0], [0], [1], [0, 0, 1, 1], [], []>} : vector<16x32xbf16>, vector<32x96xbf16>, vector<16x96xf32> -> vector<16x96xf32>
    %348 = arith.truncf %347 : vector<16x96xf32> to vector<16x96xbf16>
    %349 = vector.extract_strided_slice %348 {offsets = [0, 0], sizes = [16, 32], strides = [1, 1]} : vector<16x96xbf16> to vector<16x32xbf16>
    %c13_304 = arith.constant 13 : index
    %c0_305 = arith.constant 0 : index
    %c0_306 = arith.constant 0 : index
    %350 = vector.load %arg4[%c13_304, %c0_305, %c0_306] : memref<16x32x16xbf16, #tpu.memory_space<vmem>>, vector<1x32x16xbf16>
    %351 = vector.shape_cast %350 : vector<1x32x16xbf16> to vector<32x16xbf16>
    %cst_307 = arith.constant dense<0.000000e+00> : vector<16x16xf32>
    %352 = tpu.matmul %349, %351, %cst_307 {dimension_numbers = #tpu.dot_dimension_numbers<[1], [0], [0], [1], [0, 0, 1, 1], [], []>} : vector<16x32xbf16>, vector<32x16xbf16>, vector<16x16xf32> -> vector<16x16xf32>
    %c208 = arith.constant 208 : index
    %c0_308 = arith.constant 0 : index
    %353 = vector.load %arg14[%c208, %c0_308] : memref<256x48xf32, #tpu.memory_space<vmem>>, vector<16x16xf32>
    tpu.vector_store %arg14[%c208, %c0_308], %352 {strides = array<i32>} : memref<256x48xf32, #tpu.memory_space<vmem>>, vector<16x16xf32>,
    %354 = vector.extract_strided_slice %348 {offsets = [0, 32], sizes = [16, 32], strides = [1, 1]} : vector<16x96xbf16> to vector<16x32xbf16>
    %c13_309 = arith.constant 13 : index
    %c0_310 = arith.constant 0 : index
    %c0_311 = arith.constant 0 : index
    %355 = vector.load %arg4[%c13_309, %c0_310, %c0_311] : memref<16x32x16xbf16, #tpu.memory_space<vmem>>, vector<1x32x16xbf16>
    %356 = vector.shape_cast %355 : vector<1x32x16xbf16> to vector<32x16xbf16>
    %cst_312 = arith.constant dense<0.000000e+00> : vector<16x16xf32>
    %357 = tpu.matmul %354, %356, %cst_312 {dimension_numbers = #tpu.dot_dimension_numbers<[1], [0], [0], [1], [0, 0, 1, 1], [], []>} : vector<16x32xbf16>, vector<32x16xbf16>, vector<16x16xf32> -> vector<16x16xf32>
    %c208_313 = arith.constant 208 : index
    %c16_314 = arith.constant 16 : index
    %358 = vector.load %arg14[%c208_313, %c16_314] : memref<256x48xf32, #tpu.memory_space<vmem>>, vector<16x16xf32>
    tpu.vector_store %arg14[%c208_313, %c16_314], %357 {strides = array<i32>} : memref<256x48xf32, #tpu.memory_space<vmem>>, vector<16x16xf32>,
    %359 = vector.extract_strided_slice %348 {offsets = [0, 64], sizes = [16, 32], strides = [1, 1]} : vector<16x96xbf16> to vector<16x32xbf16>
    %c13_315 = arith.constant 13 : index
    %c0_316 = arith.constant 0 : index
    %c0_317 = arith.constant 0 : index
    %360 = vector.load %arg4[%c13_315, %c0_316, %c0_317] : memref<16x32x16xbf16, #tpu.memory_space<vmem>>, vector<1x32x16xbf16>
    %361 = vector.shape_cast %360 : vector<1x32x16xbf16> to vector<32x16xbf16>
    %cst_318 = arith.constant dense<0.000000e+00> : vector<16x16xf32>
    %362 = tpu.matmul %359, %361, %cst_318 {dimension_numbers = #tpu.dot_dimension_numbers<[1], [0], [0], [1], [0, 0, 1, 1], [], []>} : vector<16x32xbf16>, vector<32x16xbf16>, vector<16x16xf32> -> vector<16x16xf32>
    %c208_319 = arith.constant 208 : index
    %c32_320 = arith.constant 32 : index
    %363 = vector.load %arg14[%c208_319, %c32_320] : memref<256x48xf32, #tpu.memory_space<vmem>>, vector<16x16xf32>
    tpu.vector_store %arg14[%c208_319, %c32_320], %362 {strides = array<i32>} : memref<256x48xf32, #tpu.memory_space<vmem>>, vector<16x16xf32>,
    %c16_i32_321 = arith.constant 16 : i32
    %364 = arith.muli %arg0, %c16_i32_321 : i32
    %c14_i32 = arith.constant 14 : i32
    %365 = arith.addi %364, %c14_i32 : i32
    %366 = arith.index_cast %365 : i32 to index
    %367 = memref.load %arg1[%366] : memref<48xi32, #tpu.memory_space<smem>>
    %368 = arith.index_cast %367 : i32 to index
    %c0_322 = arith.constant 0 : index
    %c0_323 = arith.constant 0 : index
    %369 = vector.load %arg2[%368, %c0_322, %c0_323] : memref<4x32x96xbf16, #tpu.memory_space<vmem>>, vector<1x32x96xbf16>
    %370 = vector.shape_cast %369 : vector<1x32x96xbf16> to vector<32x96xbf16>
    %c14 = arith.constant 14 : index
    %c0_324 = arith.constant 0 : index
    %c0_325 = arith.constant 0 : index
    %371 = vector.load %arg3[%c14, %c0_324, %c0_325] : memref<16x16x32xbf16, #tpu.memory_space<vmem>>, vector<1x16x32xbf16>
    %372 = vector.shape_cast %371 : vector<1x16x32xbf16> to vector<16x32xbf16>
    %cst_326 = arith.constant dense<0.000000e+00> : vector<16x96xf32>
    %373 = tpu.matmul %372, %370, %cst_326 {dimension_numbers = #tpu.dot_dimension_numbers<[1], [0], [0], [1], [0, 0, 1, 1], [], []>} : vector<16x32xbf16>, vector<32x96xbf16>, vector<16x96xf32> -> vector<16x96xf32>
    %374 = arith.truncf %373 : vector<16x96xf32> to vector<16x96xbf16>
    %375 = vector.extract_strided_slice %374 {offsets = [0, 0], sizes = [16, 32], strides = [1, 1]} : vector<16x96xbf16> to vector<16x32xbf16>
    %c14_327 = arith.constant 14 : index
    %c0_328 = arith.constant 0 : index
    %c0_329 = arith.constant 0 : index
    %376 = vector.load %arg4[%c14_327, %c0_328, %c0_329] : memref<16x32x16xbf16, #tpu.memory_space<vmem>>, vector<1x32x16xbf16>
    %377 = vector.shape_cast %376 : vector<1x32x16xbf16> to vector<32x16xbf16>
    %cst_330 = arith.constant dense<0.000000e+00> : vector<16x16xf32>
    %378 = tpu.matmul %375, %377, %cst_330 {dimension_numbers = #tpu.dot_dimension_numbers<[1], [0], [0], [1], [0, 0, 1, 1], [], []>} : vector<16x32xbf16>, vector<32x16xbf16>, vector<16x16xf32> -> vector<16x16xf32>
    %c224 = arith.constant 224 : index
    %c0_331 = arith.constant 0 : index
    %379 = vector.load %arg14[%c224, %c0_331] : memref<256x48xf32, #tpu.memory_space<vmem>>, vector<16x16xf32>
    tpu.vector_store %arg14[%c224, %c0_331], %378 {strides = array<i32>} : memref<256x48xf32, #tpu.memory_space<vmem>>, vector<16x16xf32>,
    %380 = vector.extract_strided_slice %374 {offsets = [0, 32], sizes = [16, 32], strides = [1, 1]} : vector<16x96xbf16> to vector<16x32xbf16>
    %c14_332 = arith.constant 14 : index
    %c0_333 = arith.constant 0 : index
    %c0_334 = arith.constant 0 : index
    %381 = vector.load %arg4[%c14_332, %c0_333, %c0_334] : memref<16x32x16xbf16, #tpu.memory_space<vmem>>, vector<1x32x16xbf16>
    %382 = vector.shape_cast %381 : vector<1x32x16xbf16> to vector<32x16xbf16>
    %cst_335 = arith.constant dense<0.000000e+00> : vector<16x16xf32>
    %383 = tpu.matmul %380, %382, %cst_335 {dimension_numbers = #tpu.dot_dimension_numbers<[1], [0], [0], [1], [0, 0, 1, 1], [], []>} : vector<16x32xbf16>, vector<32x16xbf16>, vector<16x16xf32> -> vector<16x16xf32>
    %c224_336 = arith.constant 224 : index
    %c16_337 = arith.constant 16 : index
    %384 = vector.load %arg14[%c224_336, %c16_337] : memref<256x48xf32, #tpu.memory_space<vmem>>, vector<16x16xf32>
    tpu.vector_store %arg14[%c224_336, %c16_337], %383 {strides = array<i32>} : memref<256x48xf32, #tpu.memory_space<vmem>>, vector<16x16xf32>,
    %385 = vector.extract_strided_slice %374 {offsets = [0, 64], sizes = [16, 32], strides = [1, 1]} : vector<16x96xbf16> to vector<16x32xbf16>
    %c14_338 = arith.constant 14 : index
    %c0_339 = arith.constant 0 : index
    %c0_340 = arith.constant 0 : index
    %386 = vector.load %arg4[%c14_338, %c0_339, %c0_340] : memref<16x32x16xbf16, #tpu.memory_space<vmem>>, vector<1x32x16xbf16>
    %387 = vector.shape_cast %386 : vector<1x32x16xbf16> to vector<32x16xbf16>
    %cst_341 = arith.constant dense<0.000000e+00> : vector<16x16xf32>
    %388 = tpu.matmul %385, %387, %cst_341 {dimension_numbers = #tpu.dot_dimension_numbers<[1], [0], [0], [1], [0, 0, 1, 1], [], []>} : vector<16x32xbf16>, vector<32x16xbf16>, vector<16x16xf32> -> vector<16x16xf32>
    %c224_342 = arith.constant 224 : index
    %c32_343 = arith.constant 32 : index
    %389 = vector.load %arg14[%c224_342, %c32_343] : memref<256x48xf32, #tpu.memory_space<vmem>>, vector<16x16xf32>
    tpu.vector_store %arg14[%c224_342, %c32_343], %388 {strides = array<i32>} : memref<256x48xf32, #tpu.memory_space<vmem>>, vector<16x16xf32>,
    %c16_i32_344 = arith.constant 16 : i32
    %390 = arith.muli %arg0, %c16_i32_344 : i32
    %c15_i32 = arith.constant 15 : i32
    %391 = arith.addi %390, %c15_i32 : i32
    %392 = arith.index_cast %391 : i32 to index
    %393 = memref.load %arg1[%392] : memref<48xi32, #tpu.memory_space<smem>>
    %394 = arith.index_cast %393 : i32 to index
    %c0_345 = arith.constant 0 : index
    %c0_346 = arith.constant 0 : index
    %395 = vector.load %arg2[%394, %c0_345, %c0_346] : memref<4x32x96xbf16, #tpu.memory_space<vmem>>, vector<1x32x96xbf16>
    %396 = vector.shape_cast %395 : vector<1x32x96xbf16> to vector<32x96xbf16>
    %c15 = arith.constant 15 : index
    %c0_347 = arith.constant 0 : index
    %c0_348 = arith.constant 0 : index
    %397 = vector.load %arg3[%c15, %c0_347, %c0_348] : memref<16x16x32xbf16, #tpu.memory_space<vmem>>, vector<1x16x32xbf16>
    %398 = vector.shape_cast %397 : vector<1x16x32xbf16> to vector<16x32xbf16>
    %cst_349 = arith.constant dense<0.000000e+00> : vector<16x96xf32>
    %399 = tpu.matmul %398, %396, %cst_349 {dimension_numbers = #tpu.dot_dimension_numbers<[1], [0], [0], [1], [0, 0, 1, 1], [], []>} : vector<16x32xbf16>, vector<32x96xbf16>, vector<16x96xf32> -> vector<16x96xf32>
    %400 = arith.truncf %399 : vector<16x96xf32> to vector<16x96xbf16>
    %401 = vector.extract_strided_slice %400 {offsets = [0, 0], sizes = [16, 32], strides = [1, 1]} : vector<16x96xbf16> to vector<16x32xbf16>
    %c15_350 = arith.constant 15 : index
    %c0_351 = arith.constant 0 : index
    %c0_352 = arith.constant 0 : index
    %402 = vector.load %arg4[%c15_350, %c0_351, %c0_352] : memref<16x32x16xbf16, #tpu.memory_space<vmem>>, vector<1x32x16xbf16>
    %403 = vector.shape_cast %402 : vector<1x32x16xbf16> to vector<32x16xbf16>
    %cst_353 = arith.constant dense<0.000000e+00> : vector<16x16xf32>
    %404 = tpu.matmul %401, %403, %cst_353 {dimension_numbers = #tpu.dot_dimension_numbers<[1], [0], [0], [1], [0, 0, 1, 1], [], []>} : vector<16x32xbf16>, vector<32x16xbf16>, vector<16x16xf32> -> vector<16x16xf32>
    %c240 = arith.constant 240 : index
    %c0_354 = arith.constant 0 : index
    %405 = vector.load %arg14[%c240, %c0_354] : memref<256x48xf32, #tpu.memory_space<vmem>>, vector<16x16xf32>
    tpu.vector_store %arg14[%c240, %c0_354], %404 {strides = array<i32>} : memref<256x48xf32, #tpu.memory_space<vmem>>, vector<16x16xf32>,
    %406 = vector.extract_strided_slice %400 {offsets = [0, 32], sizes = [16, 32], strides = [1, 1]} : vector<16x96xbf16> to vector<16x32xbf16>
    %c15_355 = arith.constant 15 : index
    %c0_356 = arith.constant 0 : index
    %c0_357 = arith.constant 0 : index
    %407 = vector.load %arg4[%c15_355, %c0_356, %c0_357] : memref<16x32x16xbf16, #tpu.memory_space<vmem>>, vector<1x32x16xbf16>
    %408 = vector.shape_cast %407 : vector<1x32x16xbf16> to vector<32x16xbf16>
    %cst_358 = arith.constant dense<0.000000e+00> : vector<16x16xf32>
    %409 = tpu.matmul %406, %408, %cst_358 {dimension_numbers = #tpu.dot_dimension_numbers<[1], [0], [0], [1], [0, 0, 1, 1], [], []>} : vector<16x32xbf16>, vector<32x16xbf16>, vector<16x16xf32> -> vector<16x16xf32>
    %c240_359 = arith.constant 240 : index
    %c16_360 = arith.constant 16 : index
    %410 = vector.load %arg14[%c240_359, %c16_360] : memref<256x48xf32, #tpu.memory_space<vmem>>, vector<16x16xf32>
    tpu.vector_store %arg14[%c240_359, %c16_360], %409 {strides = array<i32>} : memref<256x48xf32, #tpu.memory_space<vmem>>, vector<16x16xf32>,
    %411 = vector.extract_strided_slice %400 {offsets = [0, 64], sizes = [16, 32], strides = [1, 1]} : vector<16x96xbf16> to vector<16x32xbf16>
    %c15_361 = arith.constant 15 : index
    %c0_362 = arith.constant 0 : index
    %c0_363 = arith.constant 0 : index
    %412 = vector.load %arg4[%c15_361, %c0_362, %c0_363] : memref<16x32x16xbf16, #tpu.memory_space<vmem>>, vector<1x32x16xbf16>
    %413 = vector.shape_cast %412 : vector<1x32x16xbf16> to vector<32x16xbf16>
    %cst_364 = arith.constant dense<0.000000e+00> : vector<16x16xf32>
    %414 = tpu.matmul %411, %413, %cst_364 {dimension_numbers = #tpu.dot_dimension_numbers<[1], [0], [0], [1], [0, 0, 1, 1], [], []>} : vector<16x32xbf16>, vector<32x16xbf16>, vector<16x16xf32> -> vector<16x16xf32>
    %c240_365 = arith.constant 240 : index
    %c32_366 = arith.constant 32 : index
    %415 = vector.load %arg14[%c240_365, %c32_366] : memref<256x48xf32, #tpu.memory_space<vmem>>, vector<16x16xf32>
    tpu.vector_store %arg14[%c240_365, %c32_366], %414 {strides = array<i32>} : memref<256x48xf32, #tpu.memory_space<vmem>>, vector<16x16xf32>,
    %c0_367 = arith.constant 0 : index
    %c0_368 = arith.constant 0 : index
    %416 = vector.load %arg14[%c0_367, %c0_368] : memref<256x48xf32, #tpu.memory_space<vmem>>, vector<256x48xf32>
    %417 = arith.truncf %416 : vector<256x48xf32> to vector<256x48xbf16>
    %c0_369 = arith.constant 0 : index
    %c0_370 = arith.constant 0 : index
    %c0_371 = arith.constant 0 : index
    %418 = vector.load %arg5[%c0_369, %c0_370, %c0_371] : memref<3x128x256xbf16, #tpu.memory_space<vmem>>, vector<1x128x256xbf16>
    %419 = vector.shape_cast %418 : vector<1x128x256xbf16> to vector<128x256xbf16>
    %cst_372 = arith.constant dense<0.000000e+00> : vector<128x48xf32>
    %420 = tpu.matmul %419, %417, %cst_372 {dimension_numbers = #tpu.dot_dimension_numbers<[1], [0], [0], [1], [0, 0, 1, 1], [], []>} : vector<128x256xbf16>, vector<256x48xbf16>, vector<128x48xf32> -> vector<128x48xf32>
    %421 = arith.truncf %420 : vector<128x48xf32> to vector<128x48xbf16>
    %c0_373 = arith.constant 0 : index
    %c0_374 = arith.constant 0 : index
    %c0_375 = arith.constant 0 : index
    %422 = vector.load %arg6[%c0_373, %c0_374, %c0_375] : memref<3x48x256xbf16, #tpu.memory_space<vmem>>, vector<1x48x256xbf16>
    %423 = vector.shape_cast %422 : vector<1x48x256xbf16> to vector<48x256xbf16>
    %cst_376 = arith.constant dense<0.000000e+00> : vector<128x256xf32>
    %424 = tpu.matmul %421, %423, %cst_376 {dimension_numbers = #tpu.dot_dimension_numbers<[1], [0], [0], [1], [0, 0, 1, 1], [], []>} : vector<128x48xbf16>, vector<48x256xbf16>, vector<128x256xf32> -> vector<128x256xf32>
    %c1_377 = arith.constant 1 : index
    %c0_378 = arith.constant 0 : index
    %c0_379 = arith.constant 0 : index
    %425 = vector.load %arg5[%c1_377, %c0_378, %c0_379] : memref<3x128x256xbf16, #tpu.memory_space<vmem>>, vector<1x128x256xbf16>
    %426 = vector.shape_cast %425 : vector<1x128x256xbf16> to vector<128x256xbf16>
    %cst_380 = arith.constant dense<0.000000e+00> : vector<128x48xf32>
    %427 = tpu.matmul %426, %417, %cst_380 {dimension_numbers = #tpu.dot_dimension_numbers<[1], [0], [0], [1], [0, 0, 1, 1], [], []>} : vector<128x256xbf16>, vector<256x48xbf16>, vector<128x48xf32> -> vector<128x48xf32>
    %428 = arith.truncf %427 : vector<128x48xf32> to vector<128x48xbf16>
    %c1_381 = arith.constant 1 : index
    %c0_382 = arith.constant 0 : index
    %c0_383 = arith.constant 0 : index
    %429 = vector.load %arg6[%c1_381, %c0_382, %c0_383] : memref<3x48x256xbf16, #tpu.memory_space<vmem>>, vector<1x48x256xbf16>
    %430 = vector.shape_cast %429 : vector<1x48x256xbf16> to vector<48x256xbf16>
    %cst_384 = arith.constant dense<0.000000e+00> : vector<128x256xf32>
    %431 = tpu.matmul %428, %430, %cst_384 {dimension_numbers = #tpu.dot_dimension_numbers<[1], [0], [0], [1], [0, 0, 1, 1], [], []>} : vector<128x48xbf16>, vector<48x256xbf16>, vector<128x256xf32> -> vector<128x256xf32>
    %432 = arith.addf %424, %431 : vector<128x256xf32>
    %c2_385 = arith.constant 2 : index
    %c0_386 = arith.constant 0 : index
    %c0_387 = arith.constant 0 : index
    %433 = vector.load %arg5[%c2_385, %c0_386, %c0_387] : memref<3x128x256xbf16, #tpu.memory_space<vmem>>, vector<1x128x256xbf16>
    %434 = vector.shape_cast %433 : vector<1x128x256xbf16> to vector<128x256xbf16>
    %cst_388 = arith.constant dense<0.000000e+00> : vector<128x48xf32>
    %435 = tpu.matmul %434, %417, %cst_388 {dimension_numbers = #tpu.dot_dimension_numbers<[1], [0], [0], [1], [0, 0, 1, 1], [], []>} : vector<128x256xbf16>, vector<256x48xbf16>, vector<128x48xf32> -> vector<128x48xf32>
    %436 = arith.truncf %435 : vector<128x48xf32> to vector<128x48xbf16>
    %c2_389 = arith.constant 2 : index
    %c0_390 = arith.constant 0 : index
    %c0_391 = arith.constant 0 : index
    %437 = vector.load %arg6[%c2_389, %c0_390, %c0_391] : memref<3x48x256xbf16, #tpu.memory_space<vmem>>, vector<1x48x256xbf16>
    %438 = vector.shape_cast %437 : vector<1x48x256xbf16> to vector<48x256xbf16>
    %cst_392 = arith.constant dense<0.000000e+00> : vector<128x256xf32>
    %439 = tpu.matmul %436, %438, %cst_392 {dimension_numbers = #tpu.dot_dimension_numbers<[1], [0], [0], [1], [0, 0, 1, 1], [], []>} : vector<128x48xbf16>, vector<48x256xbf16>, vector<128x256xf32> -> vector<128x256xf32>
    %440 = arith.addf %432, %439 : vector<128x256xf32>
    %c0_393 = arith.constant 0 : index
    %c0_394 = arith.constant 0 : index
    %441 = vector.load %arg7[%c0_393, %c0_394] : memref<1x256xf32, #tpu.memory_space<vmem>>, vector<1x256xf32>
    %442 = vector.broadcast %441 : vector<1x256xf32> to vector<128x256xf32>
    %443 = arith.addf %440, %442 : vector<128x256xf32>
    %cst_395 = arith.constant 0.000000e+00 : f32
    %444 = vector.broadcast %cst_395 : f32 to vector<128x256xf32>
    %445 = arith.maximumf %443, %444 : vector<128x256xf32>
    %446 = arith.truncf %445 : vector<128x256xf32> to vector<128x256xbf16>
    %c0_396 = arith.constant 0 : index
    %c0_397 = arith.constant 0 : index
    %c0_398 = arith.constant 0 : index
    %447 = vector.load %arg8[%c0_396, %c0_397, %c0_398] : memref<3x64x128xbf16, #tpu.memory_space<vmem>>, vector<1x64x128xbf16>
    %448 = vector.shape_cast %447 : vector<1x64x128xbf16> to vector<64x128xbf16>
    %cst_399 = arith.constant dense<0.000000e+00> : vector<64x256xf32>
    %449 = tpu.matmul %448, %446, %cst_399 {dimension_numbers = #tpu.dot_dimension_numbers<[1], [0], [0], [1], [0, 0, 1, 1], [], []>} : vector<64x128xbf16>, vector<128x256xbf16>, vector<64x256xf32> -> vector<64x256xf32>
    %450 = arith.truncf %449 : vector<64x256xf32> to vector<64x256xbf16>
    %c0_400 = arith.constant 0 : index
    %c0_401 = arith.constant 0 : index
    %c0_402 = arith.constant 0 : index
    %451 = vector.load %arg9[%c0_400, %c0_401, %c0_402] : memref<3x256x256xbf16, #tpu.memory_space<vmem>>, vector<1x256x256xbf16>
    %452 = vector.shape_cast %451 : vector<1x256x256xbf16> to vector<256x256xbf16>
    %cst_403 = arith.constant dense<0.000000e+00> : vector<64x256xf32>
    %453 = tpu.matmul %450, %452, %cst_403 {dimension_numbers = #tpu.dot_dimension_numbers<[1], [0], [0], [1], [0, 0, 1, 1], [], []>} : vector<64x256xbf16>, vector<256x256xbf16>, vector<64x256xf32> -> vector<64x256xf32>
    %c1_404 = arith.constant 1 : index
    %c0_405 = arith.constant 0 : index
    %c0_406 = arith.constant 0 : index
    %454 = vector.load %arg8[%c1_404, %c0_405, %c0_406] : memref<3x64x128xbf16, #tpu.memory_space<vmem>>, vector<1x64x128xbf16>
    %455 = vector.shape_cast %454 : vector<1x64x128xbf16> to vector<64x128xbf16>
    %cst_407 = arith.constant dense<0.000000e+00> : vector<64x256xf32>
    %456 = tpu.matmul %455, %446, %cst_407 {dimension_numbers = #tpu.dot_dimension_numbers<[1], [0], [0], [1], [0, 0, 1, 1], [], []>} : vector<64x128xbf16>, vector<128x256xbf16>, vector<64x256xf32> -> vector<64x256xf32>
    %457 = arith.truncf %456 : vector<64x256xf32> to vector<64x256xbf16>
    %c1_408 = arith.constant 1 : index
    %c0_409 = arith.constant 0 : index
    %c0_410 = arith.constant 0 : index
    %458 = vector.load %arg9[%c1_408, %c0_409, %c0_410] : memref<3x256x256xbf16, #tpu.memory_space<vmem>>, vector<1x256x256xbf16>
    %459 = vector.shape_cast %458 : vector<1x256x256xbf16> to vector<256x256xbf16>
    %cst_411 = arith.constant dense<0.000000e+00> : vector<64x256xf32>
    %460 = tpu.matmul %457, %459, %cst_411 {dimension_numbers = #tpu.dot_dimension_numbers<[1], [0], [0], [1], [0, 0, 1, 1], [], []>} : vector<64x256xbf16>, vector<256x256xbf16>, vector<64x256xf32> -> vector<64x256xf32>
    %461 = arith.addf %453, %460 : vector<64x256xf32>
    %c2_412 = arith.constant 2 : index
    %c0_413 = arith.constant 0 : index
    %c0_414 = arith.constant 0 : index
    %462 = vector.load %arg8[%c2_412, %c0_413, %c0_414] : memref<3x64x128xbf16, #tpu.memory_space<vmem>>, vector<1x64x128xbf16>
    %463 = vector.shape_cast %462 : vector<1x64x128xbf16> to vector<64x128xbf16>
    %cst_415 = arith.constant dense<0.000000e+00> : vector<64x256xf32>
    %464 = tpu.matmul %463, %446, %cst_415 {dimension_numbers = #tpu.dot_dimension_numbers<[1], [0], [0], [1], [0, 0, 1, 1], [], []>} : vector<64x128xbf16>, vector<128x256xbf16>, vector<64x256xf32> -> vector<64x256xf32>
    %465 = arith.truncf %464 : vector<64x256xf32> to vector<64x256xbf16>
    %c2_416 = arith.constant 2 : index
    %c0_417 = arith.constant 0 : index
    %c0_418 = arith.constant 0 : index
    %466 = vector.load %arg9[%c2_416, %c0_417, %c0_418] : memref<3x256x256xbf16, #tpu.memory_space<vmem>>, vector<1x256x256xbf16>
    %467 = vector.shape_cast %466 : vector<1x256x256xbf16> to vector<256x256xbf16>
    %cst_419 = arith.constant dense<0.000000e+00> : vector<64x256xf32>
    %468 = tpu.matmul %465, %467, %cst_419 {dimension_numbers = #tpu.dot_dimension_numbers<[1], [0], [0], [1], [0, 0, 1, 1], [], []>} : vector<64x256xbf16>, vector<256x256xbf16>, vector<64x256xf32> -> vector<64x256xf32>
    %469 = arith.addf %461, %468 : vector<64x256xf32>
    %c0_420 = arith.constant 0 : index
    %c0_421 = arith.constant 0 : index
    %470 = vector.load %arg10[%c0_420, %c0_421] : memref<1x256xf32, #tpu.memory_space<vmem>>, vector<1x256xf32>
    %471 = vector.broadcast %470 : vector<1x256xf32> to vector<64x256xf32>
    %472 = arith.addf %469, %471 : vector<64x256xf32>
    %cst_422 = arith.constant 0.000000e+00 : f32
    %473 = vector.broadcast %cst_422 : f32 to vector<64x256xf32>
    %474 = arith.maximumf %472, %473 : vector<64x256xf32>
    %475 = arith.truncf %474 : vector<64x256xf32> to vector<64x256xbf16>
    %c0_423 = arith.constant 0 : index
    %c0_424 = arith.constant 0 : index
    %476 = vector.load %arg11[%c0_423, %c0_424] : memref<16x64xbf16, #tpu.memory_space<vmem>>, vector<16x64xbf16>
    %cst_425 = arith.constant dense<0.000000e+00> : vector<16x256xf32>
    %477 = tpu.matmul %476, %475, %cst_425 {dimension_numbers = #tpu.dot_dimension_numbers<[1], [0], [0], [1], [0, 0, 1, 1], [], []>} : vector<16x64xbf16>, vector<64x256xbf16>, vector<16x256xf32> -> vector<16x256xf32>
    %478 = arith.truncf %477 : vector<16x256xf32> to vector<16x256xbf16>
    %c0_426 = arith.constant 0 : index
    %c0_427 = arith.constant 0 : index
    %479 = vector.load %arg12[%c0_426, %c0_427] : memref<256x128xbf16, #tpu.memory_space<vmem>>, vector<256x128xbf16>
    %cst_428 = arith.constant dense<0.000000e+00> : vector<16x128xf32>
    %480 = tpu.matmul %478, %479, %cst_428 {dimension_numbers = #tpu.dot_dimension_numbers<[1], [0], [0], [1], [0, 0, 1, 1], [], []>} : vector<16x256xbf16>, vector<256x128xbf16>, vector<16x128xf32> -> vector<16x128xf32>
    %c0_429 = arith.constant 0 : index
    %c0_430 = arith.constant 0 : index
    %481 = vector.load %arg13[%c0_429, %c0_430] : memref<1x128xf32, #tpu.memory_space<vmem>>, vector<1x128xf32>
    %482 = vector.broadcast %481 : vector<1x128xf32> to vector<16x128xf32>
    %483 = arith.addf %480, %482 : vector<16x128xf32>
    %c0_431 = arith.constant 0 : index
    %c0_432 = arith.constant 0 : index
    %484 = vector.load %arg15[%c0_431, %c0_432] : memref<16x128xf32, #tpu.memory_space<vmem>>, vector<16x128xf32>
    tpu.vector_store %arg15[%c0_431, %c0_432], %483 {strides = array<i32>} : memref<16x128xf32, #tpu.memory_space<vmem>>, vector<16x128xf32>,
    return
  }
  func.func @transform_0(%arg0: i32, %arg1: memref<48xi32, #tpu.memory_space<smem>>) -> (i32, i32, i32) {
    %c0_i32 = arith.constant 0 : i32
    %c0_i32_0 = arith.constant 0 : i32
    %c0_i32_1 = arith.constant 0 : i32
    %c0_i32_2 = arith.constant 0 : i32
    return %c0_i32, %c0_i32_0, %c0_i32_1 : i32, i32, i32
  }
  func.func @transform_1(%arg0: i32, %arg1: memref<48xi32, #tpu.memory_space<smem>>) -> (i32, i32, i32) {
    %c0_i32 = arith.constant 0 : i32
    %c0_i32_0 = arith.constant 0 : i32
    %c0_i32_1 = arith.constant 0 : i32
    return %arg0, %c0_i32, %c0_i32_0 : i32, i32, i32
  }
  func.func @transform_2(%arg0: i32, %arg1: memref<48xi32, #tpu.memory_space<smem>>) -> (i32, i32, i32) {
    %c0_i32 = arith.constant 0 : i32
    %c0_i32_0 = arith.constant 0 : i32
    %c0_i32_1 = arith.constant 0 : i32
    return %arg0, %c0_i32, %c0_i32_0 : i32, i32, i32
  }
  func.func @transform_3(%arg0: i32, %arg1: memref<48xi32, #tpu.memory_space<smem>>) -> (i32, i32, i32) {
    %c0_i32 = arith.constant 0 : i32
    %c0_i32_0 = arith.constant 0 : i32
    %c0_i32_1 = arith.constant 0 : i32
    %c0_i32_2 = arith.constant 0 : i32
    return %c0_i32, %c0_i32_0, %c0_i32_1 : i32, i32, i32
  }
  func.func @transform_4(%arg0: i32, %arg1: memref<48xi32, #tpu.memory_space<smem>>) -> (i32, i32, i32) {
    %c0_i32 = arith.constant 0 : i32
    %c0_i32_0 = arith.constant 0 : i32
    %c0_i32_1 = arith.constant 0 : i32
    %c0_i32_2 = arith.constant 0 : i32
    return %c0_i32, %c0_i32_0, %c0_i32_1 : i32, i32, i32
  }
  func.func @transform_5(%arg0: i32, %arg1: memref<48xi32, #tpu.memory_space<smem>>) -> (i32, i32) {
    %c0_i32 = arith.constant 0 : i32
    %c0_i32_0 = arith.constant 0 : i32
    %c0_i32_1 = arith.constant 0 : i32
    return %c0_i32, %c0_i32_0 : i32, i32
  }
  func.func @transform_6(%arg0: i32, %arg1: memref<48xi32, #tpu.memory_space<smem>>) -> (i32, i32, i32) {
    %c0_i32 = arith.constant 0 : i32
    %c0_i32_0 = arith.constant 0 : i32
    %c0_i32_1 = arith.constant 0 : i32
    %c0_i32_2 = arith.constant 0 : i32
    return %c0_i32, %c0_i32_0, %c0_i32_1 : i32, i32, i32
  }
  func.func @transform_7(%arg0: i32, %arg1: memref<48xi32, #tpu.memory_space<smem>>) -> (i32, i32, i32) {
    %c0_i32 = arith.constant 0 : i32
    %c0_i32_0 = arith.constant 0 : i32
    %c0_i32_1 = arith.constant 0 : i32
    %c0_i32_2 = arith.constant 0 : i32
    return %c0_i32, %c0_i32_0, %c0_i32_1 : i32, i32, i32
  }
  func.func @transform_8(%arg0: i32, %arg1: memref<48xi32, #tpu.memory_space<smem>>) -> (i32, i32) {
    %c0_i32 = arith.constant 0 : i32
    %c0_i32_0 = arith.constant 0 : i32
    %c0_i32_1 = arith.constant 0 : i32
    return %c0_i32, %c0_i32_0 : i32, i32
  }
  func.func @transform_9(%arg0: i32, %arg1: memref<48xi32, #tpu.memory_space<smem>>) -> (i32, i32) {
    %c0_i32 = arith.constant 0 : i32
    %c0_i32_0 = arith.constant 0 : i32
    %c0_i32_1 = arith.constant 0 : i32
    return %c0_i32, %c0_i32_0 : i32, i32
  }
  func.func @transform_10(%arg0: i32, %arg1: memref<48xi32, #tpu.memory_space<smem>>) -> (i32, i32) {
    %c0_i32 = arith.constant 0 : i32
    %c0_i32_0 = arith.constant 0 : i32
    %c0_i32_1 = arith.constant 0 : i32
    return %c0_i32, %c0_i32_0 : i32, i32
  }
  func.func @transform_11(%arg0: i32, %arg1: memref<48xi32, #tpu.memory_space<smem>>) -> (i32, i32) {
    %c0_i32 = arith.constant 0 : i32
    %c0_i32_0 = arith.constant 0 : i32
    %c0_i32_1 = arith.constant 0 : i32
    return %c0_i32, %c0_i32_0 : i32, i32
  }
  func.func @transform_12(%arg0: i32, %arg1: memref<48xi32, #tpu.memory_space<smem>>) -> (i32, i32) {
    %c0_i32 = arith.constant 0 : i32
    %c0_i32_0 = arith.constant 0 : i32
    return %arg0, %c0_i32 : i32, i32
  }
  func.func @transform_13(%arg0: i32, %arg1: memref<48xi32, #tpu.memory_space<smem>>) -> (i32, i32) {
    %c0_i32 = arith.constant 0 : i32
    %c0_i32_0 = arith.constant 0 : i32
    return %arg0, %c0_i32 : i32, i32
  }
}

</mosaic_0001>

<bundles_post_ra>
// kernel: ac_crop_discriminator_forward.1
= control target key start
LH: loop header
LB: loop body
LE: loop exit
PB: predicated region body
PF: predicated region fallthrough
CT: control target
= control target key end

     0   :  { %s12496_s0 = inlined_call_operand.vmem [shape: s32[48], index: 0, kind: input, shape index: {}]   ;;  %s12497_s1 = inlined_call_operand.vmem [shape: bf16[4,32,96], index: 1, kind: input, shape index: {}]   ;;  %s12498_s2 = inlined_call_operand.vmem [shape: bf16[48,16,32], index: 2, kind: input, shape index: {}]   ;;  %s12499_s3 = inlined_call_operand.vmem [shape: bf16[48,32,16], index: 3, kind: input, shape index: {}]   ;;  %s12500_s4 = inlined_call_operand.vmem [shape: bf16[3,128,256], index: 4, kind: input, shape index: {}]   ;;  %s12501_s5 = inlined_call_operand.vmem [shape: bf16[3,48,256], index: 5, kind: input, shape index: {}]   ;;  %s12502_s6 = inlined_call_operand.vmem [shape: f32[1,256], index: 6, kind: input, shape index: {}]   ;;  %s12503_s7 = inlined_call_operand.vmem [shape: bf16[3,64,128], index: 7, kind: input, shape index: {}]   ;;  %s12504_s8 = inlined_call_operand.vmem [shape: bf16[3,256,256], index: 8, kind: input, shape index: {}]   ;;  %s12505_s9 = inlined_call_operand.vmem [shape: f32[1,256], index: 9, kind: input, shape index: {}]   ;;  %s12506_s10 = inlined_call_operand.vmem [shape: bf16[16,64], index: 10, kind: input, shape index: {}]   ;;  %s12507_s11 = inlined_call_operand.vmem [shape: bf16[256,128], index: 11, kind: input, shape index: {}]   ;;  %s12508_s12 = inlined_call_operand.vmem [shape: f32[1,128], index: 12, kind: input, shape index: {}]   ;;  %s12509_s13 = inlined_call_operand.vmem [shape: f32[768,48], index: 13, kind: output, shape index: {0}]   ;;  %s12510_s14 = inlined_call_operand.vmem [shape: f32[48,128], index: 14, kind: output, shape index: {1}]  }
   0x1   :  { %s20_s15 = sshll.u32 %s12496_s0, 4  ;;  %s21_s15 = int_to_ptr.vmem [resolvable:$true] %s20_s15 }
   0x2   :  { %s10170_s16 = scalar_lea.vmem %s21_s15, 16  ;;  %p10175_p1 = scmp.lt.s32.totalorder %s21_s15, %s21_s15 }
   0x3   :  { %p10171_p0 = scmp.ne.s32.totalorder %s21_s15, %s10170_s16  ;;  %p10176_p2 = scmp.lt.s32.totalorder %s10170_s16, %s10170_s16 }
   0x5   :  { %p10177_p3 = por %p10176_p2, %p10175_p1 }
   0x7   :  { %p10178_p4 = pnand %p10177_p3, %p10171_p0 }
   0x9   :  { %10181 = shalt.err (!%p10178_p4)  }
   0xa   :  { %s10192_s17 = smov [#allocation3]  }
   0xb   :  { %23 = dma.vmem_to_smem %s21_s15, 16, %s10192_s17, [#allocation2] }
   0xc   :  { %10186 = dma.done.wait [#allocation2], 16 }
   0xd   :  { %10187 = vsyncadd [#allocation2], 4294967280 }
   0xe   :  { %25 = sfence }
   0xf   :  { %s10278_s18 = smov 0  }
  0x10 LB: > { %s10284_s0 = sadd.s32 4294967295, %s10190_s18   ;;  %p7885_p5 = scmp.ge.s32.totalorder %s10190_s18, 1  ;;  %s10190_s18 = sphi %s10278_s18, %s31_s18  }
  0x11   : > { %p411_p6 = scmp.lt.s32.totalorder %s10190_s18, 4 }
  0x13   : > { %p412_p7 = pnand %p7885_p5, %p411_p6 }
  0x14   : > { %s10289_s19 = sshll.u32 (!%p412_p7), %s10284_s0, 4  ;;  %v10193_v0 = vmov (!%p412_p7), 0.0   ;;  %vm10194_vm0 = vmmov (!%p412_p7), 0   ;;  %vm522_vm1 = vcmask (!%p412_p7), 261120   ;;  %s10195_s27 = smov (!%p412_p7), 96   ;;  %vm628_vm2 = vcmask (!%p412_p7), 130048  }
  0x15   : > { %415 = sbr.rel (%p412_p7) target bundleno = 7565 (0x1d8d), region = 68  ;;  %9114 = vmatprep.subr.bf16.mxu0 (!%p412_p7), %v10193_v0  ;;  %p468_p8 = scmp.lt.s32.totalorder (!%p412_p7), %s10289_s19, 47  ;;  %9118 = vmatprep.mubr.msk.bf16.mxu0 (!%p412_p7), %vm10194_vm0, %v10193_v0  ;;  %vm702_vm3 = vcmask (!%p412_p7), 261248   ;;  %vm775_vm4 = vcmask (!%p412_p7), 392448   ;;  %vm5502_vm5 = vcmask (!%p412_p7), 392192   ;;  %vm7520_vm6 = vcmask (!%p412_p7), 523264  }
  0x16   : > { %s495_s20 = sld [smem:[#allocation3 + %s10289_s19]] (!%p412_p7)  ;;  %9122 = vmatprep.subr.bf16.mxu1 (!%p412_p7), %v10193_v0  ;;  %9126 = vmatprep.mubr.msk.bf16.mxu1 (!%p412_p7), %vm10194_vm0, %v10193_v0  ;;  %s7892_s28 = sshll.u32 (!%p412_p7), %s10284_s0, 5 }
  0x17   : > { %p482_p9 = scmp.lt.s32.totalorder (!%p412_p7), %s7892_s28, 95 }
  0x1c   : > { %s469_s21 = scalar_select %p468_p8, %s10289_s19, 47 }
  0x1d   : > { %s8692_s30 = sshll.u32 %s495_s20, 4  ;;  %s778_s20 = sadd.s32 1, %s10289_s19 }
  0x1e   : > { %s8690_s22 = sshll.u32 %s469_s21, 3  ;;  %s8691_s23 = sshll.u32 %s469_s21, 4 }
  0x1f   : > { %s10303_s26 = scalar_lea.vmem %s12498_s2, %s8690_s22  ;;  %s10308_s29 = scalar_lea.vmem %s12499_s3, %s8691_s23 }
  0x20   : > { %s498_s17 = scalar_lea.vmem %s12497_s1, %s8692_s30  ;;  %v9757_v1 = vld [vmem:[%s10308_s29] sm:$0xff]   ;;  %v9758_v5 = vld [vmem:[%s10308_s29 + $0x8] sm:$0xff]   ;;  %s779_s21 = sld [smem:[#allocation3 + %s778_s20]]  ;;  %v9764_v18 = vld [vmem:[%s10308_s29 + $0x10] sm:$0xff]  }
  0x21   : > { %v9754_v2 = vld [vmem:[%s498_s17] sm:$0xff]   ;;  %v9755_v3 = vld [vmem:[%s498_s17 + $0x8] sm:$0xff]   ;;  %9123 = vmatpush3.bf16.msra.mxu1 %v9757_v1  ;;  %s12512_s28 = smov (!%p482_p9, %s7892_s28), 95  ;;  %v9765_v21 = vld [vmem:[%s10308_s29 + $0x18] sm:$0xff]   ;;  %s1060_s20 = sadd.s32 2, %s10289_s19 }
  0x22   : > { %9115 = vmatpush3.bf16.msra.mxu0 %v9754_v2  ;;  %9124 = vmatprep.subr.bf16.mxu1 %v10193_v0  ;;  %v9756_v4 = vld [vmem:[%s10303_s26] sm:$0xff]   ;;  %v9760_v7 = vld [vmem:[%s10308_s29 + $0x8] sm:$0xff]   ;;  %s7893_s30 = sshll.u32 %s12512_s28, 3  ;;  %v9768_v35 = vld [vmem:[%s10303_s26 + $0x10] sm:$0xff]   ;;  %s1342_s28 = sadd.s32 3, %s10289_s19 }
  0x23   : > { %9116 = vmatprep.subr.bf16.mxu0 %v10193_v0  ;;  %v9759_v6 = vld [vmem:[%s10308_s29] sm:$0xff]   ;;  %v9763_v16 = vld [vmem:[%s10303_s26 + $0x8] sm:$0xff]   ;;  %s10352_s17 = scalar_lea.vmem %s12509_s13, %s7893_s30  ;;  %s1343_s30 = sld [smem:[#allocation3 + %s1342_s28]]  ;;  %v9773_v50 = vld [vmem:[%s10303_s26 + $0x18] sm:$0xff]  }
  0x24   : > { %v9769_v36 = vld [vmem:[%s10308_s29 + $0x20] sm:$0xff]   ;;  %v9770_v37 = vld [vmem:[%s10308_s29 + $0x28] sm:$0xff]   ;;  %v9774_v51 = vld [vmem:[%s10308_s29 + $0x30] sm:$0xff]  }
  0x25   : > { %9125 = vmatpush3.bf16.msra.mxu1 %v9758_v5  ;;  %v9775_v52 = vld [vmem:[%s10308_s29 + $0x38] sm:$0xff]   ;;  %v9778_v2 = vld [vmem:[%s10303_s26 + $0x20] sm:$0xff]  }
  0x26   : > { %9117 = vmatpush3.bf16.msra.mxu0 %v9755_v3  ;;  %9138 = vmatprep.subr.bf16.mxu1 %v10193_v0  ;;  %s8693_s22 = sshll.u32 %s779_s21, 4  ;;  %s1061_s21 = sld [smem:[#allocation3 + %s1060_s20]]  ;;  %v9779_v3 = vld [vmem:[%s10308_s29 + $0x40] sm:$0xff]  }
  0x27   : > { %9130 = vmatprep.subr.bf16.mxu0 %v10193_v0  ;;  %s782_s25 = scalar_lea.vmem %s12497_s1, %s8693_s22 }
  0x28   : > { %v9761_v13 = vld [vmem:[%s782_s25] sm:$0xff]   ;;  %v9762_v15 = vld [vmem:[%s782_s25 + $0x8] sm:$0xff]  }
  0x29   : > { %9119 = vmatmul.mubr.msk.bf16.vlgmr.msra.gmra.mrb[0].mxu0 %vm522_vm1, %v9756_v4  ;;  %s8695_s15 = sshll.u32 %s1343_s30, 4  ;;  %v9780_v4 = vld [vmem:[%s10308_s29 + $0x48] sm:$0xff]  }
  0x2a   : > { %9134 = vmatprep.mubr.msk.bf16.mxu0 %vm10194_vm0, %v10193_v0  ;;  %9131 = vmatpush3.bf16.msra.mxu0 %v9759_v6 }
  0x2b   : > { %9132 = vmatprep.subr.bf16.mxu0 %v10193_v0 }
  0x2c   : > { %s8694_s22 = sshll.u32 %s1061_s21, 4  ;;  %s1346_s21 = scalar_lea.vmem %s12497_s1, %s8695_s15 }
  0x2d   : > { %s1064_s25 = scalar_lea.vmem %s12497_s1, %s8694_s22  ;;  %v9771_v47 = vld [vmem:[%s1346_s21] sm:$0xff]   ;;  %v9772_v49 = vld [vmem:[%s1346_s21 + $0x8] sm:$0xff]   ;;  %s1624_s22 = sadd.s32 4, %s10289_s19 }
  0x2e   : > { %9133 = vmatpush3.bf16.msra.mxu0 %v9760_v7  ;;  %v9766_v32 = vld [vmem:[%s1064_s25] sm:$0xff]   ;;  %v9767_v34 = vld [vmem:[%s1064_s25 + $0x8] sm:$0xff]   ;;  %s1625_s23 = sld [smem:[#allocation3 + %s1624_s22]]  ;;  %s1906_s15 = sadd.s32 5, %s10289_s19 }
  0x2f   : > { %9146 = vmatprep.subr.bf16.mxu0 %v10193_v0  ;;  %s1907_s16 = sld [smem:[#allocation3 + %s1906_s15]] }
  0x34   : > { %s8696_s24 = sshll.u32 %s1625_s23, 4 }
  0x35   : > { %s1628_s30 = scalar_lea.vmem %s12497_s1, %s8696_s24  ;;  %s8697_s20 = sshll.u32 %s1907_s16, 4 }
  0x36   : > { %v9776_v62 = vld [vmem:[%s1628_s30] sm:$0xff]   ;;  %v9777_v1 = vld [vmem:[%s1628_s30 + $0x8] sm:$0xff]   ;;  %s1910_s23 = scalar_lea.vmem %s12497_s1, %s8697_s20  ;;  %s2188_s24 = sadd.s32 6, %s10289_s19 }
  0x37   : > { %s2189_s25 = sld [smem:[#allocation3 + %s2188_s24]]  ;;  %s2470_s20 = sadd.s32 7, %s10289_s19 }
  0x38   : > { %s2471_s21 = sld [smem:[#allocation3 + %s2470_s20]] }
  0x3d   : > { %s8698_s28 = sshll.u32 %s2189_s25, 4 }
  0x3e   : > { %s2192_s16 = scalar_lea.vmem %s12497_s1, %s8698_s28  ;;  %s8699_s22 = sshll.u32 %s2471_s21, 4 }
  0x3f   : > { %s2474_s25 = scalar_lea.vmem %s12497_s1, %s8699_s22  ;;  %s2752_s28 = sadd.s32 8, %s10289_s19 }
  0x40   : > { %s2753_s30 = sld [smem:[#allocation3 + %s2752_s28]]  ;;  %s3034_s22 = sadd.s32 9, %s10289_s19 }
  0x46   : > { %s8700_s15 = sshll.u32 %s2753_s30, 4 }
  0x47   : > { %s2756_s21 = scalar_lea.vmem %s12497_s1, %s8700_s15  ;;  %s3316_s15 = sadd.s32 10, %s10289_s19 }
  0xfc   : > { %v560_v8 = vpop.f32.mrb[0].mxu0 }
  0xfd   : > { %v9120_v9 = vpop.f32.mrb[1].mxu0 }
  0xfe   : > { %v563_v10 = vpop.f32.mrb[2].mxu0 }
  0xff   : > { %v10331_v11 = vpack.c.bf16 %v563_v10, %v560_v8  ;;  %v9121_v12 = vpop.f32.mrb[3].mxu0 }
 0x101   : > { %636 = vrot.lane.b32.xlu0 %v10331_v11, %s10195_s27  ;;  %9127 = vmatmul.mubr.msk.bf16.vlgmr.msra.gmra.mrb[0].mxu1 %vm522_vm1, %v10331_v11 }
 0x102   : > { %9142 = vmatprep.mubr.msk.bf16.mxu1 %vm10194_vm0, %v10193_v0 }
 0x173   : > { %v637_v14 = vpop.permute.xlu0 %636 }
 0x174   : > { %9135 = vmatmul.mubr.msk.bf16.vlgmr.msra.gmra.mrb[4].mxu0 %vm522_vm1, %v637_v14 }
 0x175   : > { %9147 = vmatpush3.bf16.msra.mxu0 %v9761_v13  ;;  %9150 = vmatprep.mubr.msk.bf16.mxu0 %vm10194_vm0, %v10193_v0 }
 0x176   : > { %9148 = vmatprep.subr.bf16.mxu0 %v10193_v0 }
 0x179   : > { %9149 = vmatpush3.bf16.msra.mxu0 %v9762_v15  ;;  %v9781_v15 = vld [vmem:[%s1910_s23] sm:$0xff]  }
 0x17a   : > { %9162 = vmatprep.subr.bf16.mxu0 %v10193_v0 }
 0x17c   : > { %9151 = vmatmul.mubr.msk.bf16.vlgmr.msra.gmra.mrb[8].mxu0 %vm522_vm1, %v9763_v16 }
 0x17d   : > { %9166 = vmatprep.mubr.msk.bf16.mxu0 %vm10194_vm0, %v10193_v0  ;;  %9163 = vmatpush3.bf16.msra.mxu0 %v9764_v18  ;;  %v9783_v18 = vld [vmem:[%s10303_s26 + $0x28] sm:$0xff]  }
 0x17e   : > { %9164 = vmatprep.subr.bf16.mxu0 %v10193_v0 }
 0x181   : > { %9165 = vmatpush3.bf16.msra.mxu0 %v9765_v21 }
 0x182   : > { %9178 = vmatprep.subr.bf16.mxu0 %v10193_v0 }
 0x1d4   : > { %v621_v17 = vpop.f32.mrb[0].mxu1 }
 0x1d5   : > { %629 = vst.msk [vmem:[%s10352_s17] sm:$0xff] %vm628_vm2, %v621_v17  ;;  %v9128_v19 = vpop.f32.mrb[1].mxu1  ;;  %v9782_v17 = vld [vmem:[%s1910_s23 + $0x8] sm:$0xff]   ;;  %s3035_s23 = sld [smem:[#allocation3 + %s3034_s22]] }
 0x1d6   : > { %v624_v20 = vpop.f32.mrb[2].mxu1  ;;  %v9784_v19 = vld [vmem:[%s10308_s29 + $0x50] sm:$0xff]  }
 0x1d7   : > { %630 = vst.msk [vmem:[%s10352_s17 + $0x8] sm:$0xff] %vm628_vm2, %v624_v20  ;;  %v9129_v22 = vpop.f32.mrb[3].mxu1  ;;  %v9785_v20 = vld [vmem:[%s10308_s29 + $0x58] sm:$0xff]  }
 0x1db   : > { %s8701_s24 = sshll.u32 %s3035_s23, 4 }
 0x1dc   : > { %s3038_s30 = scalar_lea.vmem %s12497_s1, %s8701_s24  ;;  %s3598_s24 = sadd.s32 11, %s10289_s19 }
 0x247   : > { %v10366_v23 = vpop.f32.mrb[4].mxu0 }
 0x248   : > { %v9136_v24 = vpop.f32.mrb[5].mxu0 }
 0x249   : > { %v10368_v25 = vpop.f32.mrb[6].mxu0 }
 0x24a   : > { %v9137_v26 = vpop.f32.mrb[7].mxu0 }
 0x24f   : > { %v844_v27 = vpop.f32.mrb[8].mxu0 }
 0x250   : > { %v9152_v28 = vpop.f32.mrb[9].mxu0 }
 0x251   : > { %v847_v29 = vpop.f32.mrb[10].mxu0 }
 0x252   : > { %v10370_v30 = vpack.c.bf16 %v847_v29, %v844_v27  ;;  %v9153_v31 = vpop.f32.mrb[11].mxu0 }
 0x254   : > { %920 = vrot.lane.b32.xlu0 %v10370_v30, %s10195_s27 }
 0x2c6   : > { %v921_v33 = vpop.permute.xlu0 %920 }
 0x2c7   : > { %9167 = vmatmul.mubr.msk.bf16.vlgmr.msra.gmra.mrb[12].mxu0 %vm522_vm1, %v921_v33  ;;  %v9786_v33 = vld [vmem:[%s2192_s16] sm:$0xff]  }
 0x2c8   : > { %9179 = vmatpush3.bf16.msra.mxu0 %v9766_v32  ;;  %9182 = vmatprep.mubr.msk.bf16.mxu0 %vm10194_vm0, %v10193_v0 }
 0x2c9   : > { %9180 = vmatprep.subr.bf16.mxu0 %v10193_v0 }
 0x2cc   : > { %9181 = vmatpush3.bf16.msra.mxu0 %v9767_v34 }
 0x2cd   : > { %9194 = vmatprep.subr.bf16.mxu0 %v10193_v0 }
 0x2cf   : > { %9183 = vmatmul.mubr.msk.bf16.vlgmr.msra.gmra.mrb[16].mxu0 %vm522_vm1, %v9768_v35  ;;  %v9787_v35 = vld [vmem:[%s2192_s16 + $0x8] sm:$0xff]   ;;  %s3317_s16 = sld [smem:[#allocation3 + %s3316_s15]] }
 0x2d0   : > { %9198 = vmatprep.mubr.msk.bf16.mxu0 %vm10194_vm0, %v10193_v0  ;;  %9195 = vmatpush3.bf16.msra.mxu0 %v9769_v36  ;;  %v9788_v36 = vld [vmem:[%s10303_s26 + $0x30] sm:$0xff]  }
 0x2d1   : > { %9196 = vmatprep.subr.bf16.mxu0 %v10193_v0 }
 0x2d4   : > { %9197 = vmatpush3.bf16.msra.mxu0 %v9770_v37  ;;  %v9789_v37 = vld [vmem:[%s10308_s29 + $0x60] sm:$0xff]  }
 0x2d5   : > { %9210 = vmatprep.subr.bf16.mxu0 %v10193_v0  ;;  %s8702_s20 = sshll.u32 %s3317_s16, 4 }
 0x2d6   : > { %s3320_s23 = scalar_lea.vmem %s12497_s1, %s8702_s20  ;;  %s3880_s20 = sadd.s32 12, %s10289_s19 }
 0x39a   : > { %v10391_v38 = vpop.f32.mrb[12].mxu0 }
 0x39b   : > { %v9168_v39 = vpop.f32.mrb[13].mxu0 }
 0x39c   : > { %v10393_v40 = vpop.f32.mrb[14].mxu0  ;;  %v9790_v39 = vld [vmem:[%s10308_s29 + $0x68] sm:$0xff]  }
 0x39d   : > { %v9169_v41 = vpop.f32.mrb[15].mxu0 }
 0x3a2   : > { %v1126_v42 = vpop.f32.mrb[16].mxu0 }
 0x3a3   : > { %v9184_v43 = vpop.f32.mrb[17].mxu0 }
 0x3a4   : > { %v1129_v44 = vpop.f32.mrb[18].mxu0 }
 0x3a5   : > { %v10395_v45 = vpack.c.bf16 %v1129_v44, %v1126_v42  ;;  %v9185_v46 = vpop.f32.mrb[19].mxu0 }
 0x3a7   : > { %1202 = vrot.lane.b32.xlu1 %v10395_v45, %s10195_s27 }
 0x419   : > { %v1203_v48 = vpop.permute.xlu1 %1202 }
 0x41a   : > { %9199 = vmatmul.mubr.msk.bf16.vlgmr.msra.gmra.mrb[20].mxu0 %vm522_vm1, %v1203_v48 }
 0x41b   : > { %9211 = vmatpush3.bf16.msra.mxu0 %v9771_v47  ;;  %9214 = vmatprep.mubr.msk.bf16.mxu0 %vm10194_vm0, %v10193_v0 }
 0x41c   : > { %9212 = vmatprep.subr.bf16.mxu0 %v10193_v0 }
 0x41f   : > { %9213 = vmatpush3.bf16.msra.mxu0 %v9772_v49 }
 0x420   : > { %9226 = vmatprep.subr.bf16.mxu0 %v10193_v0 }
 0x422   : > { %9215 = vmatmul.mubr.msk.bf16.vlgmr.msra.gmra.mrb[24].mxu0 %vm522_vm1, %v9773_v50 }
 0x423   : > { %9230 = vmatprep.mubr.msk.bf16.mxu0 %vm10194_vm0, %v10193_v0  ;;  %9227 = vmatpush3.bf16.msra.mxu0 %v9774_v51  ;;  %v9791_v51 = vld [vmem:[%s2474_s25] sm:$0xff]  }
 0x424   : > { %9228 = vmatprep.subr.bf16.mxu0 %v10193_v0 }
 0x427   : > { %9229 = vmatpush3.bf16.msra.mxu0 %v9775_v52 }
 0x428   : > { %9242 = vmatprep.subr.bf16.mxu0 %v10193_v0 }
 0x4ed   : > { %v10416_v53 = vpop.f32.mrb[20].mxu0 }
 0x4ee   : > { %v9200_v54 = vpop.f32.mrb[21].mxu0 }
 0x4ef   : > { %v10418_v55 = vpop.f32.mrb[22].mxu0  ;;  %v9792_v54 = vld [vmem:[%s2474_s25 + $0x8] sm:$0xff]   ;;  %s3599_s25 = sld [smem:[#allocation3 + %s3598_s24]] }
 0x4f0   : > { %v9201_v56 = vpop.f32.mrb[23].mxu0 }
 0x4f1   : > { %v9793_v56 = vld [vmem:[%s10303_s26 + $0x38] sm:$0xff]  }
 0x4f5   : > { %v1408_v57 = vpop.f32.mrb[24].mxu0  ;;  %s8703_s28 = sshll.u32 %s3599_s25, 4 }
 0x4f6   : > { %v9216_v58 = vpop.f32.mrb[25].mxu0  ;;  %s3602_s16 = scalar_lea.vmem %s12497_s1, %s8703_s28  ;;  %s4162_s28 = sadd.s32 13, %s10289_s19 }
 0x4f7   : > { %v1411_v59 = vpop.f32.mrb[26].mxu0  ;;  %v9795_v58 = vld [vmem:[%s10308_s29 + $0x78] sm:$0xff]  }
 0x4f8   : > { %v10420_v60 = vpack.c.bf16 %v1411_v59, %v1408_v57  ;;  %v9217_v61 = vpop.f32.mrb[27].mxu0  ;;  %v9794_v57 = vld [vmem:[%s10308_s29 + $0x70] sm:$0xff]  }
 0x4fa   : > { %1484 = vrot.lane.b32.xlu1 %v10420_v60, %s10195_s27 }
 0x56c   : > { %v1485_v63 = vpop.permute.xlu1 %1484 }
 0x56d   : > { %9231 = vmatmul.mubr.msk.bf16.vlgmr.msra.gmra.mrb[28].mxu0 %vm522_vm1, %v1485_v63 }
 0x56e   : > { %9243 = vmatpush3.bf16.msra.mxu0 %v9776_v62  ;;  %9246 = vmatprep.mubr.msk.bf16.mxu0 %vm10194_vm0, %v10193_v0 }
 0x56f   : > { %9244 = vmatprep.subr.bf16.mxu0 %v10193_v0 }
 0x572   : > { %9245 = vmatpush3.bf16.msra.mxu0 %v9777_v1 }
 0x573   : > { %9258 = vmatprep.subr.bf16.mxu0 %v10193_v0 }
 0x575   : > { %9247 = vmatmul.mubr.msk.bf16.vlgmr.msra.gmra.mrb[32].mxu0 %vm522_vm1, %v9778_v2 }
 0x576   : > { %9262 = vmatprep.mubr.msk.bf16.mxu0 %vm10194_vm0, %v10193_v0  ;;  %9259 = vmatpush3.bf16.msra.mxu0 %v9779_v3 }
 0x577   : > { %9260 = vmatprep.subr.bf16.mxu0 %v10193_v0 }
 0x57a   : > { %9261 = vmatpush3.bf16.msra.mxu0 %v9780_v4 }
 0x57b   : > { %9274 = vmatprep.subr.bf16.mxu0 %v10193_v0 }
 0x640   : > { %v10441_v5 = vpop.f32.mrb[28].mxu0 }
 0x641   : > { %v9232_v6 = vpop.f32.mrb[29].mxu0 }
 0x642   : > { %v10443_v7 = vpop.f32.mrb[30].mxu0 }
 0x643   : > { %v9233_v8 = vpop.f32.mrb[31].mxu0 }
 0x644   : > { %v9796_v8 = vld [vmem:[%s2756_s21] sm:$0xff]  }
 0x648   : > { %v1690_v9 = vpop.f32.mrb[32].mxu0 }
 0x649   : > { %v9248_v10 = vpop.f32.mrb[33].mxu0 }
 0x64a   : > { %v1693_v12 = vpop.f32.mrb[34].mxu0  ;;  %v9797_v10 = vld [vmem:[%s2756_s21 + $0x8] sm:$0xff]   ;;  %s3881_s21 = sld [smem:[#allocation3 + %s3880_s20]] }
 0x64b   : > { %v10445_v13 = vpack.c.bf16 %v1693_v12, %v1690_v9  ;;  %v9249_v14 = vpop.f32.mrb[35].mxu0  ;;  %v9798_v12 = vld [vmem:[%s10303_s26 + $0x40] sm:$0xff]  }
 0x64c   : > { %v9799_v14 = vld [vmem:[%s10308_s29 + $0x80] sm:$0xff]  }
 0x64d   : > { %1766 = vrot.lane.b32.xlu0 %v10445_v13, %s10195_s27 }
 0x650   : > { %s8704_s22 = sshll.u32 %s3881_s21, 4 }
 0x651   : > { %s3884_s25 = scalar_lea.vmem %s12497_s1, %s8704_s22  ;;  %s4444_s22 = sadd.s32 14, %s10289_s19 }
 0x6bf   : > { %v1767_v16 = vpop.permute.xlu0 %1766 }
 0x6c0   : > { %9263 = vmatmul.mubr.msk.bf16.vlgmr.msra.gmra.mrb[36].mxu0 %vm522_vm1, %v1767_v16 }
 0x6c1   : > { %9275 = vmatpush3.bf16.msra.mxu0 %v9781_v15  ;;  %9278 = vmatprep.mubr.msk.bf16.mxu0 %vm10194_vm0, %v10193_v0  ;;  %v9800_v15 = vld [vmem:[%s10308_s29 + $0x88] sm:$0xff]  }
 0x6c2   : > { %9276 = vmatprep.subr.bf16.mxu0 %v10193_v0 }
 0x6c5   : > { %9277 = vmatpush3.bf16.msra.mxu0 %v9782_v17 }
 0x6c6   : > { %9290 = vmatprep.subr.bf16.mxu0 %v10193_v0 }
 0x6c8   : > { %9279 = vmatmul.mubr.msk.bf16.vlgmr.msra.gmra.mrb[40].mxu0 %vm522_vm1, %v9783_v18 }
 0x6c9   : > { %9294 = vmatprep.mubr.msk.bf16.mxu0 %vm10194_vm0, %v10193_v0  ;;  %9291 = vmatpush3.bf16.msra.mxu0 %v9784_v19 }
 0x6ca   : > { %9292 = vmatprep.subr.bf16.mxu0 %v10193_v0 }
 0x6cd   : > { %9293 = vmatpush3.bf16.msra.mxu0 %v9785_v20 }
 0x6ce   : > { %9306 = vmatprep.subr.bf16.mxu0 %v10193_v0 }
 0x793   : > { %v10466_v21 = vpop.f32.mrb[36].mxu0 }
 0x794   : > { %v9264_v22 = vpop.f32.mrb[37].mxu0 }
 0x795   : > { %v10468_v24 = vpop.f32.mrb[38].mxu0 }
 0x796   : > { %v9265_v26 = vpop.f32.mrb[39].mxu0 }
 0x79b   : > { %v1972_v27 = vpop.f32.mrb[40].mxu0 }
 0x79c   : > { %v9280_v28 = vpop.f32.mrb[41].mxu0 }
 0x79d   : > { %v1975_v29 = vpop.f32.mrb[42].mxu0 }
 0x79e   : > { %v10470_v31 = vpack.c.bf16 %v1975_v29, %v1972_v27  ;;  %v9281_v32 = vpop.f32.mrb[43].mxu0  ;;  %v9801_v29 = vld [vmem:[%s3038_s30] sm:$0xff]  }
 0x7a0   : > { %2048 = vrot.lane.b32.xlu1 %v10470_v31, %s10195_s27 }
 0x812   : > { %v2049_v34 = vpop.permute.xlu1 %2048 }
 0x813   : > { %9295 = vmatmul.mubr.msk.bf16.vlgmr.msra.gmra.mrb[44].mxu0 %vm522_vm1, %v2049_v34  ;;  %v9803_v34 = vld [vmem:[%s10303_s26 + $0x48] sm:$0xff]  }
 0x814   : > { %9307 = vmatpush3.bf16.msra.mxu0 %v9786_v33  ;;  %9310 = vmatprep.mubr.msk.bf16.mxu0 %vm10194_vm0, %v10193_v0  ;;  %v9802_v33 = vld [vmem:[%s3038_s30 + $0x8] sm:$0xff]   ;;  %s4163_s30 = sld [smem:[#allocation3 + %s4162_s28]] }
 0x815   : > { %9308 = vmatprep.subr.bf16.mxu0 %v10193_v0 }
 0x818   : > { %9309 = vmatpush3.bf16.msra.mxu0 %v9787_v35  ;;  %v9804_v35 = vld [vmem:[%s10308_s29 + $0x90] sm:$0xff]  }
 0x819   : > { %9322 = vmatprep.subr.bf16.mxu0 %v10193_v0 }
 0x81a   : > { %s8705_s15 = sshll.u32 %s4163_s30, 4 }
 0x81b   : > { %9311 = vmatmul.mubr.msk.bf16.vlgmr.msra.gmra.mrb[48].mxu0 %vm522_vm1, %v9788_v36  ;;  %v9805_v36 = vld [vmem:[%s10308_s29 + $0x98] sm:$0xff]   ;;  %s4166_s21 = scalar_lea.vmem %s12497_s1, %s8705_s15  ;;  %s10196_s15 = smov 64  }
 0x81c   : > { %9326 = vmatprep.mubr.msk.bf16.mxu0 %vm10194_vm0, %v10193_v0  ;;  %9323 = vmatpush3.bf16.msra.mxu0 %v9789_v37 }
 0x81d   : > { %9324 = vmatprep.subr.bf16.mxu0 %v10193_v0 }
 0x820   : > { %9325 = vmatpush3.bf16.msra.mxu0 %v9790_v39 }
 0x821   : > { %9338 = vmatprep.subr.bf16.mxu0 %v10193_v0 }
 0x8e6   : > { %v10491_v41 = vpop.f32.mrb[44].mxu0 }
 0x8e7   : > { %v9296_v42 = vpop.f32.mrb[45].mxu0 }
 0x8e8   : > { %v10493_v43 = vpop.f32.mrb[46].mxu0 }
 0x8e9   : > { %v9297_v44 = vpop.f32.mrb[47].mxu0 }
 0x8ee   : > { %v2254_v46 = vpop.f32.mrb[48].mxu0 }
 0x8ef   : > { %v9312_v47 = vpop.f32.mrb[49].mxu0 }
 0x8f0   : > { %v2257_v48 = vpop.f32.mrb[50].mxu0 }
 0x8f1   : > { %v10495_v49 = vpack.c.bf16 %v2257_v48, %v2254_v46  ;;  %v9313_v50 = vpop.f32.mrb[51].mxu0 }
 0x8f3   : > { %2330 = vrot.lane.b32.xlu0 %v10495_v49, %s10195_s27 }
 0x965   : > { %v2331_v52 = vpop.permute.xlu0 %2330 }
 0x966   : > { %9327 = vmatmul.mubr.msk.bf16.vlgmr.msra.gmra.mrb[52].mxu0 %vm522_vm1, %v2331_v52  ;;  %v9806_v52 = vld [vmem:[%s3320_s23] sm:$0xff]  }
 0x967   : > { %9339 = vmatpush3.bf16.msra.mxu0 %v9791_v51  ;;  %9342 = vmatprep.mubr.msk.bf16.mxu0 %vm10194_vm0, %v10193_v0 }
 0x968   : > { %9340 = vmatprep.subr.bf16.mxu0 %v10193_v0 }
 0x96b   : > { %9341 = vmatpush3.bf16.msra.mxu0 %v9792_v54 }
 0x96c   : > { %9354 = vmatprep.subr.bf16.mxu0 %v10193_v0 }
 0x96e   : > { %9343 = vmatmul.mubr.msk.bf16.vlgmr.msra.gmra.mrb[56].mxu0 %vm522_vm1, %v9793_v56  ;;  %v9807_v56 = vld [vmem:[%s3320_s23 + $0x8] sm:$0xff]   ;;  %s4445_s23 = sld [smem:[#allocation3 + %s4444_s22]] }
 0x96f   : > { %9358 = vmatprep.mubr.msk.bf16.mxu0 %vm10194_vm0, %v10193_v0  ;;  %9355 = vmatpush3.bf16.msra.mxu0 %v9794_v57  ;;  %v9808_v57 = vld [vmem:[%s10303_s26 + $0x50] sm:$0xff]  }
 0x970   : > { %9356 = vmatprep.subr.bf16.mxu0 %v10193_v0 }
 0x973   : > { %9357 = vmatpush3.bf16.msra.mxu0 %v9795_v58  ;;  %v9809_v58 = vld [vmem:[%s10308_s29 + $0xa0] sm:$0xff]  }
 0x974   : > { %9370 = vmatprep.subr.bf16.mxu0 %v10193_v0  ;;  %s8706_s24 = sshll.u32 %s4445_s23, 4  ;;  %s7894_s23 = sshll.u32 %s10284_s0, 1 }
 0x975   : > { %s4448_s30 = scalar_lea.vmem %s12497_s1, %s8706_s24  ;;  %p488_p10 = scmp.lt.s32.totalorder %s7894_s23, 5 }
 0x977   : > { %s12514_s23 = smov (!%p488_p10, %s7894_s23), 5 }
 0xa39   : > { %v10516_v59 = vpop.f32.mrb[52].mxu0 }
 0xa3a   : > { %v9328_v61 = vpop.f32.mrb[53].mxu0 }
 0xa3b   : > { %v10518_v62 = vpop.f32.mrb[54].mxu0  ;;  %v9810_v61 = vld [vmem:[%s10308_s29 + $0xa8] sm:$0xff]  }
 0xa3c   : > { %v9329_v63 = vpop.f32.mrb[55].mxu0 }
 0xa41   : > { %v2536_v1 = vpop.f32.mrb[56].mxu0 }
 0xa42   : > { %v9344_v2 = vpop.f32.mrb[57].mxu0 }
 0xa43   : > { %v2539_v3 = vpop.f32.mrb[58].mxu0 }
 0xa44   : > { %v10520_v4 = vpack.c.bf16 %v2539_v3, %v2536_v1  ;;  %v9345_v6 = vpop.f32.mrb[59].mxu0 }
 0xa46   : > { %2612 = vrot.lane.b32.xlu1 %v10520_v4, %s10195_s27 }
 0xab8   : > { %v2613_v9 = vpop.permute.xlu1 %2612 }
 0xab9   : > { %9359 = vmatmul.mubr.msk.bf16.vlgmr.msra.gmra.mrb[60].mxu0 %vm522_vm1, %v2613_v9 }
 0xaba   : > { %9371 = vmatpush3.bf16.msra.mxu0 %v9796_v8  ;;  %9374 = vmatprep.mubr.msk.bf16.mxu0 %vm10194_vm0, %v10193_v0 }
 0xabb   : > { %9372 = vmatprep.subr.bf16.mxu0 %v10193_v0 }
 0xabe   : > { %9373 = vmatpush3.bf16.msra.mxu0 %v9797_v10 }
 0xabf   : > { %9386 = vmatprep.subr.bf16.mxu0 %v10193_v0 }
 0xac1   : > { %9375 = vmatmul.mubr.msk.bf16.vlgmr.msra.gmra.mrb[64].mxu0 %vm522_vm1, %v9798_v12 }
 0xac2   : > { %9390 = vmatprep.mubr.msk.bf16.mxu0 %vm10194_vm0, %v10193_v0  ;;  %9387 = vmatpush3.bf16.msra.mxu0 %v9799_v14  ;;  %v9811_v14 = vld [vmem:[%s3602_s16] sm:$0xff]  }
 0xac3   : > { %9388 = vmatprep.subr.bf16.mxu0 %v10193_v0 }
 0xac6   : > { %9389 = vmatpush3.bf16.msra.mxu0 %v9800_v15 }
 0xac7   : > { %9402 = vmatprep.subr.bf16.mxu0 %v10193_v0 }
 0xb8c   : > { %v10541_v16 = vpop.f32.mrb[60].mxu0 }
 0xb8d   : > { %v9360_v17 = vpop.f32.mrb[61].mxu0 }
 0xb8e   : > { %v10543_v18 = vpop.f32.mrb[62].mxu0  ;;  %v9812_v17 = vld [vmem:[%s3602_s16 + $0x8] sm:$0xff]   ;;  %s4726_s16 = sadd.s32 15, %s10289_s19  ;;  %s10197_s19 = smov 16  }
 0xb8f   : > { %v9361_v19 = vpop.f32.mrb[63].mxu0  ;;  %s4727_s20 = sld [smem:[#allocation3 + %s4726_s16]] }
 0xb90   : > { %v9813_v19 = vld [vmem:[%s10303_s26 + $0x58] sm:$0xff]  }
 0xb94   : > { %v2818_v20 = vpop.f32.mrb[64].mxu0 }
 0xb95   : > { %v9376_v22 = vpop.f32.mrb[65].mxu0 }
 0xb96   : > { %v2821_v26 = vpop.f32.mrb[66].mxu0  ;;  %v9815_v22 = vld [vmem:[%s10308_s29 + $0xb8] sm:$0xff]  }
 0xb97   : > { %v10545_v27 = vpack.c.bf16 %v2821_v26, %v2818_v20  ;;  %v9377_v28 = vpop.f32.mrb[67].mxu0  ;;  %v9814_v20 = vld [vmem:[%s10308_s29 + $0xb0] sm:$0xff]  }
 0xb99   : > { %2894 = vrot.lane.b32.xlu0 %v10545_v27, %s10195_s27 }
 0xc0b   : > { %v2895_v32 = vpop.permute.xlu0 %2894 }
 0xc0c   : > { %9391 = vmatmul.mubr.msk.bf16.vlgmr.msra.gmra.mrb[68].mxu0 %vm522_vm1, %v2895_v32 }
 0xc0d   : > { %9403 = vmatpush3.bf16.msra.mxu0 %v9801_v29  ;;  %9406 = vmatprep.mubr.msk.bf16.mxu0 %vm10194_vm0, %v10193_v0 }
 0xc0e   : > { %9404 = vmatprep.subr.bf16.mxu0 %v10193_v0 }
 0xc11   : > { %9405 = vmatpush3.bf16.msra.mxu0 %v9802_v33 }
 0xc12   : > { %9418 = vmatprep.subr.bf16.mxu0 %v10193_v0 }
 0xc14   : > { %9407 = vmatmul.mubr.msk.bf16.vlgmr.msra.gmra.mrb[72].mxu0 %vm522_vm1, %v9803_v34 }
 0xc15   : > { %9422 = vmatprep.mubr.msk.bf16.mxu0 %vm10194_vm0, %v10193_v0  ;;  %9419 = vmatpush3.bf16.msra.mxu0 %v9804_v35 }
 0xc16   : > { %9420 = vmatprep.subr.bf16.mxu0 %v10193_v0 }
 0xc19   : > { %9421 = vmatpush3.bf16.msra.mxu0 %v9805_v36 }
 0xc1a   : > { %9434 = vmatprep.subr.bf16.mxu0 %v10193_v0 }
 0xcdf   : > { %v10566_v37 = vpop.f32.mrb[68].mxu0 }
 0xce0   : > { %v9392_v39 = vpop.f32.mrb[69].mxu0 }
 0xce1   : > { %v10568_v42 = vpop.f32.mrb[70].mxu0 }
 0xce2   : > { %v9393_v44 = vpop.f32.mrb[71].mxu0 }
 0xce3   : > { %v9816_v44 = vld [vmem:[%s3884_s25] sm:$0xff]  }
 0xce7   : > { %v3100_v46 = vpop.f32.mrb[72].mxu0 }
 0xce8   : > { %v9408_v47 = vpop.f32.mrb[73].mxu0 }
 0xce9   : > { %v3103_v48 = vpop.f32.mrb[74].mxu0  ;;  %v9817_v47 = vld [vmem:[%s3884_s25 + $0x8] sm:$0xff]  }
 0xcea   : > { %v10570_v50 = vpack.c.bf16 %v3103_v48, %v3100_v46  ;;  %v9409_v51 = vpop.f32.mrb[75].mxu0  ;;  %v9818_v48 = vld [vmem:[%s10303_s26 + $0x60] sm:$0xff]  }
 0xceb   : > { %v9819_v51 = vld [vmem:[%s10308_s29 + $0xc0] sm:$0xff]  }
 0xcec   : > { %3176 = vrot.lane.b32.xlu1 %v10570_v50, %s10195_s27 }
 0xd5e   : > { %v3177_v54 = vpop.permute.xlu1 %3176 }
 0xd5f   : > { %9423 = vmatmul.mubr.msk.bf16.vlgmr.msra.gmra.mrb[76].mxu0 %vm522_vm1, %v3177_v54 }
 0xd60   : > { %9435 = vmatpush3.bf16.msra.mxu0 %v9806_v52  ;;  %9438 = vmatprep.mubr.msk.bf16.mxu0 %vm10194_vm0, %v10193_v0  ;;  %v9820_v52 = vld [vmem:[%s10308_s29 + $0xc8] sm:$0xff]  }
 0xd61   : > { %9436 = vmatprep.subr.bf16.mxu0 %v10193_v0 }
 0xd64   : > { %9437 = vmatpush3.bf16.msra.mxu0 %v9807_v56 }
 0xd65   : > { %9450 = vmatprep.subr.bf16.mxu0 %v10193_v0 }
 0xd67   : > { %9439 = vmatmul.mubr.msk.bf16.vlgmr.msra.gmra.mrb[80].mxu0 %vm522_vm1, %v9808_v57 }
 0xd68   : > { %9454 = vmatprep.mubr.msk.bf16.mxu0 %vm10194_vm0, %v10193_v0  ;;  %9451 = vmatpush3.bf16.msra.mxu0 %v9809_v58 }
 0xd69   : > { %9452 = vmatprep.subr.bf16.mxu0 %v10193_v0 }
 0xd6c   : > { %9453 = vmatpush3.bf16.msra.mxu0 %v9810_v61 }
 0xd6d   : > { %9466 = vmatprep.subr.bf16.mxu0 %v10193_v0 }
 0xe32   : > { %v10591_v63 = vpop.f32.mrb[76].mxu0 }
 0xe33   : > { %v9424_v1 = vpop.f32.mrb[77].mxu0 }
 0xe34   : > { %v10593_v2 = vpop.f32.mrb[78].mxu0 }
 0xe35   : > { %v9425_v3 = vpop.f32.mrb[79].mxu0 }
 0xe3a   : > { %v3382_v6 = vpop.f32.mrb[80].mxu0 }
 0xe3b   : > { %v9440_v8 = vpop.f32.mrb[81].mxu0 }
 0xe3c   : > { %v3385_v9 = vpop.f32.mrb[82].mxu0 }
 0xe3d   : > { %v10595_v10 = vpack.c.bf16 %v3385_v9, %v3382_v6  ;;  %v9441_v12 = vpop.f32.mrb[83].mxu0  ;;  %v9821_v9 = vld [vmem:[%s4166_s21] sm:$0xff]  }
 0xe3f   : > { %3458 = vrot.lane.b32.xlu0 %v10595_v10, %s10195_s27 }
 0xeb1   : > { %v3459_v15 = vpop.permute.xlu0 %3458 }
 0xeb2   : > { %9455 = vmatmul.mubr.msk.bf16.vlgmr.msra.gmra.mrb[84].mxu0 %vm522_vm1, %v3459_v15  ;;  %v9823_v15 = vld [vmem:[%s10303_s26 + $0x68] sm:$0xff]  }
 0xeb3   : > { %9467 = vmatpush3.bf16.msra.mxu0 %v9811_v14  ;;  %9470 = vmatprep.mubr.msk.bf16.mxu0 %vm10194_vm0, %v10193_v0  ;;  %v9822_v14 = vld [vmem:[%s4166_s21 + $0x8] sm:$0xff]   ;;  %s8707_s21 = sshll.u32 %s4727_s20, 4 }
 0xeb4   : > { %9468 = vmatprep.subr.bf16.mxu0 %v10193_v0  ;;  %s10722_s24 = scalar_lea.vmem %s12497_s1, %s8707_s21 }
 0xeb7   : > { %9469 = vmatpush3.bf16.msra.mxu0 %v9812_v17  ;;  %v9824_v17 = vld [vmem:[%s10308_s29 + $0xd0] sm:$0xff]  }
 0xeb8   : > { %9482 = vmatprep.subr.bf16.mxu0 %v10193_v0 }
 0xeba   : > { %9471 = vmatmul.mubr.msk.bf16.vlgmr.msra.gmra.mrb[88].mxu0 %vm522_vm1, %v9813_v19  ;;  %v9825_v19 = vld [vmem:[%s10308_s29] sm:$0xff]  }
 0xebb   : > { %9486 = vmatprep.mubr.msk.bf16.mxu0 %vm10194_vm0, %v10193_v0  ;;  %9483 = vmatpush3.bf16.msra.mxu0 %v9814_v20  ;;  %v9826_v20 = vld [vmem:[%s10308_s29 + $0xd8] sm:$0xff]  }
 0xebc   : > { %9484 = vmatprep.subr.bf16.mxu0 %v10193_v0  ;;  %9139 = vmatpush3.bf16.msra.mxu1 %v9825_v19 }
 0xebd   : > { %9140 = vmatprep.subr.bf16.mxu1 %v10193_v0 }
 0xebf   : > { %9485 = vmatpush3.bf16.msra.mxu0 %v9815_v22  ;;  %v9827_v22 = vld [vmem:[%s10308_s29 + $0x8] sm:$0xff]  }
 0xec0   : > { %9498 = vmatprep.subr.bf16.mxu0 %v10193_v0  ;;  %9141 = vmatpush3.bf16.msra.mxu1 %v9827_v22 }
 0xec1   : > { %9154 = vmatprep.subr.bf16.mxu1 %v10193_v0 }
 0xf85   : > { %v10616_v26 = vpop.f32.mrb[84].mxu0 }
 0xf86   : > { %v9456_v28 = vpop.f32.mrb[85].mxu0 }
 0xf87   : > { %v10618_v29 = vpop.f32.mrb[86].mxu0 }
 0xf88   : > { %v9457_v32 = vpop.f32.mrb[87].mxu0 }
 0xf8d   : > { %v3664_v33 = vpop.f32.mrb[88].mxu0 }
 0xf8e   : > { %v9472_v34 = vpop.f32.mrb[89].mxu0 }
 0xf8f   : > { %v3667_v35 = vpop.f32.mrb[90].mxu0 }
 0xf90   : > { %v10620_v36 = vpack.c.bf16 %v3667_v35, %v3664_v33  ;;  %v9473_v39 = vpop.f32.mrb[91].mxu0 }
 0xf92   : > { %3740 = vrot.lane.b32.xlu1 %v10620_v36, %s10195_s27 }
0x1004   : > { %v3741_v46 = vpop.permute.xlu1 %3740 }
0x1005   : > { %9487 = vmatmul.mubr.msk.bf16.vlgmr.msra.gmra.mrb[92].mxu0 %vm522_vm1, %v3741_v46 }
0x1006   : > { %9499 = vmatpush3.bf16.msra.mxu0 %v9816_v44  ;;  %9502 = vmatprep.mubr.msk.bf16.mxu0 %vm10194_vm0, %v10193_v0 }
0x1007   : > { %9500 = vmatprep.subr.bf16.mxu0 %v10193_v0 }
0x100a   : > { %9501 = vmatpush3.bf16.msra.mxu0 %v9817_v47 }
0x100b   : > { %9514 = vmatprep.subr.bf16.mxu0 %v10193_v0 }
0x100d   : > { %9503 = vmatmul.mubr.msk.bf16.vlgmr.msra.gmra.mrb[96].mxu0 %vm522_vm1, %v9818_v48 }
0x100e   : > { %9518 = vmatprep.mubr.msk.bf16.mxu0 %vm10194_vm0, %v10193_v0  ;;  %9515 = vmatpush3.bf16.msra.mxu0 %v9819_v51  ;;  %v9829_v51 = vld [vmem:[%s10308_s29 + $0x10] sm:$0xff]  }
0x100f   : > { %9516 = vmatprep.subr.bf16.mxu0 %v10193_v0 }
0x1012   : > { %9517 = vmatpush3.bf16.msra.mxu0 %v9820_v52  ;;  %v9830_v52 = vld [vmem:[%s4448_s30 + $0x8] sm:$0xff]  }
0x1013   : > { %9530 = vmatprep.subr.bf16.mxu0 %v10193_v0 }
0x10d8   : > { %v10641_v54 = vpop.f32.mrb[92].mxu0 }
0x10d9   : > { %v9488_v56 = vpop.f32.mrb[93].mxu0 }
0x10da   : > { %v10643_v57 = vpop.f32.mrb[94].mxu0 }
0x10db   : > { %v9489_v58 = vpop.f32.mrb[95].mxu0 }
0x10dc   : > { %v9831_v58 = vld [vmem:[%s10303_s26 + $0x70] sm:$0xff]  }
0x10e0   : > { %v3946_v61 = vpop.f32.mrb[96].mxu0 }
0x10e1   : > { %v9504_v1 = vpop.f32.mrb[97].mxu0 }
0x10e2   : > { %v3949_v3 = vpop.f32.mrb[98].mxu0  ;;  %v9833_v1 = vld [vmem:[%s10308_s29 + $0xe0] sm:$0xff]  }
0x10e3   : > { %v10645_v6 = vpack.c.bf16 %v3949_v3, %v3946_v61  ;;  %v9505_v8 = vpop.f32.mrb[99].mxu0  ;;  %v9832_v61 = vld [vmem:[%s10308_s29 + $0x18] sm:$0xff]   ;;  %v9834_v3 = vld [vmem:[%s10308_s29 + $0x10] sm:$0xff]  }
0x10e4   : > { %v9835_v8 = vld [vmem:[%s10308_s29 + $0xe8] sm:$0xff]  }
0x10e5   : > { %4022 = vrot.lane.b32.xlu0 %v10645_v6, %s10195_s27 }
0x1157   : > { %v4023_v12 = vpop.permute.xlu0 %4022 }
0x1158   : > { %9519 = vmatmul.mubr.msk.bf16.vlgmr.msra.gmra.mrb[100].mxu0 %vm522_vm1, %v4023_v12 }
0x1159   : > { %9531 = vmatpush3.bf16.msra.mxu0 %v9821_v9  ;;  %9534 = vmatprep.mubr.msk.bf16.mxu0 %vm10194_vm0, %v10193_v0  ;;  %v9836_v9 = vld [vmem:[%s10308_s29 + $0x18] sm:$0xff]  }
0x115a   : > { %9532 = vmatprep.subr.bf16.mxu0 %v10193_v0 }
0x115d   : > { %9533 = vmatpush3.bf16.msra.mxu0 %v9822_v14 }
0x115e   : > { %9546 = vmatprep.subr.bf16.mxu0 %v10193_v0 }
0x1160   : > { %9535 = vmatmul.mubr.msk.bf16.vlgmr.msra.gmra.mrb[104].mxu0 %vm522_vm1, %v9823_v15 }
0x1161   : > { %9550 = vmatprep.mubr.msk.bf16.mxu0 %vm10194_vm0, %v10193_v0  ;;  %9547 = vmatpush3.bf16.msra.mxu0 %v9824_v17 }
0x1162   : > { %9548 = vmatprep.subr.bf16.mxu0 %v10193_v0 }
0x1165   : > { %9549 = vmatpush3.bf16.msra.mxu0 %v9826_v20 }
0x1166   : > { %9562 = vmatprep.subr.bf16.mxu0 %v10193_v0 }
0x122b   : > { %v10669_v28 = vpop.f32.mrb[100].mxu0 }
0x122c   : > { %v9520_v32 = vpop.f32.mrb[101].mxu0 }
0x122d   : > { %v10671_v33 = vpop.f32.mrb[102].mxu0 }
0x122e   : > { %v9521_v34 = vpop.f32.mrb[103].mxu0 }
0x1233   : > { %v4228_v35 = vpop.f32.mrb[104].mxu0 }
0x1234   : > { %v9536_v39 = vpop.f32.mrb[105].mxu0 }
0x1235   : > { %v4231_v44 = vpop.f32.mrb[106].mxu0 }
0x1236   : > { %v10674_v46 = vpack.c.bf16 %v4231_v44, %v4228_v35  ;;  %v9537_v47 = vpop.f32.mrb[107].mxu0 }
0x1238   : > { %4304 = vrot.lane.b32.xlu1 %v10674_v46, %s10195_s27 }
0x123c   : > { %709 = vrot.lane.b32.xlu1 %v10331_v11, %s10196_s15  ;;  %v9828_v11 = vld [vmem:[%s4448_s30] sm:$0xff]  }
0x1240   : > { %1274 = vrot.lane.b32.xlu1 %v10395_v45, %s10196_s15 }
0x1244   : > { %1838 = vrot.lane.b32.xlu1 %v10445_v13, %s10196_s15 }
0x1248   : > { %2402 = vrot.lane.b32.xlu1 %v10495_v49, %s10196_s15 }
0x124c   : > { %2966 = vrot.lane.b32.xlu1 %v10545_v27, %s10196_s15 }
0x1250   : > { %3530 = vrot.lane.b32.xlu1 %v10595_v10, %s10196_s15 }
0x1254   : > { %4094 = vrot.lane.b32.xlu1 %v10645_v6, %s10196_s15 }
0x12aa   : > { %v4305_v48 = vpop.permute.xlu1 %4304 }
0x12ab   : > { %9551 = vmatmul.mubr.msk.bf16.vlgmr.msra.gmra.mrb[108].mxu0 %vm522_vm1, %v4305_v48 }
0x12ac   : > { %9563 = vmatpush3.bf16.msra.mxu0 %v9828_v11  ;;  %9566 = vmatprep.mubr.msk.bf16.mxu0 %vm10194_vm0, %v10193_v0 }
0x12ad   : > { %9564 = vmatprep.subr.bf16.mxu0 %v10193_v0 }
0x12ae   : > { %v710_v56 = vpop.permute.xlu1 %709 }
0x12af   : > { %9143 = vmatmul.mubr.msk.bf16.vlgmr.msra.gmra.mrb[4].mxu1 %vm522_vm1, %v710_v56 }
0x12b0   : > { %9155 = vmatpush3.bf16.msra.mxu1 %v9829_v51  ;;  %9565 = vmatpush3.bf16.msra.mxu0 %v9830_v52 }
0x12b1   : > { %9156 = vmatprep.subr.bf16.mxu1 %v10193_v0  ;;  %9158 = vmatprep.mubr.msk.bf16.mxu1 %vm10194_vm0, %v10193_v0 }
0x12b2   : > { %9578 = vmatprep.subr.bf16.mxu0 %v10193_v0 }
0x12b3   : > { %9567 = vmatmul.mubr.msk.bf16.vlgmr.msra.gmra.mrb[112].mxu0 %vm522_vm1, %v9831_v58  ;;  %v9838_v58 = vld [vmem:[%s10308_s29 + $0x20] sm:$0xff]  }
0x12b4   : > { %9157 = vmatpush3.bf16.msra.mxu1 %v9832_v61  ;;  %9582 = vmatprep.mubr.msk.bf16.mxu0 %vm10194_vm0, %v10193_v0  ;;  %v9839_v61 = vld [vmem:[%s10722_s24 + $0x8] sm:$0xff]  }
0x12b5   : > { %9170 = vmatprep.subr.bf16.mxu1 %v10193_v0  ;;  %9579 = vmatpush3.bf16.msra.mxu0 %v9833_v1 }
0x12b6   : > { %9580 = vmatprep.subr.bf16.mxu0 %v10193_v0 }
0x12b7   : > { %9159 = vmatmul.mubr.msk.bf16.vlgmr.msra.gmra.mrb[8].mxu1 %vm522_vm1, %v10370_v30 }
0x12b8   : > { %9174 = vmatprep.mubr.msk.bf16.mxu1 %vm10194_vm0, %v10193_v0  ;;  %9171 = vmatpush3.bf16.msra.mxu1 %v9834_v3  ;;  %v9840_v3 = vld [vmem:[%s10303_s26 + $0x78] sm:$0xff]   ;;  %s10198_s26 = smov 32  }
0x12b9   : > { %9172 = vmatprep.subr.bf16.mxu1 %v10193_v0  ;;  %9581 = vmatpush3.bf16.msra.mxu0 %v9835_v8  ;;  %v9841_v8 = vld [vmem:[%s10308_s29 + $0x28] sm:$0xff]  }
0x12ba   : > { %9594 = vmatprep.subr.bf16.mxu0 %v10193_v0 }
0x12bc   : > { %9173 = vmatpush3.bf16.msra.mxu1 %v9836_v9  ;;  %v9842_v9 = vld [vmem:[%s10308_s29 + $0x20] sm:$0xff]  }
0x12bd   : > { %9186 = vmatprep.subr.bf16.mxu1 %v10193_v0 }
0x137e   : > { %v10725_v12 = vpop.f32.mrb[108].mxu0 }
0x137f   : > { %v9552_v14 = vpop.f32.mrb[109].mxu0 }
0x1380   : > { %v10727_v15 = vpop.f32.mrb[110].mxu0  ;;  %v9843_v14 = vld [vmem:[%s10308_s29 + $0x28] sm:$0xff]  }
0x1381   : > { %v9553_v17 = vpop.f32.mrb[111].mxu0 }
0x1382   : > { %v10730_v19 = vpop.f32.mrb[4].mxu1  ;;  %v9844_v17 = vld [vmem:[%s10308_s29 + $0x30] sm:$0xff]  }
0x1383   : > { %v9144_v20 = vpop.f32.mrb[5].mxu1 }
0x1384   : > { %v10732_v22 = vpop.f32.mrb[6].mxu1  ;;  %v1275_v20 = vpop.permute.xlu1 %1274 }
0x1385   : > { %v9145_v32 = vpop.f32.mrb[7].mxu1 }
0x1386   : > { %v4510_v34 = vpop.f32.mrb[112].mxu0  ;;  %v9845_v32 = vld [vmem:[%s10308_s29 + $0x38] sm:$0xff]  }
0x1387   : > { %v9568_v35 = vpop.f32.mrb[113].mxu0 }
0x1388   : > { %v4513_v39 = vpop.f32.mrb[114].mxu0  ;;  %v9848_v35 = vld [vmem:[%s10308_s29 + $0x40] sm:$0xff]  }
0x1389   : > { %v10734_v44 = vpack.c.bf16 %v4513_v39, %v4510_v34  ;;  %v9569_v47 = vpop.f32.mrb[115].mxu0  ;;  %v9847_v34 = vld [vmem:[%s10308_s29 + $0x38] sm:$0xff]  }
0x138a   : > { %v906_v11 = vpop.f32.mrb[8].mxu1  ;;  %v9849_v47 = vld [vmem:[%s10308_s29 + $0x48] sm:$0xff]  }
0x138b   : > { %913 = vst.msk [vmem:[%s10352_s17 + $0x10] sm:$0xff] %vm628_vm2, %v906_v11  ;;  %v9160_v48 = vpop.f32.mrb[9].mxu1  ;;  %4658 = vrot.lane.b32.xlu1 %v10734_v44, %s10196_s15  ;;  %4586 = vrot.lane.b32.xlu0 %v10734_v44, %s10195_s27  ;;  %v9851_v11 = vld [vmem:[%s10308_s29 + $0x48] sm:$0xff]  }
0x138c   : > { %v909_v51 = vpop.f32.mrb[10].mxu1  ;;  %v9852_v48 = vld [vmem:[%s10308_s29 + $0x50] sm:$0xff]  }
0x138d   : > { %914 = vst.msk [vmem:[%s10352_s17 + $0x18] sm:$0xff] %vm628_vm2, %v909_v51  ;;  %v9161_v52 = vpop.f32.mrb[11].mxu1  ;;  %v1839_v51 = vpop.permute.xlu1 %1838 }
0x138e   : > { %v9853_v52 = vld [vmem:[%s10308_s29 + $0x58] sm:$0xff]  }
0x138f   : > { %992 = vrot.lane.b32.xlu0 %v10370_v30, %s10196_s15  ;;  %v9837_v30 = vld [vmem:[%s10722_s24] sm:$0xff]   ;;  %s7895_s24 = sshll.u32 %s12514_s23, 3 }
0x1390   : > { %s491_s25 = scalar_lea.vmem %s12510_s14, %s7895_s24 }
0x1393   : > { %1556 = vrot.lane.b32.xlu0 %v10420_v60, %s10196_s15 }
0x1397   : > { %2120 = vrot.lane.b32.xlu0 %v10470_v31, %s10196_s15 }
0x139b   : > { %2684 = vrot.lane.b32.xlu0 %v10520_v4, %s10196_s15 }
0x139f   : > { %3248 = vrot.lane.b32.xlu0 %v10570_v50, %s10196_s15 }
0x13a3   : > { %3812 = vrot.lane.b32.xlu0 %v10620_v36, %s10196_s15 }
0x13a7   : > { %4376 = vrot.lane.b32.xlu0 %v10674_v46, %s10196_s15 }
0x13fd   : > { %v4587_v56 = vpop.permute.xlu0 %4586 }
0x13fe   : > { %9583 = vmatmul.mubr.msk.bf16.vlgmr.msra.gmra.mrb[116].mxu0 %vm522_vm1, %v4587_v56  ;;  %v9856_v56 = vld [vmem:[%s10308_s29 + $0x60] sm:$0xff]  }
0x13ff   : > { %9595 = vmatpush3.bf16.msra.mxu0 %v9837_v30  ;;  %9598 = vmatprep.mubr.msk.bf16.mxu0 %vm10194_vm0, %v10193_v0  ;;  %v9855_v30 = vld [vmem:[%s10308_s29 + $0x58] sm:$0xff]  }
0x1400   : > { %9596 = vmatprep.subr.bf16.mxu0 %v10193_v0 }
0x1401   : > { %v993_v1 = vpop.permute.xlu0 %992 }
0x1402   : > { %9175 = vmatmul.mubr.msk.bf16.vlgmr.msra.gmra.mrb[12].mxu1 %vm522_vm1, %v993_v1  ;;  %v9859_v1 = vld [vmem:[%s10308_s29 + $0x68] sm:$0xff]  }
0x1403   : > { %9187 = vmatpush3.bf16.msra.mxu1 %v9838_v58  ;;  %9597 = vmatpush3.bf16.msra.mxu0 %v9839_v61  ;;  %v9857_v61 = vld [vmem:[%s10308_s29 + $0x68] sm:$0xff]  }
0x1404   : > { %9188 = vmatprep.subr.bf16.mxu1 %v10193_v0  ;;  %9190 = vmatprep.mubr.msk.bf16.mxu1 %vm10194_vm0, %v10193_v0 }
0x1405   : > { %9610 = vmatprep.subr.bf16.mxu0 %v10193_v0  ;;  %v1557_v39 = vpop.permute.xlu0 %1556 }
0x1406   : > { %9599 = vmatmul.mubr.msk.bf16.vlgmr.msra.gmra.mrb[120].mxu0 %vm522_vm1, %v9840_v3  ;;  %v9860_v3 = vld [vmem:[%s10308_s29 + $0x70] sm:$0xff]  }
0x1407   : > { %9189 = vmatpush3.bf16.msra.mxu1 %v9841_v8  ;;  %9614 = vmatprep.mubr.msk.bf16.mxu0 %vm10194_vm0, %v10193_v0  ;;  %v2403_v8 = vpop.permute.xlu1 %2402 }
0x1408   : > { %9202 = vmatprep.subr.bf16.mxu1 %v10193_v0 }
0x1409   : > { %v2121_v58 = vpop.permute.xlu0 %2120 }
0x140a   : > { %9191 = vmatmul.mubr.msk.bf16.vlgmr.msra.gmra.mrb[16].mxu1 %vm522_vm1, %v10395_v45  ;;  %v9846_v45 = vld [vmem:[%s10308_s29 + $0x30] sm:$0xff]  }
0x140b   : > { %9203 = vmatpush3.bf16.msra.mxu1 %v9842_v9  ;;  %9206 = vmatprep.mubr.msk.bf16.mxu1 %vm10194_vm0, %v10193_v0  ;;  %v9861_v9 = vld [vmem:[%s10308_s29 + $0x78] sm:$0xff]  }
0x140c   : > { %9204 = vmatprep.subr.bf16.mxu1 %v10193_v0 }
0x140f   : > { %9205 = vmatpush3.bf16.msra.mxu1 %v9843_v14  ;;  %v9863_v14 = vld [vmem:[%s10308_s29 + $0x78] sm:$0xff]  }
0x1410   : > { %9218 = vmatprep.subr.bf16.mxu1 %v10193_v0 }
0x1412   : > { %9207 = vmatmul.mubr.msk.bf16.vlgmr.msra.gmra.mrb[20].mxu1 %vm522_vm1, %v1275_v20  ;;  %v2685_v20 = vpop.permute.xlu0 %2684 }
0x1413   : > { %9219 = vmatpush3.bf16.msra.mxu1 %v9844_v17  ;;  %9222 = vmatprep.mubr.msk.bf16.mxu1 %vm10194_vm0, %v10193_v0  ;;  %v9864_v17 = vld [vmem:[%s10308_s29 + $0x80] sm:$0xff]  }
0x1414   : > { %9220 = vmatprep.subr.bf16.mxu1 %v10193_v0 }
0x1417   : > { %9221 = vmatpush3.bf16.msra.mxu1 %v9845_v32  ;;  %v9865_v32 = vld [vmem:[%s10308_s29 + $0x88] sm:$0xff]  }
0x1418   : > { %9234 = vmatprep.subr.bf16.mxu1 %v10193_v0 }
0x141a   : > { %9223 = vmatmul.mubr.msk.bf16.vlgmr.msra.gmra.mrb[24].mxu1 %vm522_vm1, %v10420_v60  ;;  %v9850_v60 = vld [vmem:[%s10308_s29 + $0x40] sm:$0xff]  }
0x141b   : > { %9235 = vmatpush3.bf16.msra.mxu1 %v9846_v45  ;;  %9238 = vmatprep.mubr.msk.bf16.mxu1 %vm10194_vm0, %v10193_v0  ;;  %v9867_v45 = vld [vmem:[%s10308_s29 + $0x88] sm:$0xff]  }
0x141c   : > { %9236 = vmatprep.subr.bf16.mxu1 %v10193_v0 }
0x141f   : > { %9237 = vmatpush3.bf16.msra.mxu1 %v9847_v34  ;;  %v9868_v34 = vld [vmem:[%s10308_s29 + $0x90] sm:$0xff]  }
0x1420   : > { %9250 = vmatprep.subr.bf16.mxu1 %v10193_v0 }
0x1422   : > { %9239 = vmatmul.mubr.msk.bf16.vlgmr.msra.gmra.mrb[28].mxu1 %vm522_vm1, %v1557_v39  ;;  %v9869_v39 = vld [vmem:[%s10308_s29 + $0x98] sm:$0xff]  }
0x1423   : > { %9251 = vmatpush3.bf16.msra.mxu1 %v9848_v35  ;;  %9254 = vmatprep.mubr.msk.bf16.mxu1 %vm10194_vm0, %v10193_v0  ;;  %v2967_v35 = vpop.permute.xlu1 %2966 }
0x1424   : > { %9252 = vmatprep.subr.bf16.mxu1 %v10193_v0 }
0x1427   : > { %9253 = vmatpush3.bf16.msra.mxu1 %v9849_v47  ;;  %v9871_v47 = vld [vmem:[%s10308_s29 + $0x98] sm:$0xff]  }
0x1428   : > { %9266 = vmatprep.subr.bf16.mxu1 %v10193_v0 }
0x142a   : > { %9255 = vmatmul.mubr.msk.bf16.vlgmr.msra.gmra.mrb[32].mxu1 %vm522_vm1, %v10445_v13  ;;  %v9854_v13 = vld [vmem:[%s10308_s29 + $0x50] sm:$0xff]  }
0x142b   : > { %9267 = vmatpush3.bf16.msra.mxu1 %v9850_v60  ;;  %9270 = vmatprep.mubr.msk.bf16.mxu1 %vm10194_vm0, %v10193_v0  ;;  %v9872_v60 = vld [vmem:[%s10308_s29 + $0xa0] sm:$0xff]  }
0x142c   : > { %9268 = vmatprep.subr.bf16.mxu1 %v10193_v0 }
0x142f   : > { %9269 = vmatpush3.bf16.msra.mxu1 %v9851_v11  ;;  %v3249_v11 = vpop.permute.xlu0 %3248 }
0x1430   : > { %9282 = vmatprep.subr.bf16.mxu1 %v10193_v0 }
0x1432   : > { %9271 = vmatmul.mubr.msk.bf16.vlgmr.msra.gmra.mrb[36].mxu1 %vm522_vm1, %v1839_v51  ;;  %v9875_v51 = vld [vmem:[%s10308_s29 + $0xa8] sm:$0xff]  }
0x1433   : > { %9283 = vmatpush3.bf16.msra.mxu1 %v9852_v48  ;;  %9286 = vmatprep.mubr.msk.bf16.mxu1 %vm10194_vm0, %v10193_v0  ;;  %v9873_v48 = vld [vmem:[%s10308_s29 + $0xa8] sm:$0xff]  }
0x1434   : > { %9284 = vmatprep.subr.bf16.mxu1 %v10193_v0 }
0x1437   : > { %9285 = vmatpush3.bf16.msra.mxu1 %v9853_v52  ;;  %v9876_v52 = vld [vmem:[%s10308_s29 + $0xb0] sm:$0xff]  }
0x1438   : > { %9298 = vmatprep.subr.bf16.mxu1 %v10193_v0 }
0x143a   : > { %9287 = vmatmul.mubr.msk.bf16.vlgmr.msra.gmra.mrb[40].mxu1 %vm522_vm1, %v10470_v31  ;;  %v9858_v31 = vld [vmem:[%s10308_s29 + $0x60] sm:$0xff]  }
0x143b   : > { %9299 = vmatpush3.bf16.msra.mxu1 %v9854_v13  ;;  %9302 = vmatprep.mubr.msk.bf16.mxu1 %vm10194_vm0, %v10193_v0  ;;  %v3531_v13 = vpop.permute.xlu1 %3530 }
0x143c   : > { %9300 = vmatprep.subr.bf16.mxu1 %v10193_v0 }
0x143f   : > { %9301 = vmatpush3.bf16.msra.mxu1 %v9855_v30  ;;  %v9877_v30 = vld [vmem:[%s10308_s29 + $0xb8] sm:$0xff]  }
0x1440   : > { %9314 = vmatprep.subr.bf16.mxu1 %v10193_v0 }
0x1442   : > { %9303 = vmatmul.mubr.msk.bf16.vlgmr.msra.gmra.mrb[44].mxu1 %vm522_vm1, %v2121_v58  ;;  %v9880_v58 = vld [vmem:[%s10308_s29 + $0xc0] sm:$0xff]  }
0x1443   : > { %9315 = vmatpush3.bf16.msra.mxu1 %v9856_v56  ;;  %9318 = vmatprep.mubr.msk.bf16.mxu1 %vm10194_vm0, %v10193_v0  ;;  %v9879_v56 = vld [vmem:[%s10308_s29 + $0xb8] sm:$0xff]  }
0x1444   : > { %9316 = vmatprep.subr.bf16.mxu1 %v10193_v0 }
0x1447   : > { %9317 = vmatpush3.bf16.msra.mxu1 %v9857_v61  ;;  %v3813_v61 = vpop.permute.xlu0 %3812 }
0x1448   : > { %9330 = vmatprep.subr.bf16.mxu1 %v10193_v0 }
0x144a   : > { %9319 = vmatmul.mubr.msk.bf16.vlgmr.msra.gmra.mrb[48].mxu1 %vm522_vm1, %v10495_v49  ;;  %v9862_v49 = vld [vmem:[%s10308_s29 + $0x70] sm:$0xff]  }
0x144b   : > { %9331 = vmatpush3.bf16.msra.mxu1 %v9858_v31  ;;  %9334 = vmatprep.mubr.msk.bf16.mxu1 %vm10194_vm0, %v10193_v0  ;;  %v9881_v31 = vld [vmem:[%s10308_s29 + $0xc8] sm:$0xff]  }
0x144c   : > { %9332 = vmatprep.subr.bf16.mxu1 %v10193_v0 }
0x144f   : > { %9333 = vmatpush3.bf16.msra.mxu1 %v9859_v1  ;;  %v9883_v1 = vld [vmem:[%s10308_s29 + $0xc8] sm:$0xff]  }
0x1450   : > { %9346 = vmatprep.subr.bf16.mxu1 %v10193_v0 }
0x1452   : > { %9335 = vmatmul.mubr.msk.bf16.vlgmr.msra.gmra.mrb[52].mxu1 %vm522_vm1, %v2403_v8  ;;  %v4095_v8 = vpop.permute.xlu1 %4094 }
0x1453   : > { %9347 = vmatpush3.bf16.msra.mxu1 %v9860_v3  ;;  %9350 = vmatprep.mubr.msk.bf16.mxu1 %vm10194_vm0, %v10193_v0  ;;  %v9884_v3 = vld [vmem:[%s10308_s29 + $0xd0] sm:$0xff]  }
0x1454   : > { %9348 = vmatprep.subr.bf16.mxu1 %v10193_v0 }
0x1457   : > { %9349 = vmatpush3.bf16.msra.mxu1 %v9861_v9  ;;  %v9885_v9 = vld [vmem:[%s10308_s29 + $0xd8] sm:$0xff]  }
0x1458   : > { %9362 = vmatprep.subr.bf16.mxu1 %v10193_v0 }
0x145a   : > { %9351 = vmatmul.mubr.msk.bf16.vlgmr.msra.gmra.mrb[56].mxu1 %vm522_vm1, %v10520_v4  ;;  %v9866_v4 = vld [vmem:[%s10308_s29 + $0x80] sm:$0xff]  }
0x145b   : > { %9363 = vmatpush3.bf16.msra.mxu1 %v9862_v49  ;;  %9366 = vmatprep.mubr.msk.bf16.mxu1 %vm10194_vm0, %v10193_v0  ;;  %v9887_v49 = vld [vmem:[%s10308_s29 + $0xd8] sm:$0xff]  }
0x145c   : > { %9364 = vmatprep.subr.bf16.mxu1 %v10193_v0 }
0x145f   : > { %9365 = vmatpush3.bf16.msra.mxu1 %v9863_v14  ;;  %v9888_v14 = vld [vmem:[%s10308_s29 + $0xe0] sm:$0xff]  }
0x1460   : > { %9378 = vmatprep.subr.bf16.mxu1 %v10193_v0 }
0x1462   : > { %9367 = vmatmul.mubr.msk.bf16.vlgmr.msra.gmra.mrb[60].mxu1 %vm522_vm1, %v2685_v20  ;;  %v9889_v20 = vld [vmem:[%s10308_s29 + $0xe8] sm:$0xff]  }
0x1463   : > { %9379 = vmatpush3.bf16.msra.mxu1 %v9864_v17  ;;  %9382 = vmatprep.mubr.msk.bf16.mxu1 %vm10194_vm0, %v10193_v0  ;;  %v4377_v17 = vpop.permute.xlu0 %4376 }
0x1464   : > { %9380 = vmatprep.subr.bf16.mxu1 %v10193_v0 }
0x1467   : > { %9381 = vmatpush3.bf16.msra.mxu1 %v9865_v32  ;;  %v9894_v32 = vld [vmem:[%s10308_s29 + $0xf0] sm:$0xff]  }
0x1468   : > { %9394 = vmatprep.subr.bf16.mxu1 %v10193_v0  ;;  %9611 = vmatpush3.bf16.msra.mxu0 %v9894_v32 }
0x1469   : > { %9612 = vmatprep.subr.bf16.mxu0 %v10193_v0 }
0x146a   : > { %9383 = vmatmul.mubr.msk.bf16.vlgmr.msra.gmra.mrb[64].mxu1 %vm522_vm1, %v10545_v27  ;;  %v9870_v27 = vld [vmem:[%s10308_s29 + $0x90] sm:$0xff]  }
0x146b   : > { %9395 = vmatpush3.bf16.msra.mxu1 %v9866_v4  ;;  %9398 = vmatprep.mubr.msk.bf16.mxu1 %vm10194_vm0, %v10193_v0  ;;  %v9891_v4 = vld [vmem:[%s10308_s29 + $0xe8] sm:$0xff]  }
0x146c   : > { %9396 = vmatprep.subr.bf16.mxu1 %v10193_v0 }
0x146f   : > { %9397 = vmatpush3.bf16.msra.mxu1 %v9867_v45  ;;  %v9896_v45 = vld [vmem:[%s10308_s29 + $0xf8] sm:$0xff]  }
0x1470   : > { %9410 = vmatprep.subr.bf16.mxu1 %v10193_v0  ;;  %9613 = vmatpush3.bf16.msra.mxu0 %v9896_v45 }
0x1472   : > { %9399 = vmatmul.mubr.msk.bf16.vlgmr.msra.gmra.mrb[68].mxu1 %vm522_vm1, %v2967_v35  ;;  %v4659_v35 = vpop.permute.xlu1 %4658 }
0x1473   : > { %9411 = vmatpush3.bf16.msra.mxu1 %v9868_v34  ;;  %9414 = vmatprep.mubr.msk.bf16.mxu1 %vm10194_vm0, %v10193_v0  ;;  %v9892_v34 = vld [vmem:[%s10308_s29 + $0xf0] sm:$0xff]  }
0x1474   : > { %9412 = vmatprep.subr.bf16.mxu1 %v10193_v0 }
0x1477   : > { %9413 = vmatpush3.bf16.msra.mxu1 %v9869_v39 }
0x1478   : > { %9426 = vmatprep.subr.bf16.mxu1 %v10193_v0 }
0x147a   : > { %9415 = vmatmul.mubr.msk.bf16.vlgmr.msra.gmra.mrb[72].mxu1 %vm522_vm1, %v10570_v50  ;;  %v9874_v50 = vld [vmem:[%s10308_s29 + $0xa0] sm:$0xff]  }
0x147b   : > { %9427 = vmatpush3.bf16.msra.mxu1 %v9870_v27  ;;  %9430 = vmatprep.mubr.msk.bf16.mxu1 %vm10194_vm0, %v10193_v0 }
0x147c   : > { %9428 = vmatprep.subr.bf16.mxu1 %v10193_v0 }
0x147f   : > { %9429 = vmatpush3.bf16.msra.mxu1 %v9871_v47  ;;  %v9893_v47 = vld [vmem:[%s10308_s29 + $0xf8] sm:$0xff]  }
0x1480   : > { %9442 = vmatprep.subr.bf16.mxu1 %v10193_v0 }
0x1482   : > { %9431 = vmatmul.mubr.msk.bf16.vlgmr.msra.gmra.mrb[76].mxu1 %vm522_vm1, %v3249_v11 }
0x1483   : > { %9443 = vmatpush3.bf16.msra.mxu1 %v9872_v60  ;;  %9446 = vmatprep.mubr.msk.bf16.mxu1 %vm10194_vm0, %v10193_v0 }
0x1484   : > { %9444 = vmatprep.subr.bf16.mxu1 %v10193_v0 }
0x1487   : > { %9445 = vmatpush3.bf16.msra.mxu1 %v9873_v48 }
0x1488   : > { %9458 = vmatprep.subr.bf16.mxu1 %v10193_v0 }
0x148a   : > { %9447 = vmatmul.mubr.msk.bf16.vlgmr.msra.gmra.mrb[80].mxu1 %vm522_vm1, %v10595_v10  ;;  %v9878_v10 = vld [vmem:[%s10308_s29 + $0xb0] sm:$0xff]  }
0x148b   : > { %9459 = vmatpush3.bf16.msra.mxu1 %v9874_v50  ;;  %9462 = vmatprep.mubr.msk.bf16.mxu1 %vm10194_vm0, %v10193_v0 }
0x148c   : > { %9460 = vmatprep.subr.bf16.mxu1 %v10193_v0 }
0x148f   : > { %9461 = vmatpush3.bf16.msra.mxu1 %v9875_v51 }
0x1490   : > { %9474 = vmatprep.subr.bf16.mxu1 %v10193_v0 }
0x1492   : > { %9463 = vmatmul.mubr.msk.bf16.vlgmr.msra.gmra.mrb[84].mxu1 %vm522_vm1, %v3531_v13 }
0x1493   : > { %9475 = vmatpush3.bf16.msra.mxu1 %v9876_v52  ;;  %9478 = vmatprep.mubr.msk.bf16.mxu1 %vm10194_vm0, %v10193_v0 }
0x1494   : > { %9476 = vmatprep.subr.bf16.mxu1 %v10193_v0 }
0x1497   : > { %9477 = vmatpush3.bf16.msra.mxu1 %v9877_v30 }
0x1498   : > { %9490 = vmatprep.subr.bf16.mxu1 %v10193_v0 }
0x149a   : > { %9479 = vmatmul.mubr.msk.bf16.vlgmr.msra.gmra.mrb[88].mxu1 %vm522_vm1, %v10620_v36  ;;  %v9882_v36 = vld [vmem:[%s10308_s29 + $0xc0] sm:$0xff]  }
0x149b   : > { %9491 = vmatpush3.bf16.msra.mxu1 %v9878_v10  ;;  %9494 = vmatprep.mubr.msk.bf16.mxu1 %vm10194_vm0, %v10193_v0 }
0x149c   : > { %9492 = vmatprep.subr.bf16.mxu1 %v10193_v0 }
0x149f   : > { %9493 = vmatpush3.bf16.msra.mxu1 %v9879_v56 }
0x14a0   : > { %9506 = vmatprep.subr.bf16.mxu1 %v10193_v0 }
0x14a2   : > { %9495 = vmatmul.mubr.msk.bf16.vlgmr.msra.gmra.mrb[92].mxu1 %vm522_vm1, %v3813_v61 }
0x14a3   : > { %9507 = vmatpush3.bf16.msra.mxu1 %v9880_v58  ;;  %9510 = vmatprep.mubr.msk.bf16.mxu1 %vm10194_vm0, %v10193_v0  ;;  %v9895_v58 = vld [vmem:[%s10308_s29 + $0xf0] sm:$0xff]  }
0x14a4   : > { %9508 = vmatprep.subr.bf16.mxu1 %v10193_v0 }
0x14a7   : > { %9509 = vmatpush3.bf16.msra.mxu1 %v9881_v31 }
0x14a8   : > { %9522 = vmatprep.subr.bf16.mxu1 %v10193_v0 }
0x14aa   : > { %9511 = vmatmul.mubr.msk.bf16.vlgmr.msra.gmra.mrb[96].mxu1 %vm522_vm1, %v10645_v6  ;;  %v9886_v6 = vld [vmem:[%s10308_s29 + $0xd0] sm:$0xff]  }
0x14ab   : > { %9523 = vmatpush3.bf16.msra.mxu1 %v9882_v36  ;;  %9526 = vmatprep.mubr.msk.bf16.mxu1 %vm10194_vm0, %v10193_v0 }
0x14ac   : > { %9524 = vmatprep.subr.bf16.mxu1 %v10193_v0 }
0x14af   : > { %9525 = vmatpush3.bf16.msra.mxu1 %v9883_v1 }
0x14b0   : > { %9538 = vmatprep.subr.bf16.mxu1 %v10193_v0 }
0x14b2   : > { %9527 = vmatmul.mubr.msk.bf16.vlgmr.msra.gmra.mrb[100].mxu1 %vm522_vm1, %v4095_v8 }
0x14b3   : > { %9539 = vmatpush3.bf16.msra.mxu1 %v9884_v3  ;;  %9542 = vmatprep.mubr.msk.bf16.mxu1 %vm10194_vm0, %v10193_v0  ;;  %v9897_v3 = vld [vmem:[%s10308_s29 + $0xf8] sm:$0xff]  }
0x14b4   : > { %9540 = vmatprep.subr.bf16.mxu1 %v10193_v0 }
0x14b7   : > { %9541 = vmatpush3.bf16.msra.mxu1 %v9885_v9 }
0x14b8   : > { %9554 = vmatprep.subr.bf16.mxu1 %v10193_v0 }
0x14ba   : > { %9543 = vmatmul.mubr.msk.bf16.vlgmr.msra.gmra.mrb[104].mxu1 %vm522_vm1, %v10674_v46  ;;  %v9890_v46 = vld [vmem:[%s10308_s29 + $0xe0] sm:$0xff]  }
0x14bb   : > { %9555 = vmatpush3.bf16.msra.mxu1 %v9886_v6  ;;  %9558 = vmatprep.mubr.msk.bf16.mxu1 %vm10194_vm0, %v10193_v0 }
0x14bc   : > { %9556 = vmatprep.subr.bf16.mxu1 %v10193_v0 }
0x14bf   : > { %9557 = vmatpush3.bf16.msra.mxu1 %v9887_v49 }
0x14c0   : > { %9570 = vmatprep.subr.bf16.mxu1 %v10193_v0 }
0x14c2   : > { %9559 = vmatmul.mubr.msk.bf16.vlgmr.msra.gmra.mrb[108].mxu1 %vm522_vm1, %v4377_v17 }
0x14c3   : > { %9571 = vmatpush3.bf16.msra.mxu1 %v9888_v14  ;;  %9574 = vmatprep.mubr.msk.bf16.mxu1 %vm10194_vm0, %v10193_v0 }
0x14c4   : > { %9572 = vmatprep.subr.bf16.mxu1 %v10193_v0 }
0x14c7   : > { %9573 = vmatpush3.bf16.msra.mxu1 %v9889_v20 }
0x14c8   : > { %9586 = vmatprep.subr.bf16.mxu1 %v10193_v0 }
0x14ca   : > { %9575 = vmatmul.mubr.msk.bf16.vlgmr.msra.gmra.mrb[112].mxu1 %vm522_vm1, %v10734_v44 }
0x14cb   : > { %9587 = vmatpush3.bf16.msra.mxu1 %v9890_v46  ;;  %9590 = vmatprep.mubr.msk.bf16.mxu1 %vm10194_vm0, %v10193_v0 }
0x14cc   : > { %9588 = vmatprep.subr.bf16.mxu1 %v10193_v0 }
0x14cf   : > { %9589 = vmatpush3.bf16.msra.mxu1 %v9891_v4 }
0x14d0   : > { %9602 = vmatprep.subr.bf16.mxu1 %v10193_v0 }
0x14d1   : > { %v10968_v39 = vpop.f32.mrb[116].mxu0 }
0x14d2   : > { %v9584_v44 = vpop.f32.mrb[117].mxu0  ;;  %9591 = vmatmul.mubr.msk.bf16.vlgmr.msra.gmra.mrb[116].mxu1 %vm522_vm1, %v4659_v35 }
0x14d3   : > { %v10971_v27 = vpop.f32.mrb[118].mxu0  ;;  %9603 = vmatpush3.bf16.msra.mxu1 %v9892_v34  ;;  %9606 = vmatprep.mubr.msk.bf16.mxu1 %vm10194_vm0, %v10193_v0 }
0x14d4   : > { %v9585_v60 = vpop.f32.mrb[119].mxu0  ;;  %9604 = vmatprep.subr.bf16.mxu1 %v10193_v0 }
0x14d5   : > { %v10977_v11 = vpop.f32.mrb[12].mxu1 }
0x14d6   : > { %v9176_v48 = vpop.f32.mrb[13].mxu1 }
0x14d7   : > { %v10979_v50 = vpop.f32.mrb[14].mxu1  ;;  %9605 = vmatpush3.bf16.msra.mxu1 %v9893_v47 }
0x14d8   : > { %v9177_v51 = vpop.f32.mrb[15].mxu1  ;;  %9618 = vmatprep.subr.bf16.mxu1 %v10193_v0 }
0x14d9   : > { %v4792_v52 = vpop.f32.mrb[120].mxu0 }
0x14da   : > { %v9600_v13 = vpop.f32.mrb[121].mxu0 }
0x14db   : > { %v4795_v30 = vpop.f32.mrb[122].mxu0 }
0x14dc   : > { %v4799_v10 = vpack.c.bf16 %v4795_v30, %v4792_v52  ;;  %v9601_v56 = vpop.f32.mrb[123].mxu0 }
0x14dd   : > { %v1188_v61 = vpop.f32.mrb[16].mxu1 }
0x14de   : > { %1195 = vst.msk [vmem:[%s10352_s17 + $0x20] sm:$0xff] %vm628_vm2, %v1188_v61  ;;  %v9192_v31 = vpop.f32.mrb[17].mxu1  ;;  %4940 = vrot.lane.b32.xlu1 %v4799_v10, %s10196_s15  ;;  %4868 = vrot.lane.b32.xlu0 %v4799_v10, %s10195_s27 }
0x14df   : > { %9607 = vmatmul.mubr.msk.bf16.vlgmr.msra.gmra.mrb[120].mxu1 %vm522_vm1, %v4799_v10  ;;  %v1191_v36 = vpop.f32.mrb[18].mxu1 }
0x14e0   : > { %1196 = vst.msk [vmem:[%s10352_s17 + $0x28] sm:$0xff] %vm628_vm2, %v1191_v36  ;;  %v9193_v1 = vpop.f32.mrb[19].mxu1  ;;  %9619 = vmatpush3.bf16.msra.mxu1 %v9895_v58  ;;  %9622 = vmatprep.mubr.msk.bf16.mxu1 %vm10194_vm0, %v10193_v0 }
0x14e1   : > { %9620 = vmatprep.subr.bf16.mxu1 %v10193_v0 }
0x14e2   : > { %2956 = vrot.lane.b32.xlu1 %v10568_v42, %s10197_s19  ;;  %2954 = vrot.lane.b32.xlu0 %v10566_v37, %s10197_s19 }
0x14e4   : > { %9621 = vmatpush3.bf16.msra.mxu1 %v9897_v3 }
0x14e5   : > { %v10998_v8 = vpop.f32.mrb[20].mxu1 }
0x14e6   : > { %v9208_v9 = vpop.f32.mrb[21].mxu1  ;;  %698 = vrot.lane.b32.xlu1 %v10368_v25, %s10197_s19  ;;  %696 = vrot.lane.b32.xlu0 %v10366_v23, %s10197_s19 }
0x14e7   : > { %v11004_v6 = vpop.f32.mrb[22].mxu1 }
0x14e8   : > { %v9209_v0 = vpop.f32.mrb[23].mxu1 }
0x14ed   : > { %v1470_v49 = vpop.f32.mrb[24].mxu1 }
0x14ee   : > { %1477 = vst.msk [vmem:[%s10352_s17 + $0x30] sm:$0xff] %vm628_vm2, %v1470_v49  ;;  %v9224_v42 = vpop.f32.mrb[25].mxu1 }
0x14ef   : > { %v1473_v37 = vpop.f32.mrb[26].mxu1 }
0x14f0   : > { %1478 = vst.msk [vmem:[%s10352_s17 + $0x38] sm:$0xff] %vm628_vm2, %v1473_v37  ;;  %v9225_v14 = vpop.f32.mrb[27].mxu1 }
0x14f5   : > { %v11010_v17 = vpop.f32.mrb[28].mxu1 }
0x14f6   : > { %v9240_v20 = vpop.f32.mrb[29].mxu1 }
0x14f7   : > { %v11012_v25 = vpop.f32.mrb[30].mxu1 }
0x14f8   : > { %v9241_v23 = vpop.f32.mrb[31].mxu1 }
0x14fd   : > { %v1752_v46 = vpop.f32.mrb[32].mxu1 }
0x14fe   : > { %1759 = vst.msk [vmem:[%s10352_s17 + $0x40] sm:$0xff] %vm628_vm2, %v1752_v46  ;;  %v9256_v32 = vpop.f32.mrb[33].mxu1 }
0x14ff   : > { %v1755_v4 = vpop.f32.mrb[34].mxu1 }
0x1500   : > { %1760 = vst.msk [vmem:[%s10352_s17 + $0x48] sm:$0xff] %vm628_vm2, %v1755_v4  ;;  %v9257_v45 = vpop.f32.mrb[35].mxu1 }
0x1505   : > { %v11018_v34 = vpop.f32.mrb[36].mxu1 }
0x1506   : > { %v9272_v35 = vpop.f32.mrb[37].mxu1 }
0x1507   : > { %v11020_v44 = vpop.f32.mrb[38].mxu1 }
0x1508   : > { %v9273_v47 = vpop.f32.mrb[39].mxu1 }
0x150d   : > { %v2034_v60 = vpop.f32.mrb[40].mxu1 }
0x150e   : > { %2041 = vst.msk [vmem:[%s10352_s17 + $0x50] sm:$0xff] %vm628_vm2, %v2034_v60  ;;  %v9288_v48 = vpop.f32.mrb[41].mxu1 }
0x150f   : > { %v2037_v51 = vpop.f32.mrb[42].mxu1 }
0x1510   : > { %2042 = vst.msk [vmem:[%s10352_s17 + $0x58] sm:$0xff] %vm628_vm2, %v2037_v51  ;;  %v9289_v52 = vpop.f32.mrb[43].mxu1 }
0x1515   : > { %v11026_v13 = vpop.f32.mrb[44].mxu1 }
0x1516   : > { %v9304_v30 = vpop.f32.mrb[45].mxu1 }
0x1517   : > { %v11028_v10 = vpop.f32.mrb[46].mxu1 }
0x1518   : > { %v9305_v56 = vpop.f32.mrb[47].mxu1 }
0x151d   : > { %v2316_v58 = vpop.f32.mrb[48].mxu1 }
0x151e   : > { %2323 = vst.msk [vmem:[%s10352_s17 + $0x60] sm:$0xff] %vm628_vm2, %v2316_v58  ;;  %v9320_v61 = vpop.f32.mrb[49].mxu1 }
0x151f   : > { %v2319_v31 = vpop.f32.mrb[50].mxu1 }
0x1520   : > { %2324 = vst.msk [vmem:[%s10352_s17 + $0x68] sm:$0xff] %vm628_vm2, %v2319_v31  ;;  %v9321_v36 = vpop.f32.mrb[51].mxu1 }
0x1525   : > { %v11034_v1 = vpop.f32.mrb[52].mxu1 }
0x1526   : > { %v9336_v3 = vpop.f32.mrb[53].mxu1 }
0x1527   : > { %v11036_v9 = vpop.f32.mrb[54].mxu1 }
0x1528   : > { %v9337_v0 = vpop.f32.mrb[55].mxu1 }
0x152d   : > { %v2598_v49 = vpop.f32.mrb[56].mxu1 }
0x152e   : > { %2605 = vst.msk [vmem:[%s10352_s17 + $0x70] sm:$0xff] %vm628_vm2, %v2598_v49  ;;  %v9352_v42 = vpop.f32.mrb[57].mxu1 }
0x152f   : > { %v2601_v37 = vpop.f32.mrb[58].mxu1 }
0x1530   : > { %2606 = vst.msk [vmem:[%s10352_s17 + $0x78] sm:$0xff] %vm628_vm2, %v2601_v37  ;;  %v9353_v14 = vpop.f32.mrb[59].mxu1 }
0x1535   : > { %v11042_v20 = vpop.f32.mrb[60].mxu1 }
0x1536   : > { %v9368_v23 = vpop.f32.mrb[61].mxu1 }
0x1537   : > { %v11044_v46 = vpop.f32.mrb[62].mxu1 }
0x1538   : > { %v9369_v32 = vpop.f32.mrb[63].mxu1 }
0x153d   : > { %v2880_v4 = vpop.f32.mrb[64].mxu1 }
0x153e   : > { %2887 = vst.msk [vmem:[%s10352_s17 + $0x80] sm:$0xff] %vm628_vm2, %v2880_v4  ;;  %v9384_v45 = vpop.f32.mrb[65].mxu1 }
0x153f   : > { %v2883_v35 = vpop.f32.mrb[66].mxu1 }
0x1540   : > { %2888 = vst.msk [vmem:[%s10352_s17 + $0x88] sm:$0xff] %vm628_vm2, %v2883_v35  ;;  %v9385_v47 = vpop.f32.mrb[67].mxu1 }
0x1545   : > { %v3017_v60 = vpop.f32.mrb[68].mxu1 }
0x1546   : > { %v9400_v48 = vpop.f32.mrb[69].mxu1  ;;  %3026 = vrot.lane.b32.xlu0 %v3017_v60, %s10198_s26 }
0x1547   : > { %v3020_v51 = vpop.f32.mrb[70].mxu1 }
0x1548   : > { %v9401_v52 = vpop.f32.mrb[71].mxu1  ;;  %3028 = vrot.lane.b32.xlu1 %v3020_v51, %s10198_s26 }
0x154a   : > { %769 = vrot.lane.b32.xlu0 %v10730_v19, %s10198_s26 }
0x154c   : > { %771 = vrot.lane.b32.xlu1 %v10732_v22, %s10198_s26 }
0x154d   : > { %v3162_v30 = vpop.f32.mrb[72].mxu1 }
0x154e   : > { %3169 = vst.msk [vmem:[%s10352_s17 + $0x90] sm:$0xff] %vm628_vm2, %v3162_v30  ;;  %v9416_v56 = vpop.f32.mrb[73].mxu1  ;;  %3236 = vrot.lane.b32.xlu0 %v10591_v63, %s10197_s19 }
0x154f   : > { %v3165_v58 = vpop.f32.mrb[74].mxu1 }
0x1550   : > { %3170 = vst.msk [vmem:[%s10352_s17 + $0x98] sm:$0xff] %vm628_vm2, %v3165_v58  ;;  %v9417_v61 = vpop.f32.mrb[75].mxu1  ;;  %3238 = vrot.lane.b32.xlu1 %v10593_v2, %s10197_s19  ;;  %v4941_v19 = vpop.permute.xlu1 %4940 }
0x1551   : > { %v4869_v31 = vpop.permute.xlu0 %4868  ;;  %9623 = vmatmul.mubr.msk.bf16.vlgmr.msra.gmra.mrb[124].mxu1 %vm522_vm1, %v4941_v19 }
0x1552   : > { %9615 = vmatmul.mubr.msk.bf16.vlgmr.msra.gmra.mrb[124].mxu0 %vm522_vm1, %v4869_v31  ;;  %980 = vrot.lane.b32.xlu0 %v10391_v38, %s10197_s19 }
0x1554   : > { %982 = vrot.lane.b32.xlu1 %v10393_v40, %s10197_s19  ;;  %v2957_v63 = vpop.permute.xlu1 %2956 }
0x1555   : > { %2961 = vst.msk [vmem:[%s10352_s17 + $0x88] sm:$0xff] %vm702_vm3, %v2957_v63  ;;  %v2955_v2 = vpop.permute.xlu0 %2954  ;;  %v3299_v22 = vpop.f32.mrb[76].mxu1 }
0x1556   : > { %2960 = vst.msk [vmem:[%s10352_s17 + $0x80] sm:$0xff] %vm702_vm3, %v2955_v2  ;;  %v9432_v36 = vpop.f32.mrb[77].mxu1  ;;  %3308 = vrot.lane.b32.xlu0 %v3299_v22, %s10198_s26 }
0x1557   : > { %v3302_v3 = vpop.f32.mrb[78].mxu1 }
0x1558   : > { %v9433_v0 = vpop.f32.mrb[79].mxu1  ;;  %3310 = vrot.lane.b32.xlu1 %v3302_v3, %s10198_s26  ;;  %v699_v38 = vpop.permute.xlu1 %698 }
0x1559   : > { %704 = vst.msk [vmem:[%s10352_s17 + $0x8] sm:$0xff] %vm702_vm3, %v699_v38  ;;  %v697_v40 = vpop.permute.xlu0 %696 }
0x155a   : > { %703 = vst.msk [vmem:[%s10352_s17] sm:$0xff] %vm702_vm3, %v697_v40  ;;  %1052 = vrot.lane.b32.xlu0 %v10977_v11, %s10198_s26 }
0x155c   : > { %1054 = vrot.lane.b32.xlu1 %v10979_v50, %s10198_s26 }
0x155d   : > { %v3444_v49 = vpop.f32.mrb[80].mxu1 }
0x155e   : > { %3451 = vst.msk [vmem:[%s10352_s17 + $0xa0] sm:$0xff] %vm628_vm2, %v3444_v49  ;;  %v9448_v42 = vpop.f32.mrb[81].mxu1  ;;  %3518 = vrot.lane.b32.xlu0 %v10616_v26, %s10197_s19 }
0x155f   : > { %v3447_v37 = vpop.f32.mrb[82].mxu1 }
0x1560   : > { %3452 = vst.msk [vmem:[%s10352_s17 + $0xa8] sm:$0xff] %vm628_vm2, %v3447_v37  ;;  %v9449_v14 = vpop.f32.mrb[83].mxu1  ;;  %3520 = vrot.lane.b32.xlu1 %v10618_v29, %s10197_s19 }
0x1562   : > { %1262 = vrot.lane.b32.xlu0 %v10416_v53, %s10197_s19 }
0x1564   : > { %1264 = vrot.lane.b32.xlu1 %v10418_v55, %s10197_s19 }
0x1565   : > { %v3581_v11 = vpop.f32.mrb[84].mxu1 }
0x1566   : > { %v9464_v50 = vpop.f32.mrb[85].mxu1  ;;  %3590 = vrot.lane.b32.xlu0 %v3581_v11, %s10198_s26 }
0x1567   : > { %v3584_v26 = vpop.f32.mrb[86].mxu1 }
0x1568   : > { %v9465_v23 = vpop.f32.mrb[87].mxu1  ;;  %3592 = vrot.lane.b32.xlu1 %v3584_v26, %s10198_s26 }
0x156a   : > { %1334 = vrot.lane.b32.xlu0 %v10998_v8, %s10198_s26 }
0x156c   : > { %1336 = vrot.lane.b32.xlu1 %v11004_v6, %s10198_s26 }
0x156d   : > { %v3726_v29 = vpop.f32.mrb[88].mxu1 }
0x156e   : > { %3733 = vst.msk [vmem:[%s10352_s17 + $0xb0] sm:$0xff] %vm628_vm2, %v3726_v29  ;;  %v9480_v53 = vpop.f32.mrb[89].mxu1  ;;  %3800 = vrot.lane.b32.xlu0 %v10641_v54, %s10197_s19 }
0x156f   : > { %v3729_v55 = vpop.f32.mrb[90].mxu1 }
0x1570   : > { %3734 = vst.msk [vmem:[%s10352_s17 + $0xb8] sm:$0xff] %vm628_vm2, %v3729_v55  ;;  %v9481_v32 = vpop.f32.mrb[91].mxu1  ;;  %3802 = vrot.lane.b32.xlu1 %v10643_v57, %s10197_s19 }
0x1572   : > { %1544 = vrot.lane.b32.xlu0 %v10441_v5, %s10197_s19 }
0x1574   : > { %1546 = vrot.lane.b32.xlu1 %v10443_v7, %s10197_s19 }
0x1575   : > { %v3863_v8 = vpop.f32.mrb[92].mxu1 }
0x1576   : > { %v9496_v6 = vpop.f32.mrb[93].mxu1  ;;  %3872 = vrot.lane.b32.xlu0 %v3863_v8, %s10198_s26 }
0x1577   : > { %v3866_v54 = vpop.f32.mrb[94].mxu1 }
0x1578   : > { %v9497_v4 = vpop.f32.mrb[95].mxu1  ;;  %3874 = vrot.lane.b32.xlu1 %v3866_v54, %s10198_s26 }
0x157a   : > { %1616 = vrot.lane.b32.xlu0 %v11010_v17, %s10198_s26 }
0x157c   : > { %1618 = vrot.lane.b32.xlu1 %v11012_v25, %s10198_s26 }
0x157d   : > { %v4008_v57 = vpop.f32.mrb[96].mxu1 }
0x157e   : > { %4015 = vst.msk [vmem:[%s10352_s17 + $0xc0] sm:$0xff] %vm628_vm2, %v4008_v57  ;;  %v9512_v5 = vpop.f32.mrb[97].mxu1  ;;  %4082 = vrot.lane.b32.xlu0 %v10669_v28, %s10197_s19 }
0x157f   : > { %v4011_v7 = vpop.f32.mrb[98].mxu1 }
0x1580   : > { %4016 = vst.msk [vmem:[%s10352_s17 + $0xc8] sm:$0xff] %vm628_vm2, %v4011_v7  ;;  %v9513_v45 = vpop.f32.mrb[99].mxu1  ;;  %4084 = vrot.lane.b32.xlu1 %v10671_v33, %s10197_s19 }
0x1582   : > { %1826 = vrot.lane.b32.xlu0 %v10466_v21, %s10197_s19 }
0x1584   : > { %1828 = vrot.lane.b32.xlu1 %v10468_v24, %s10197_s19 }
0x1585   : > { %v4145_v17 = vpop.f32.mrb[100].mxu1 }
0x1586   : > { %v9528_v25 = vpop.f32.mrb[101].mxu1  ;;  %4154 = vrot.lane.b32.xlu0 %v4145_v17, %s10198_s26 }
0x1587   : > { %v4148_v28 = vpop.f32.mrb[102].mxu1 }
0x1588   : > { %v9529_v35 = vpop.f32.mrb[103].mxu1  ;;  %4156 = vrot.lane.b32.xlu1 %v4148_v28, %s10198_s26 }
0x158a   : > { %1898 = vrot.lane.b32.xlu0 %v11018_v34, %s10198_s26 }
0x158c   : > { %1900 = vrot.lane.b32.xlu1 %v11020_v44, %s10198_s26 }
0x158d   : > { %v4290_v33 = vpop.f32.mrb[104].mxu1 }
0x158e   : > { %4297 = vst.msk [vmem:[%s10352_s17 + $0xd0] sm:$0xff] %vm628_vm2, %v4290_v33  ;;  %v9544_v21 = vpop.f32.mrb[105].mxu1  ;;  %4364 = vrot.lane.b32.xlu0 %v10725_v12, %s10197_s19 }
0x158f   : > { %v4293_v24 = vpop.f32.mrb[106].mxu1 }
0x1590   : > { %4298 = vst.msk [vmem:[%s10352_s17 + $0xd8] sm:$0xff] %vm628_vm2, %v4293_v24  ;;  %v9545_v47 = vpop.f32.mrb[107].mxu1  ;;  %4366 = vrot.lane.b32.xlu1 %v10727_v15, %s10197_s19 }
0x1592   : > { %2108 = vrot.lane.b32.xlu0 %v10491_v41, %s10197_s19 }
0x1594   : > { %2110 = vrot.lane.b32.xlu1 %v10493_v43, %s10197_s19 }
0x1595   : > { %v4427_v34 = vpop.f32.mrb[108].mxu1 }
0x1596   : > { %v9560_v44 = vpop.f32.mrb[109].mxu1  ;;  %4436 = vrot.lane.b32.xlu0 %v4427_v34, %s10198_s26 }
0x1597   : > { %v4430_v12 = vpop.f32.mrb[110].mxu1 }
0x1598   : > { %v9561_v60 = vpop.f32.mrb[111].mxu1  ;;  %4438 = vrot.lane.b32.xlu1 %v4430_v12, %s10198_s26 }
0x159a   : > { %2180 = vrot.lane.b32.xlu0 %v11026_v13, %s10198_s26 }
0x159c   : > { %2182 = vrot.lane.b32.xlu1 %v11028_v10, %s10198_s26 }
0x159d   : > { %v4572_v15 = vpop.f32.mrb[112].mxu1 }
0x159e   : > { %4579 = vst.msk [vmem:[%s10352_s17 + $0xe0] sm:$0xff] %vm628_vm2, %v4572_v15  ;;  %v9576_v41 = vpop.f32.mrb[113].mxu1  ;;  %4646 = vrot.lane.b32.xlu0 %v10968_v39, %s10197_s19 }
0x159f   : > { %v4575_v43 = vpop.f32.mrb[114].mxu1 }
0x15a0   : > { %4580 = vst.msk [vmem:[%s10352_s17 + $0xe8] sm:$0xff] %vm628_vm2, %v4575_v43  ;;  %v9577_v48 = vpop.f32.mrb[115].mxu1  ;;  %4648 = vrot.lane.b32.xlu1 %v10971_v27, %s10197_s19 }
0x15a2   : > { %2390 = vrot.lane.b32.xlu0 %v10516_v59, %s10197_s19 }
0x15a4   : > { %2392 = vrot.lane.b32.xlu1 %v10518_v62, %s10197_s19 }
0x15a5   : > { %v4709_v13 = vpop.f32.mrb[116].mxu1 }
0x15a6   : > { %v9592_v10 = vpop.f32.mrb[117].mxu1  ;;  %4718 = vrot.lane.b32.xlu0 %v4709_v13, %s10198_s26 }
0x15a7   : > { %v4712_v39 = vpop.f32.mrb[118].mxu1 }
0x15a8   : > { %v9593_v51 = vpop.f32.mrb[119].mxu1  ;;  %4720 = vrot.lane.b32.xlu1 %v4712_v39, %s10198_s26 }
0x15aa   : > { %2462 = vrot.lane.b32.xlu0 %v11034_v1, %s10198_s26 }
0x15ac   : > { %2464 = vrot.lane.b32.xlu1 %v11036_v9, %s10198_s26 }
0x15ae   : > { %2672 = vrot.lane.b32.xlu0 %v10541_v16, %s10197_s19 }
0x15b0   : > { %2674 = vrot.lane.b32.xlu1 %v10543_v18, %s10197_s19 }
0x15b2   : > { %v4854_v59 = vpop.f32.mrb[120].mxu1 }
0x15b3   : > { %4861 = vst.msk [vmem:[%s10352_s17 + $0xf0] sm:$0xff] %vm628_vm2, %v4854_v59  ;;  %v9608_v62 = vpop.f32.mrb[121].mxu1 }
0x15b4   : > { %v4857_v27 = vpop.f32.mrb[122].mxu1 }
0x15b5   : > { %4862 = vst.msk [vmem:[%s10352_s17 + $0xf8] sm:$0xff] %vm628_vm2, %v4857_v27  ;;  %v9609_v1 = vpop.f32.mrb[123].mxu1 }
0x15b8   : > { %v3027_v9 = vpop.permute.xlu0 %3026 }
0x15b9   : > { %3032 = vst.msk [vmem:[%s10352_s17 + $0x80] sm:$0xff] %vm775_vm4, %v3027_v9 }
0x15ba   : > { %v3029_v16 = vpop.permute.xlu1 %3028 }
0x15bb   : > { %3033 = vst.msk [vmem:[%s10352_s17 + $0x88] sm:$0xff] %vm775_vm4, %v3029_v16 }
0x15bc   : > { %v770_v18 = vpop.permute.xlu0 %769 }
0x15bd   : > { %776 = vst.msk [vmem:[%s10352_s17] sm:$0xff] %vm775_vm4, %v770_v18 }
0x15be   : > { %v772_v52 = vpop.permute.xlu1 %771 }
0x15bf   : > { %777 = vst.msk [vmem:[%s10352_s17 + $0x8] sm:$0xff] %vm775_vm4, %v772_v52 }
0x15c0   : > { %v3237_v30 = vpop.permute.xlu0 %3236  ;;  %v5024_v58 = vld [vmem:[%s10352_s17 + $0x80] sm:$0xff] }
0x15c1   : > { %3242 = vst.msk [vmem:[%s10352_s17 + $0x90] sm:$0xff] %vm702_vm3, %v3237_v30 }
0x15c2   : > { %v3239_v56 = vpop.permute.xlu1 %3238  ;;  %v5025_v61 = vld [vmem:[%s10352_s17 + $0x88] sm:$0xff] }
0x15c3   : > { %3243 = vst.msk [vmem:[%s10352_s17 + $0x98] sm:$0xff] %vm702_vm3, %v3239_v56  ;;  %v11196_v19 = vpack.c.bf16 %v5025_v61, %v5024_v58 }
0x15c4   : > { %v981_v31 = vpop.permute.xlu0 %980  ;;  %v5008_v2 = vld [vmem:[%s10352_s17] sm:$0xff] }
0x15c5   : > { %986 = vst.msk [vmem:[%s10352_s17 + $0x10] sm:$0xff] %vm702_vm3, %v981_v31  ;;  %8900 = vmatprep.subr.bf16.mxu0 %v11196_v19  ;;  %9626 = vmatprep.subr.bf16.mxu1 %v11196_v19 }
0x15c6   : > { %v983_v63 = vpop.permute.xlu1 %982  ;;  %v5009_v22 = vld [vmem:[%s10352_s17 + $0x8] sm:$0xff] }
0x15c7   : > { %987 = vst.msk [vmem:[%s10352_s17 + $0x18] sm:$0xff] %vm702_vm3, %v983_v63  ;;  %v11206_v36 = vpack.c.bf16 %v5009_v22, %v5008_v2 }
0x15c8   : > { %v3309_v3 = vpop.permute.xlu0 %3308 }
0x15c9   : > { %3314 = vst.msk [vmem:[%s10352_s17 + $0x90] sm:$0xff] %vm775_vm4, %v3309_v3  ;;  %8901 = vmatpush3.bf16.msra.mxu0 %v11206_v36  ;;  %9634 = vmatpush3.bf16.msra.mxu1 %v11206_v36 }
0x15ca   : > { %v3311_v0 = vpop.permute.xlu1 %3310 }
0x15cb   : > { %3315 = vst.msk [vmem:[%s10352_s17 + $0x98] sm:$0xff] %vm775_vm4, %v3311_v0 }
0x15cc   : > { %v1053_v38 = vpop.permute.xlu0 %1052 }
0x15cd   : > { %1058 = vst.msk [vmem:[%s10352_s17 + $0x10] sm:$0xff] %vm775_vm4, %v1053_v38 }
0x15ce   : > { %v1055_v40 = vpop.permute.xlu1 %1054 }
0x15cf   : > { %1059 = vst.msk [vmem:[%s10352_s17 + $0x18] sm:$0xff] %vm775_vm4, %v1055_v40 }
0x15d0   : > { %v3519_v49 = vpop.permute.xlu0 %3518  ;;  %v5026_v37 = vld [vmem:[%s10352_s17 + $0x90] sm:$0xff] }
0x15d1   : > { %3524 = vst.msk [vmem:[%s10352_s17 + $0xa0] sm:$0xff] %vm702_vm3, %v3519_v49 }
0x15d2   : > { %v3521_v42 = vpop.permute.xlu1 %3520  ;;  %v5027_v14 = vld [vmem:[%s10352_s17 + $0x98] sm:$0xff] }
0x15d3   : > { %3525 = vst.msk [vmem:[%s10352_s17 + $0xa8] sm:$0xff] %vm702_vm3, %v3521_v42  ;;  %v11224_v11 = vpack.c.bf16 %v5027_v14, %v5026_v37 }
0x15d4   : > { %v1263_v50 = vpop.permute.xlu0 %1262  ;;  %v5010_v23 = vld [vmem:[%s10352_s17 + $0x10] sm:$0xff] }
0x15d5   : > { %1268 = vst.msk [vmem:[%s10352_s17 + $0x20] sm:$0xff] %vm702_vm3, %v1263_v50  ;;  %8902 = vmatprep.subr.bf16.mxu0 %v11224_v11  ;;  %9627 = vmatprep.subr.bf16.mxu1 %v11224_v11 }
0x15d6   : > { %v1265_v26 = vpop.permute.xlu1 %1264  ;;  %v5011_v29 = vld [vmem:[%s10352_s17 + $0x18] sm:$0xff] }
0x15d7   : > { %1269 = vst.msk [vmem:[%s10352_s17 + $0x28] sm:$0xff] %vm702_vm3, %v1265_v26  ;;  %v11234_v53 = vpack.c.bf16 %v5011_v29, %v5010_v23 }
0x15d8   : > { %v3591_v55 = vpop.permute.xlu0 %3590 }
0x15d9   : > { %3596 = vst.msk [vmem:[%s10352_s17 + $0xa0] sm:$0xff] %vm775_vm4, %v3591_v55  ;;  %8903 = vmatpush3.bf16.msra.mxu0 %v11234_v53  ;;  %9635 = vmatpush3.bf16.msra.mxu1 %v11234_v53 }
0x15da   : > { %v3593_v32 = vpop.permute.xlu1 %3592 }
0x15db   : > { %3597 = vst.msk [vmem:[%s10352_s17 + $0xa8] sm:$0xff] %vm775_vm4, %v3593_v32 }
0x15dc   : > { %v1335_v8 = vpop.permute.xlu0 %1334 }
0x15dd   : > { %1340 = vst.msk [vmem:[%s10352_s17 + $0x20] sm:$0xff] %vm775_vm4, %v1335_v8 }
0x15de   : > { %v1337_v6 = vpop.permute.xlu1 %1336 }
0x15df   : > { %1341 = vst.msk [vmem:[%s10352_s17 + $0x28] sm:$0xff] %vm775_vm4, %v1337_v6 }
0x15e0   : > { %v3801_v54 = vpop.permute.xlu0 %3800  ;;  %v5028_v57 = vld [vmem:[%s10352_s17 + $0xa0] sm:$0xff] }
0x15e1   : > { %3806 = vst.msk [vmem:[%s10352_s17 + $0xb0] sm:$0xff] %vm702_vm3, %v3801_v54 }
0x15e2   : > { %v3803_v4 = vpop.permute.xlu1 %3802  ;;  %v5029_v5 = vld [vmem:[%s10352_s17 + $0xa8] sm:$0xff] }
0x15e3   : > { %3807 = vst.msk [vmem:[%s10352_s17 + $0xb8] sm:$0xff] %vm702_vm3, %v3803_v4  ;;  %v11252_v7 = vpack.c.bf16 %v5029_v5, %v5028_v57 }
0x15e4   : > { %v1545_v45 = vpop.permute.xlu0 %1544  ;;  %v5012_v25 = vld [vmem:[%s10352_s17 + $0x20] sm:$0xff] }
0x15e5   : > { %1550 = vst.msk [vmem:[%s10352_s17 + $0x30] sm:$0xff] %vm702_vm3, %v1545_v45  ;;  %8904 = vmatprep.subr.bf16.mxu0 %v11252_v7  ;;  %9628 = vmatprep.subr.bf16.mxu1 %v11252_v7 }
0x15e6   : > { %v1547_v17 = vpop.permute.xlu1 %1546  ;;  %v5013_v28 = vld [vmem:[%s10352_s17 + $0x28] sm:$0xff] }
0x15e7   : > { %1551 = vst.msk [vmem:[%s10352_s17 + $0x38] sm:$0xff] %vm702_vm3, %v1547_v17  ;;  %v11262_v35 = vpack.c.bf16 %v5013_v28, %v5012_v25 }
0x15e8   : > { %v3873_v33 = vpop.permute.xlu0 %3872 }
0x15e9   : > { %3878 = vst.msk [vmem:[%s10352_s17 + $0xb0] sm:$0xff] %vm775_vm4, %v3873_v33  ;;  %8905 = vmatpush3.bf16.msra.mxu0 %v11262_v35  ;;  %9636 = vmatpush3.bf16.msra.mxu1 %v11262_v35 }
0x15ea   : > { %v3875_v21 = vpop.permute.xlu1 %3874 }
0x15eb   : > { %3879 = vst.msk [vmem:[%s10352_s17 + $0xb8] sm:$0xff] %vm775_vm4, %v3875_v21 }
0x15ec   : > { %v1617_v24 = vpop.permute.xlu0 %1616 }
0x15ed   : > { %1622 = vst.msk [vmem:[%s10352_s17 + $0x30] sm:$0xff] %vm775_vm4, %v1617_v24 }
0x15ee   : > { %v1619_v47 = vpop.permute.xlu1 %1618 }
0x15ef   : > { %1623 = vst.msk [vmem:[%s10352_s17 + $0x38] sm:$0xff] %vm775_vm4, %v1619_v47 }
0x15f0   : > { %v4083_v34 = vpop.permute.xlu0 %4082  ;;  %v5030_v12 = vld [vmem:[%s10352_s17 + $0xb0] sm:$0xff] }
0x15f1   : > { %4088 = vst.msk [vmem:[%s10352_s17 + $0xc0] sm:$0xff] %vm702_vm3, %v4083_v34 }
0x15f2   : > { %v4085_v44 = vpop.permute.xlu1 %4084  ;;  %v5031_v60 = vld [vmem:[%s10352_s17 + $0xb8] sm:$0xff] }
0x15f3   : > { %4089 = vst.msk [vmem:[%s10352_s17 + $0xc8] sm:$0xff] %vm702_vm3, %v4085_v44  ;;  %v11280_v15 = vpack.c.bf16 %v5031_v60, %v5030_v12  ;;  %v9900_v12 = vld [vmem:[%s12500_s4 + $0x4] ss:$8 sps:$4 sm:$0xff]  }
0x15f4   : > { %v1827_v41 = vpop.permute.xlu0 %1826  ;;  %v5014_v48 = vld [vmem:[%s10352_s17 + $0x30] sm:$0xff]  ;;  %v9903_v60 = vld [vmem:[%s12500_s4 + $0xc4] ss:$8 sps:$4 sm:$0xff]   ;;  %5184 = vmatprep.mubr.bf16.mxu0 %v9900_v12 }
0x15f5   : > { %1832 = vst.msk [vmem:[%s10352_s17 + $0x40] sm:$0xff] %vm702_vm3, %v1827_v41  ;;  %8906 = vmatprep.subr.bf16.mxu0 %v11280_v15  ;;  %9629 = vmatprep.subr.bf16.mxu1 %v11280_v15  ;;  %v9976_v12 = vld [vmem:[%s12501_s5 + $0x50] ss:$8 sps:$4 sm:$0xff]  }
0x15f6   : > { %v1829_v43 = vpop.permute.xlu1 %1828  ;;  %v5015_v13 = vld [vmem:[%s10352_s17 + $0x38] sm:$0xff]  ;;  %5424 = vmatprep.mubr.bf16.mxu1 %v9903_v60 }
0x15f7   : > { %1833 = vst.msk [vmem:[%s10352_s17 + $0x48] sm:$0xff] %vm702_vm3, %v1829_v43  ;;  %v11290_v10 = vpack.c.bf16 %v5015_v13, %v5014_v48  ;;  %v9978_v60 = vld [vmem:[%s12501_s5 + $0x54] ss:$8 sps:$4 sm:$0xff]  }
0x15f8   : > { %v4155_v39 = vpop.permute.xlu0 %4154 }
0x15f9   : > { %4160 = vst.msk [vmem:[%s10352_s17 + $0xc0] sm:$0xff] %vm775_vm4, %v4155_v39  ;;  %8907 = vmatpush3.bf16.msra.mxu0 %v11290_v10  ;;  %9637 = vmatpush3.bf16.msra.mxu1 %v11290_v10 }
0x15fa   : > { %v4157_v51 = vpop.permute.xlu1 %4156 }
0x15fb   : > { %4161 = vst.msk [vmem:[%s10352_s17 + $0xc8] sm:$0xff] %vm775_vm4, %v4157_v51 }
0x15fc   : > { %v1899_v59 = vpop.permute.xlu0 %1898 }
0x15fd   : > { %1904 = vst.msk [vmem:[%s10352_s17 + $0x40] sm:$0xff] %vm775_vm4, %v1899_v59 }
0x15fe   : > { %v1901_v62 = vpop.permute.xlu1 %1900 }
0x15ff   : > { %1905 = vst.msk [vmem:[%s10352_s17 + $0x48] sm:$0xff] %vm775_vm4, %v1901_v62 }
0x1600   : > { %v4365_v27 = vpop.permute.xlu0 %4364  ;;  %v5032_v9 = vld [vmem:[%s10352_s17 + $0xc0] sm:$0xff] }
0x1601   : > { %4370 = vst.msk [vmem:[%s10352_s17 + $0xd0] sm:$0xff] %vm702_vm3, %v4365_v27 }
0x1602   : > { %v4367_v1 = vpop.permute.xlu1 %4366  ;;  %v5033_v16 = vld [vmem:[%s10352_s17 + $0xc8] sm:$0xff] }
0x1603   : > { %4371 = vst.msk [vmem:[%s10352_s17 + $0xd8] sm:$0xff] %vm702_vm3, %v4367_v1  ;;  %v11308_v18 = vpack.c.bf16 %v5033_v16, %v5032_v9  ;;  %v9898_v9 = vld [vmem:[%s12500_s4] ss:$8 sps:$4 sm:$0xff]  }
0x1604   : > { %v2109_v52 = vpop.permute.xlu0 %2108  ;;  %v5016_v56 = vld [vmem:[%s10352_s17 + $0x40] sm:$0xff] }
0x1605   : > { %2114 = vst.msk [vmem:[%s10352_s17 + $0x50] sm:$0xff] %vm702_vm3, %v2109_v52  ;;  %8908 = vmatprep.subr.bf16.mxu0 %v11308_v18  ;;  %9630 = vmatprep.subr.bf16.mxu1 %v11308_v18  ;;  %v9901_v16 = vld [vmem:[%s12500_s4 + $0xc0] ss:$8 sps:$4 sm:$0xff]   ;;  %v9904_v52 = vld [vmem:[%s12500_s4 + $0x14] ss:$8 sps:$4 sm:$0xff]  }
0x1606   : > { %v2111_v30 = vpop.permute.xlu1 %2110  ;;  %v5017_v58 = vld [vmem:[%s10352_s17 + $0x48] sm:$0xff] }
0x1607   : > { %2115 = vst.msk [vmem:[%s10352_s17 + $0x58] sm:$0xff] %vm702_vm3, %v2111_v30  ;;  %v11318_v61 = vpack.c.bf16 %v5017_v58, %v5016_v56  ;;  %v9937_v30 = vld [vmem:[%s12500_s4 + $0xd4] ss:$8 sps:$4 sm:$0xff]   ;;  %v9939_v56 = vld [vmem:[%s12500_s4 + $0xd0] ss:$8 sps:$4 sm:$0xff]  }
0x1608   : > { %v4437_v31 = vpop.permute.xlu0 %4436  ;;  %v9913_v58 = vld [vmem:[%s12500_s4 + $0x44] ss:$8 sps:$4 sm:$0xff]  }
0x1609   : > { %4442 = vst.msk [vmem:[%s10352_s17 + $0xd0] sm:$0xff] %vm775_vm4, %v4437_v31  ;;  %8909 = vmatpush3.bf16.msra.mxu0 %v11318_v61  ;;  %9638 = vmatpush3.bf16.msra.mxu1 %v11318_v61  ;;  %v9915_v31 = vld [vmem:[%s12500_s4 + $0x40] ss:$8 sps:$4 sm:$0xff]  }
0x160a   : > { %v4439_v63 = vpop.permute.xlu1 %4438 }
0x160b   : > { %4443 = vst.msk [vmem:[%s10352_s17 + $0xd8] sm:$0xff] %vm775_vm4, %v4439_v63  ;;  %v9946_v63 = vld [vmem:[%s12500_s4 + $0x100] ss:$8 sps:$4 sm:$0xff]  }
0x160c   : > { %v2181_v2 = vpop.permute.xlu0 %2180 }
0x160d   : > { %2186 = vst.msk [vmem:[%s10352_s17 + $0x50] sm:$0xff] %vm775_vm4, %v2181_v2  ;;  %v9916_v2 = vld [vmem:[%s12500_s4 + $0x54] ss:$8 sps:$4 sm:$0xff]  }
0x160e   : > { %v2183_v22 = vpop.permute.xlu1 %2182 }
0x160f   : > { %2187 = vst.msk [vmem:[%s10352_s17 + $0x58] sm:$0xff] %vm775_vm4, %v2183_v22  ;;  %v9949_v22 = vld [vmem:[%s12500_s4 + $0x114] ss:$8 sps:$4 sm:$0xff]  }
0x1610   : > { %v4647_v3 = vpop.permute.xlu0 %4646  ;;  %v5034_v38 = vld [vmem:[%s10352_s17 + $0xd0] sm:$0xff] }
0x1611   : > { %4652 = vst.msk [vmem:[%s10352_s17 + $0xe0] sm:$0xff] %vm702_vm3, %v4647_v3  ;;  %v9918_v3 = vld [vmem:[%s12500_s4 + $0x50] ss:$8 sps:$4 sm:$0xff]  }
0x1612   : > { %v4649_v0 = vpop.permute.xlu1 %4648  ;;  %v5035_v40 = vld [vmem:[%s10352_s17 + $0xd8] sm:$0xff] }
0x1613   : > { %4653 = vst.msk [vmem:[%s10352_s17 + $0xe8] sm:$0xff] %vm702_vm3, %v4649_v0  ;;  %v11336_v49 = vpack.c.bf16 %v5035_v40, %v5034_v38  ;;  %v9951_v0 = vld [vmem:[%s12500_s4 + $0x110] ss:$8 sps:$4 sm:$0xff]   ;;  %v9919_v38 = vld [vmem:[%s12500_s4 + $0x64] ss:$8 sps:$4 sm:$0xff]  }
0x1614   : > { %v2391_v42 = vpop.permute.xlu0 %2390  ;;  %v5018_v14 = vld [vmem:[%s10352_s17 + $0x50] sm:$0xff]  ;;  %v9952_v40 = vld [vmem:[%s12500_s4 + $0x124] ss:$8 sps:$4 sm:$0xff]  }
0x1615   : > { %2396 = vst.msk [vmem:[%s10352_s17 + $0x60] sm:$0xff] %vm702_vm3, %v2391_v42  ;;  %8910 = vmatprep.subr.bf16.mxu0 %v11336_v49  ;;  %9631 = vmatprep.subr.bf16.mxu1 %v11336_v49  ;;  %v9954_v42 = vld [vmem:[%s12500_s4 + $0x120] ss:$8 sps:$4 sm:$0xff]  }
0x1616   : > { %v2393_v37 = vpop.permute.xlu1 %2392  ;;  %v5019_v50 = vld [vmem:[%s10352_s17 + $0x58] sm:$0xff] }
0x1617   : > { %2397 = vst.msk [vmem:[%s10352_s17 + $0x68] sm:$0xff] %vm702_vm3, %v2393_v37  ;;  %v11346_v26 = vpack.c.bf16 %v5019_v50, %v5018_v14  ;;  %v9922_v37 = vld [vmem:[%s12500_s4 + $0x74] ss:$8 sps:$4 sm:$0xff]   ;;  %v9924_v14 = vld [vmem:[%s12500_s4 + $0x70] ss:$8 sps:$4 sm:$0xff]  }
0x1618   : > { %v4719_v23 = vpop.permute.xlu0 %4718  ;;  %v9927_v50 = vld [vmem:[%s12500_s4 + $0x84] ss:$8 sps:$4 sm:$0xff]  }
0x1619   : > { %4724 = vst.msk [vmem:[%s10352_s17 + $0xe0] sm:$0xff] %vm775_vm4, %v4719_v23  ;;  %8911 = vmatpush3.bf16.msra.mxu0 %v11346_v26  ;;  %9639 = vmatpush3.bf16.msra.mxu1 %v11346_v26  ;;  %v9928_v23 = vld [vmem:[%s12500_s4 + $0x94] ss:$8 sps:$4 sm:$0xff]  }
0x161a   : > { %v4721_v29 = vpop.permute.xlu1 %4720 }
0x161b   : > { %4725 = vst.msk [vmem:[%s10352_s17 + $0xe8] sm:$0xff] %vm775_vm4, %v4721_v29  ;;  %v9930_v29 = vld [vmem:[%s12500_s4 + $0x90] ss:$8 sps:$4 sm:$0xff]  }
0x161c   : > { %v2463_v55 = vpop.permute.xlu0 %2462 }
0x161d   : > { %2468 = vst.msk [vmem:[%s10352_s17 + $0x60] sm:$0xff] %vm775_vm4, %v2463_v55  ;;  %v9931_v55 = vld [vmem:[%s12500_s4 + $0xa4] ss:$8 sps:$4 sm:$0xff]  }
0x161e   : > { %v2465_v32 = vpop.permute.xlu1 %2464 }
0x161f   : > { %2469 = vst.msk [vmem:[%s10352_s17 + $0x68] sm:$0xff] %vm775_vm4, %v2465_v32  ;;  %v9933_v32 = vld [vmem:[%s12500_s4 + $0xa0] ss:$8 sps:$4 sm:$0xff]  }
0x1620   : > { %v2673_v8 = vpop.permute.xlu0 %2672  ;;  %v5036_v54 = vld [vmem:[%s10352_s17 + $0xe0] sm:$0xff] }
0x1621   : > { %2678 = vst.msk [vmem:[%s10352_s17 + $0x70] sm:$0xff] %vm702_vm3, %v2673_v8  ;;  %v9934_v8 = vld [vmem:[%s12500_s4 + $0xb4] ss:$8 sps:$4 sm:$0xff]  }
0x1622   : > { %v2675_v6 = vpop.permute.xlu1 %2674  ;;  %v5037_v4 = vld [vmem:[%s10352_s17 + $0xe8] sm:$0xff] }
0x1623   : > { %2679 = vst.msk [vmem:[%s10352_s17 + $0x78] sm:$0xff] %vm702_vm3, %v2675_v6  ;;  %v11364_v57 = vpack.c.bf16 %v5037_v4, %v5036_v54  ;;  %v9955_v6 = vld [vmem:[%s12500_s4 + $0x134] ss:$8 sps:$4 sm:$0xff]   ;;  %v9957_v54 = vld [vmem:[%s12500_s4 + $0x130] ss:$8 sps:$4 sm:$0xff]  }
0x1624   : > { %v4991_v5 = vpop.f32.mrb[124].mxu1  ;;  %v5020_v33 = vld [vmem:[%s10352_s17 + $0x60] sm:$0xff]  ;;  %v9936_v4 = vld [vmem:[%s12500_s4 + $0xb0] ss:$8 sps:$4 sm:$0xff]  }
0x1625   : > { %v4919_v45 = vpop.f32.mrb[124].mxu0  ;;  %v9624_v17 = vpop.f32.mrb[125].mxu1  ;;  %8912 = vmatprep.subr.bf16.mxu0 %v11364_v57  ;;  %9632 = vmatprep.subr.bf16.mxu1 %v11364_v57 }
0x1626   : > { %4928 = vrot.lane.b32.xlu0 %v4919_v45, %s10197_s19  ;;  %v9616_v25 = vpop.f32.mrb[125].mxu0  ;;  %v4994_v28 = vpop.f32.mrb[126].mxu1  ;;  %v5021_v21 = vld [vmem:[%s10352_s17 + $0x68] sm:$0xff]  ;;  %v9961_v45 = vld [vmem:[%s12500_s4 + $0x154] ss:$8 sps:$4 sm:$0xff]  }
0x1627   : > { %v4922_v24 = vpop.f32.mrb[126].mxu0  ;;  %v9625_v47 = vpop.f32.mrb[127].mxu1  ;;  %v11371_v34 = vpack.c.bf16 %v5021_v21, %v5020_v33  ;;  %v9963_v17 = vld [vmem:[%s12500_s4 + $0x150] ss:$8 sps:$4 sm:$0xff]   ;;  %v9964_v25 = vld [vmem:[%s12500_s4 + $0x164] ss:$8 sps:$4 sm:$0xff]  }
0x1628   : > { %4930 = vrot.lane.b32.xlu1 %v4922_v24, %s10197_s19  ;;  %v9617_v44 = vpop.f32.mrb[127].mxu0  ;;  %v9967_v33 = vld [vmem:[%s12500_s4 + $0x174] ss:$8 sps:$4 sm:$0xff]   ;;  %v9969_v21 = vld [vmem:[%s12500_s4 + $0x170] ss:$8 sps:$4 sm:$0xff]  }
0x1629   : > { %8913 = vmatpush3.bf16.msra.mxu0 %v11371_v34  ;;  %9640 = vmatpush3.bf16.msra.mxu1 %v11371_v34  ;;  %v9970_v24 = vld [vmem:[%s12501_s5 + $0x30] ss:$8 sps:$4 sm:$0xff]   ;;  %v9972_v47 = vld [vmem:[%s12501_s5 + $0x34] ss:$8 sps:$4 sm:$0xff]   ;;  %v9975_v44 = vld [vmem:[%s12501_s5 + $0x44] ss:$8 sps:$4 sm:$0xff]  }
0x162a   : > { %5000 = vrot.lane.b32.xlu0 %v4991_v5, %s10198_s26  ;;  %v9960_v5 = vld [vmem:[%s12500_s4 + $0x140] ss:$8 sps:$4 sm:$0xff]  }
0x162c   : > { %5002 = vrot.lane.b32.xlu1 %v4994_v28, %s10198_s26  ;;  %v9966_v28 = vld [vmem:[%s12500_s4 + $0x160] ss:$8 sps:$4 sm:$0xff]  }
0x162e   : > { %2744 = vrot.lane.b32.xlu0 %v11042_v20, %s10198_s26 }
0x1630   : > { %2746 = vrot.lane.b32.xlu1 %v11044_v46, %s10198_s26 }
0x1698   : > { %v4929_v41 = vpop.permute.xlu0 %4928 }
0x1699   : > { %4934 = vst.msk [vmem:[%s10352_s17 + $0xf0] sm:$0xff] %vm702_vm3, %v4929_v41  ;;  %v10199_v41 = vmov 0  }
0x169a   : > { %v4931_v43 = vpop.permute.xlu1 %4930 }
0x169b   : > { %4935 = vst.msk [vmem:[%s10352_s17 + $0xf8] sm:$0xff] %vm702_vm3, %v4931_v43  ;;  %v9981_v43 = vld [vmem:[%s12501_s5 + $0x4] ss:$8 sps:$4 sm:$0xff]  }
0x169c   : > { %v5001_v20 = vpop.permute.xlu0 %5000 }
0x169d   : > { %5006 = vst.msk [vmem:[%s10352_s17 + $0xf0] sm:$0xff] %vm775_vm4, %v5001_v20 }
0x169e   : > { %v5003_v48 = vpop.permute.xlu1 %5002 }
0x169f   : > { %5007 = vst.msk [vmem:[%s10352_s17 + $0xf8] sm:$0xff] %vm775_vm4, %v5003_v48 }
0x16a0   : > { %v2745_v13 = vpop.permute.xlu0 %2744 }
0x16a1   : > { %2750 = vst.msk [vmem:[%s10352_s17 + $0x70] sm:$0xff] %vm775_vm4, %v2745_v13 }
0x16a2   : > { %v2747_v39 = vpop.permute.xlu1 %2746 }
0x16a3   : > { %2751 = vst.msk [vmem:[%s10352_s17 + $0x78] sm:$0xff] %vm775_vm4, %v2747_v39 }
0x16a4   : > { %v5038_v46 = vld [vmem:[%s10352_s17 + $0xf0] sm:$0xff] }
0x16a6   : > { %v5039_v51 = vld [vmem:[%s10352_s17 + $0xf8] sm:$0xff] }
0x16a7   : > { %v11402_v59 = vpack.c.bf16 %v5039_v51, %v5038_v46 }
0x16a8   : > { %v5022_v62 = vld [vmem:[%s10352_s17 + $0x70] sm:$0xff] }
0x16a9   : > { %8914 = vmatprep.subr.bf16.mxu0 %v11402_v59  ;;  %9633 = vmatprep.subr.bf16.mxu1 %v11402_v59 }
0x16aa   : > { %v5023_v27 = vld [vmem:[%s10352_s17 + $0x78] sm:$0xff] }
0x16ab   : > { %v11408_v1 = vpack.c.bf16 %v5023_v27, %v5022_v62 }
0x16ad   : > { %8915 = vmatpush3.bf16.msra.mxu0 %v11408_v1  ;;  %9641 = vmatpush3.bf16.msra.mxu1 %v11408_v1 }
0x16ae   : > { %8964 = vmatprep.subr.bf16.mxu0 %v11196_v19  ;;  %9028 = vmatprep.subr.bf16.mxu1 %v11196_v19  ;;  %v9906_v19 = vld [vmem:[%s12500_s4 + $0x10] ss:$8 sps:$4 sm:$0xff]  }
0x16b0   : > { %5185 = vmatmul.mubr.bf16.vlgmr.msra.gmra.mrb[128].mxu0 %v9898_v9  ;;  %5425 = vmatmul.mubr.bf16.vlgmr.msra.gmra.mrb[128].mxu1 %v9901_v16 }
0x16b1   : > { %8965 = vmatpush3.bf16.msra.mxu0 %v11206_v36  ;;  %9029 = vmatpush3.bf16.msra.mxu1 %v11206_v36  ;;  %v9907_v36 = vld [vmem:[%s12500_s4 + $0x24] ss:$8 sps:$4 sm:$0xff]  }
0x16b2   : > { %8966 = vmatprep.subr.bf16.mxu0 %v11224_v11  ;;  %9030 = vmatprep.subr.bf16.mxu1 %v11224_v11  ;;  %v9940_v11 = vld [vmem:[%s12500_s4 + $0xe4] ss:$8 sps:$4 sm:$0xff]  }
0x16b3   : > { %5192 = vmatprep.mubr.bf16.mxu0 %v9904_v52  ;;  %5432 = vmatprep.mubr.bf16.mxu1 %v9937_v30 }
0x16b5   : > { %8967 = vmatpush3.bf16.msra.mxu0 %v11234_v53  ;;  %9031 = vmatpush3.bf16.msra.mxu1 %v11234_v53  ;;  %v9909_v53 = vld [vmem:[%s12500_s4 + $0x20] ss:$8 sps:$4 sm:$0xff]  }
0x16b6   : > { %8968 = vmatprep.subr.bf16.mxu0 %v11252_v7  ;;  %9032 = vmatprep.subr.bf16.mxu1 %v11252_v7  ;;  %v9942_v7 = vld [vmem:[%s12500_s4 + $0xe0] ss:$8 sps:$4 sm:$0xff]  }
0x16b8   : > { %5193 = vmatmul.mubr.bf16.gmra.mrb[132].mxu0 %v9906_v19  ;;  %5433 = vmatmul.mubr.bf16.gmra.mrb[132].mxu1 %v9939_v56 }
0x16b9   : > { %8969 = vmatpush3.bf16.msra.mxu0 %v11262_v35  ;;  %9033 = vmatpush3.bf16.msra.mxu1 %v11262_v35  ;;  %v9910_v35 = vld [vmem:[%s12500_s4 + $0x34] ss:$8 sps:$4 sm:$0xff]  }
0x16ba   : > { %8970 = vmatprep.subr.bf16.mxu0 %v11280_v15  ;;  %9034 = vmatprep.subr.bf16.mxu1 %v11280_v15  ;;  %v9943_v15 = vld [vmem:[%s12500_s4 + $0xf4] ss:$8 sps:$4 sm:$0xff]  }
0x16bb   : > { %5200 = vmatprep.mubr.bf16.mxu0 %v9907_v36  ;;  %5440 = vmatprep.mubr.bf16.mxu1 %v9940_v11 }
0x16bd   : > { %8971 = vmatpush3.bf16.msra.mxu0 %v11290_v10  ;;  %9035 = vmatpush3.bf16.msra.mxu1 %v11290_v10  ;;  %v9912_v10 = vld [vmem:[%s12500_s4 + $0x30] ss:$8 sps:$4 sm:$0xff]  }
0x16be   : > { %8972 = vmatprep.subr.bf16.mxu0 %v11308_v18  ;;  %9036 = vmatprep.subr.bf16.mxu1 %v11308_v18  ;;  %v9945_v18 = vld [vmem:[%s12500_s4 + $0xf0] ss:$8 sps:$4 sm:$0xff]  }
0x16c0   : > { %5201 = vmatmul.mubr.bf16.gmra.mrb[136].mxu0 %v9909_v53  ;;  %5441 = vmatmul.mubr.bf16.gmra.mrb[136].mxu1 %v9942_v7 }
0x16c1   : > { %8973 = vmatpush3.bf16.msra.mxu0 %v11318_v61  ;;  %9037 = vmatpush3.bf16.msra.mxu1 %v11318_v61  ;;  %v9948_v61 = vld [vmem:[%s12500_s4 + $0x104] ss:$8 sps:$4 sm:$0xff]  }
0x16c2   : > { %8974 = vmatprep.subr.bf16.mxu0 %v11336_v49  ;;  %9038 = vmatprep.subr.bf16.mxu1 %v11336_v49  ;;  %v9921_v49 = vld [vmem:[%s12500_s4 + $0x60] ss:$8 sps:$4 sm:$0xff]  }
0x16c3   : > { %5208 = vmatprep.mubr.bf16.mxu0 %v9910_v35  ;;  %5448 = vmatprep.mubr.bf16.mxu1 %v9943_v15 }
0x16c5   : > { %8975 = vmatpush3.bf16.msra.mxu0 %v11346_v26  ;;  %9039 = vmatpush3.bf16.msra.mxu1 %v11346_v26  ;;  %v9925_v26 = vld [vmem:[%s12500_s4 + $0x80] ss:$8 sps:$4 sm:$0xff]  }
0x16c6   : > { %8976 = vmatprep.subr.bf16.mxu0 %v11364_v57  ;;  %9040 = vmatprep.subr.bf16.mxu1 %v11364_v57  ;;  %v9958_v57 = vld [vmem:[%s12500_s4 + $0x144] ss:$8 sps:$4 sm:$0xff]  }
0x16c8   : > { %5209 = vmatmul.mubr.bf16.gmra.mrb[140].mxu0 %v9912_v10  ;;  %5449 = vmatmul.mubr.bf16.gmra.mrb[140].mxu1 %v9945_v18 }
0x16c9   : > { %8977 = vmatpush3.bf16.msra.mxu0 %v11371_v34  ;;  %9041 = vmatpush3.bf16.msra.mxu1 %v11371_v34  ;;  %v9973_v34 = vld [vmem:[%s12501_s5 + $0x40] ss:$8 sps:$4 sm:$0xff]  }
0x16ca   : > { %8978 = vmatprep.subr.bf16.mxu0 %v11402_v59  ;;  %9042 = vmatprep.subr.bf16.mxu1 %v11402_v59 }
0x16cb   : > { %5216 = vmatprep.mubr.bf16.mxu0 %v9913_v58  ;;  %5936 = vmatprep.mubr.bf16.mxu1 %v9948_v61 }
0x16cd   : > { %8979 = vmatpush3.bf16.msra.mxu0 %v11408_v1  ;;  %9043 = vmatpush3.bf16.msra.mxu1 %v11408_v1 }
0x16ce   : > { %5527 = vmatprep.subr.bf16.mxu0 %v9972_v47 }
0x16d0   : > { %5217 = vmatmul.mubr.bf16.gmra.mrb[144].mxu0 %v9915_v31  ;;  %5937 = vmatmul.mubr.bf16.vlgmr.msra.gmra.mrb[144].mxu1 %v9946_v63 }
0x16d1   : > { %5224 = vmatprep.mubr.bf16.mxu0 %v9916_v2  ;;  %5944 = vmatprep.mubr.bf16.mxu1 %v9949_v22 }
0x16d8   : > { %5225 = vmatmul.mubr.bf16.gmra.mrb[148].mxu0 %v9918_v3  ;;  %5945 = vmatmul.mubr.bf16.gmra.mrb[148].mxu1 %v9951_v0 }
0x16d9   : > { %5232 = vmatprep.mubr.bf16.mxu0 %v9919_v38  ;;  %5952 = vmatprep.mubr.bf16.mxu1 %v9952_v40 }
0x16e0   : > { %5233 = vmatmul.mubr.bf16.gmra.mrb[152].mxu0 %v9921_v49  ;;  %5953 = vmatmul.mubr.bf16.gmra.mrb[152].mxu1 %v9954_v42 }
0x16e1   : > { %5240 = vmatprep.mubr.bf16.mxu0 %v9922_v37  ;;  %5960 = vmatprep.mubr.bf16.mxu1 %v9955_v6 }
0x16e8   : > { %5241 = vmatmul.mubr.bf16.gmra.mrb[156].mxu0 %v9924_v14  ;;  %5961 = vmatmul.mubr.bf16.gmra.mrb[156].mxu1 %v9957_v54 }
0x16e9   : > { %5392 = vmatprep.mubr.bf16.mxu0 %v9927_v50  ;;  %5968 = vmatprep.mubr.bf16.mxu1 %v9958_v57 }
0x16f0   : > { %5393 = vmatmul.mubr.bf16.vlgmr.msra.gmra.mrb[160].mxu0 %v9925_v26  ;;  %5969 = vmatmul.mubr.bf16.gmra.mrb[160].mxu1 %v9960_v5 }
0x16f1   : > { %5400 = vmatprep.mubr.bf16.mxu0 %v9928_v23  ;;  %5976 = vmatprep.mubr.bf16.mxu1 %v9961_v45 }
0x16f2   : > { %5528 = vmatpush1.bf16.msra.mxu0 %v9970_v24 }
0x16f3   : > { %5529 = vmatprep.subr.bf16.mxu0 %v9975_v44 }
0x16f6   : > { %5530 = vmatpush1.bf16.msra.mxu0 %v9973_v34 }
0x16f7   : > { %5531 = vmatprep.subr.bf16.mxu0 %v9978_v60 }
0x16f8   : > { %5401 = vmatmul.mubr.bf16.gmra.mrb[164].mxu0 %v9930_v29  ;;  %5977 = vmatmul.mubr.bf16.gmra.mrb[164].mxu1 %v9963_v17 }
0x16f9   : > { %5408 = vmatprep.mubr.bf16.mxu0 %v9931_v55  ;;  %5984 = vmatprep.mubr.bf16.mxu1 %v9964_v25 }
0x16fa   : > { %5532 = vmatpush1.bf16.msra.mxu0 %v9976_v12 }
0x16fb   : > { %5694 = vmatprep.subr.bf16.mxu0 %v9981_v43 }
0x1700   : > { %5409 = vmatmul.mubr.bf16.gmra.mrb[168].mxu0 %v9933_v32  ;;  %5985 = vmatmul.mubr.bf16.gmra.mrb[168].mxu1 %v9966_v28 }
0x1701   : > { %5416 = vmatprep.mubr.bf16.mxu0 %v9934_v8  ;;  %5992 = vmatprep.mubr.bf16.mxu1 %v9967_v33 }
0x1708   : > { %5417 = vmatmul.mubr.bf16.gmra.mrb[172].mxu0 %v9936_v4  ;;  %5993 = vmatmul.mubr.bf16.gmra.mrb[172].mxu1 %v9969_v21 }
0x1709   : > { %5559 = vmatprep.mubr.bf16.mxu0 %v10199_v41  ;;  %6371 = vmatprep.mubr.bf16.mxu1 %v10199_v41 }
0x1783   : > { %v8916_v20 = vpop.f32.mrb[128].mxu0  ;;  %v9004_v48 = vpop.f32.mrb[128].mxu1 }
0x1784   : > { %v8917_v13 = vpop.f32.mrb[129].mxu0  ;;  %v9005_v39 = vpop.f32.mrb[129].mxu1 }
0x1785   : > { %v11605_v46 = vadd.f32 %v8917_v13, %v8916_v20  ;;  %v8919_v51 = vpop.f32.mrb[130].mxu0  ;;  %v11607_v59 = vadd.f32 %v9005_v39, %v9004_v48  ;;  %v9007_v62 = vpop.f32.mrb[130].mxu1 }
0x1786   : > { %v8920_v27 = vpop.f32.mrb[131].mxu0  ;;  %v9008_v1 = vpop.f32.mrb[131].mxu1 }
0x1787   : > { %v11609_v9 = vadd.f32 %v8920_v27, %v8919_v51  ;;  %v11611_v16 = vadd.f32 %v9008_v1, %v9007_v62 }
0x1789   : > { %v5249_v52 = vpack.c.bf16 %v11609_v9, %v11605_v46  ;;  %v5461_v30 = vpack.c.bf16 %v11611_v16, %v11607_v59  ;;  %v6217_v46 = vlaneseq }
0x178b   : > { %v8922_v19 = vpop.f32.mrb[132].mxu0  ;;  %v9010_v56 = vpop.f32.mrb[132].mxu1  ;;  %v11842_v9 = vshrl.u32 %v6217_v46, 7 }
0x178c   : > { %v8923_v36 = vpop.f32.mrb[133].mxu0  ;;  %v9011_v11 = vpop.f32.mrb[133].mxu1 }
0x178d   : > { %v11617_v53 = vadd.f32 %v8923_v36, %v8922_v19  ;;  %v8925_v7 = vpop.f32.mrb[134].mxu0  ;;  %v11619_v35 = vadd.f32 %v9011_v11, %v9010_v56  ;;  %v9013_v15 = vpop.f32.mrb[134].mxu1 }
0x178e   : > { %v8926_v10 = vpop.f32.mrb[135].mxu0  ;;  %v9014_v18 = vpop.f32.mrb[135].mxu1 }
0x178f   : > { %v11621_v58 = vadd.f32 %v8926_v10, %v8925_v7  ;;  %v11623_v61 = vadd.f32 %v9014_v18, %v9013_v15 }
0x1791   : > { %v5250_v31 = vpack.c.bf16 %v11621_v58, %v11617_v53  ;;  %v5462_v63 = vpack.c.bf16 %v11623_v61, %v11619_v35  ;;  %v6215_v53 = vld [vmem:[%s12502_s6] sm:$0x3]  ;;  %v6223_v58 = vsub.s32 1, %v11842_v9 }
0x1793   : > { %v8928_v2 = vpop.f32.mrb[136].mxu0  ;;  %v9016_v22 = vpop.f32.mrb[136].mxu1 }
0x1794   : > { %v8929_v3 = vpop.f32.mrb[137].mxu0  ;;  %v9017_v0 = vpop.f32.mrb[137].mxu1 }
0x1795   : > { %v11629_v38 = vadd.f32 %v8929_v3, %v8928_v2  ;;  %v8931_v40 = vpop.f32.mrb[138].mxu0  ;;  %v11631_v49 = vadd.f32 %v9017_v0, %v9016_v22  ;;  %v9019_v42 = vpop.f32.mrb[138].mxu1 }
0x1796   : > { %v8932_v37 = vpop.f32.mrb[139].mxu0  ;;  %v9020_v14 = vpop.f32.mrb[139].mxu1 }
0x1797   : > { %v11633_v50 = vadd.f32 %v8932_v37, %v8931_v40  ;;  %v11635_v26 = vadd.f32 %v9020_v14, %v9019_v42 }
0x1799   : > { %v5251_v23 = vpack.c.bf16 %v11633_v50, %v11629_v38  ;;  %v5463_v29 = vpack.c.bf16 %v11635_v26, %v11631_v49  ;;  %v9993_v49 = vld [vmem:[%s12501_s5 + $0x74] ss:$8 sps:$4 sm:$0xff]   ;;  %v9991_v26 = vld [vmem:[%s12501_s5 + $0x70] ss:$8 sps:$4 sm:$0xff]   ;;  %v11855_v38 = vrot.slane %v6215_v53, %v6223_v58 }
0x179b   : > { %v8934_v55 = vpop.f32.mrb[140].mxu0  ;;  %v9022_v32 = vpop.f32.mrb[140].mxu1 }
0x179c   : > { %v8935_v8 = vpop.f32.mrb[141].mxu0  ;;  %v9023_v6 = vpop.f32.mrb[141].mxu1 }
0x179d   : > { %v11641_v54 = vadd.f32 %v8935_v8, %v8934_v55  ;;  %v8937_v4 = vpop.f32.mrb[142].mxu0  ;;  %v11643_v57 = vadd.f32 %v9023_v6, %v9022_v32  ;;  %v9025_v5 = vpop.f32.mrb[142].mxu1 }
0x179e   : > { %v8938_v45 = vpop.f32.mrb[143].mxu0  ;;  %v9026_v17 = vpop.f32.mrb[143].mxu1 }
0x179f   : > { %v11645_v25 = vadd.f32 %v8938_v45, %v8937_v4  ;;  %v11647_v28 = vadd.f32 %v9026_v17, %v9025_v5 }
0x17a1   : > { %v5252_v33 = vpack.c.bf16 %v11645_v25, %v11641_v54  ;;  %v5464_v21 = vpack.c.bf16 %v11647_v28, %v11643_v57  ;;  %v9994_v57 = vld [vmem:[%s12501_s5 + $0x80] ss:$8 sps:$4 sm:$0xff]  }
0x17a3   : > { %v8940_v24 = vpop.f32.mrb[144].mxu0  ;;  %v9044_v18 = vpop.f32.mrb[144].mxu1 }
0x17a4   : > { %v8941_v47 = vpop.f32.mrb[145].mxu0  ;;  %v9045_v22 = vpop.f32.mrb[145].mxu1 }
0x17a5   : > { %v11653_v34 = vadd.f32 %v8941_v47, %v8940_v24  ;;  %v8943_v44 = vpop.f32.mrb[146].mxu0  ;;  %v11673_v40 = vadd.f32 %v9045_v22, %v9044_v18  ;;  %v9047_v42 = vpop.f32.mrb[146].mxu1  ;;  %v9982_v22 = vld [vmem:[%s12501_s5 + $0x10] ss:$8 sps:$4 sm:$0xff]  }
0x17a6   : > { %v8944_v12 = vpop.f32.mrb[147].mxu0  ;;  %v9048_v8 = vpop.f32.mrb[147].mxu1 }
0x17a7   : > { %v11655_v60 = vadd.f32 %v8944_v12, %v8943_v44  ;;  %v11679_v4 = vadd.f32 %v9048_v8, %v9047_v42 }
0x17a9   : > { %v5253_v43 = vpack.c.bf16 %v11655_v60, %v11653_v34  ;;  %v6001_v44 = vpack.c.bf16 %v11679_v4, %v11673_v40 }
0x17ab   : > { %v8946_v20 = vpop.f32.mrb[148].mxu0  ;;  %v9050_v5 = vpop.f32.mrb[148].mxu1 }
0x17ac   : > { %v8947_v48 = vpop.f32.mrb[149].mxu0  ;;  %v9051_v24 = vpop.f32.mrb[149].mxu1 }
0x17ad   : > { %v11659_v13 = vadd.f32 %v8947_v48, %v8946_v20  ;;  %v8949_v39 = vpop.f32.mrb[150].mxu0  ;;  %v11683_v12 = vadd.f32 %v9051_v24, %v9050_v5  ;;  %v9053_v20 = vpop.f32.mrb[150].mxu1 }
0x17ae   : > { %v8950_v51 = vpop.f32.mrb[151].mxu0 }
0x17af   : > { %v11661_v62 = vadd.f32 %v8950_v51, %v8949_v39  ;;  %v9054_v39 = vpop.f32.mrb[151].mxu1  ;;  %v9979_v51 = vld [vmem:[%s12501_s5] ss:$8 sps:$4 sm:$0xff]  }
0x17b1   : > { %v5254_v27 = vpack.c.bf16 %v11661_v62, %v11659_v13 }
0x17b3   : > { %v8952_v1 = vpop.f32.mrb[152].mxu0  ;;  %v9056_v18 = vpop.f32.mrb[152].mxu1 }
0x17b4   : > { %v8953_v19 = vpop.f32.mrb[153].mxu0 }
0x17b5   : > { %v11665_v56 = vadd.f32 %v8953_v19, %v8952_v1  ;;  %v8955_v36 = vpop.f32.mrb[154].mxu0  ;;  %v11688_v1 = vadd.f32 %v9054_v39, %v9053_v20 }
0x17b6   : > { %v8956_v11 = vpop.f32.mrb[155].mxu0 }
0x17b7   : > { %v11667_v7 = vadd.f32 %v8956_v11, %v8955_v36  ;;  %v9984_v36 = vld [vmem:[%s12501_s5 + $0x14] ss:$8 sps:$4 sm:$0xff]   ;;  %v6002_v11 = vpack.c.bf16 %v11688_v1, %v11683_v12 }
0x17b9   : > { %v5255_v15 = vpack.c.bf16 %v11667_v7, %v11665_v56 }
0x17bb   : > { %v8958_v10 = vpop.f32.mrb[156].mxu0 }
0x17bc   : > { %v8959_v2 = vpop.f32.mrb[157].mxu0 }
0x17bd   : > { %v11671_v3 = vadd.f32 %v8959_v2, %v8958_v10  ;;  %v8961_v0 = vpop.f32.mrb[158].mxu0 }
0x17be   : > { %v8962_v37 = vpop.f32.mrb[159].mxu0 }
0x17bf   : > { %v11675_v14 = vadd.f32 %v8962_v37, %v8961_v0  ;;  %v9057_v0 = vpop.f32.mrb[153].mxu1 }
0x17c0   : > { %v11703_v8 = vadd.f32 %v9057_v0, %v9056_v18 }
0x17c1   : > { %v5256_v55 = vpack.c.bf16 %v11675_v14, %v11671_v3 }
0x17c3   : > { %v8980_v32 = vpop.f32.mrb[160].mxu0 }
0x17c4   : > { %v8981_v6 = vpop.f32.mrb[161].mxu0 }
0x17c5   : > { %v8982_v45 = vadd.f32 %v8981_v6, %v8980_v32  ;;  %v8983_v17 = vpop.f32.mrb[162].mxu0  ;;  %v9987_v32 = vld [vmem:[%s12501_s5 + $0x24] ss:$8 sps:$4 sm:$0xff]   ;;  %v9059_v6 = vpop.f32.mrb[154].mxu1 }
0x17c6   : > { %v8984_v47 = vpop.f32.mrb[163].mxu0 }
0x17c7   : > { %v8985_v48 = vadd.f32 %v8984_v47, %v8983_v17  ;;  %v9985_v47 = vld [vmem:[%s12501_s5 + $0x20] ss:$8 sps:$4 sm:$0xff]  }
0x17c9   : > { %v5457_v19 = vpack.c.bf16 %v8985_v48, %v8982_v45  ;;  %v9060_v45 = vpop.f32.mrb[155].mxu1  ;;  %v9990_v48 = vld [vmem:[%s12501_s5 + $0x64] ss:$8 sps:$4 sm:$0xff]  }
0x17ca   : > { %v11705_v24 = vadd.f32 %v9060_v45, %v9059_v6 }
0x17cb   : > { %v8986_v10 = vpop.f32.mrb[164].mxu0  ;;  %8407 = vmatmul.mubr.msk.bf16.vlgmr.msra.gmra.mrb[176].mxu0 %vm5502_vm5, %v5457_v19 }
0x17cc   : > { %v8987_v2 = vpop.f32.mrb[165].mxu0  ;;  %5695 = vmatpush1.bf16.msra.mxu0 %v9979_v51  ;;  %5569 = vmatprep.mubr.bf16.mxu0 %v10199_v41  ;;  %v6003_v39 = vpack.c.bf16 %v11705_v24, %v11703_v8 }
0x17cd   : > { %v8988_v42 = vadd.f32 %v8987_v2, %v8986_v10  ;;  %v8989_v37 = vpop.f32.mrb[166].mxu0  ;;  %5696 = vmatprep.subr.bf16.mxu0 %v9984_v36 }
0x17ce   : > { %v8990_v5 = vpop.f32.mrb[167].mxu0 }
0x17cf   : > { %v8991_v17 = vadd.f32 %v8990_v5, %v8989_v37 }
0x17d0   : > { %5697 = vmatpush1.bf16.msra.mxu0 %v9982_v22  ;;  %v9062_v22 = vpop.f32.mrb[156].mxu1 }
0x17d1   : > { %v5458_v20 = vpack.c.bf16 %v8991_v17, %v8988_v42  ;;  %5698 = vmatprep.subr.bf16.mxu0 %v9987_v32  ;;  %v9063_v42 = vpop.f32.mrb[157].mxu1 }
0x17d2   : > { %v11717_v37 = vadd.f32 %v9063_v42, %v9062_v22  ;;  %v9065_v32 = vpop.f32.mrb[158].mxu1 }
0x17d3   : > { %v8992_v51 = vpop.f32.mrb[168].mxu0  ;;  %8408 = vmatmul.mubr.msk.bf16.gmra.mrb[180].mxu0 %vm5502_vm5, %v5458_v20  ;;  %v9066_v5 = vpop.f32.mrb[159].mxu1 }
0x17d4   : > { %v8993_v19 = vpop.f32.mrb[169].mxu0  ;;  %5579 = vmatprep.mubr.bf16.mxu0 %v10199_v41  ;;  %5699 = vmatpush1.bf16.msra.mxu0 %v9985_v47  ;;  %v11721_v17 = vadd.f32 %v9066_v5, %v9065_v32 }
0x17d5   : > { %v8994_v36 = vadd.f32 %v8993_v19, %v8992_v51  ;;  %v8995_v10 = vpop.f32.mrb[170].mxu0  ;;  %6070 = vmatprep.subr.bf16.mxu0 %v9990_v48 }
0x17d6   : > { %v8996_v18 = vpop.f32.mrb[171].mxu0  ;;  %v6004_v51 = vpack.c.bf16 %v11721_v17, %v11717_v37 }
0x17d7   : > { %v8997_v2 = vadd.f32 %v8996_v18, %v8995_v10 }
0x17d9   : > { %v5459_v0 = vpack.c.bf16 %v8997_v2, %v8994_v36  ;;  %v9068_v36 = vpop.f32.mrb[160].mxu1 }
0x17da   : > { %v9069_v18 = vpop.f32.mrb[161].mxu1 }
0x17db   : > { %v8998_v6 = vpop.f32.mrb[172].mxu0  ;;  %8409 = vmatmul.mubr.msk.bf16.gmra.mrb[184].mxu0 %vm5502_vm5, %v5459_v0  ;;  %v11725_v2 = vadd.f32 %v9069_v18, %v9068_v36  ;;  %v9071_v22 = vpop.f32.mrb[162].mxu1 }
0x17dc   : > { %v8999_v45 = vpop.f32.mrb[173].mxu0  ;;  %5589 = vmatprep.mubr.bf16.mxu0 %v10199_v41  ;;  %v9072_v0 = vpop.f32.mrb[163].mxu1 }
0x17dd   : > { %v9000_v47 = vadd.f32 %v8999_v45, %v8998_v6  ;;  %v9001_v20 = vpop.f32.mrb[174].mxu0  ;;  %v11729_v42 = vadd.f32 %v9072_v0, %v9071_v22  ;;  %v9074_v6 = vpop.f32.mrb[164].mxu1 }
0x17de   : > { %v9002_v48 = vpop.f32.mrb[175].mxu0  ;;  %v9075_v5 = vpop.f32.mrb[165].mxu1 }
0x17df   : > { %v9003_v19 = vadd.f32 %v9002_v48, %v9001_v20  ;;  %v6005_v32 = vpack.c.bf16 %v11729_v42, %v11725_v2  ;;  %v11733_v45 = vadd.f32 %v9075_v5, %v9074_v6  ;;  %v9077_v20 = vpop.f32.mrb[166].mxu1 }
0x17e1   : > { %v5460_v10 = vpack.c.bf16 %v9003_v19, %v9000_v47  ;;  %v9078_v47 = vpop.f32.mrb[167].mxu1 }
0x17e2   : > { %v9079_v48 = vadd.f32 %v9078_v47, %v9077_v20  ;;  %v9080_v36 = vpop.f32.mrb[168].mxu1 }
0x17e3   : > { %8410 = vmatmul.mubr.msk.bf16.gmra.mrb[188].mxu0 %vm5502_vm5, %v5460_v10  ;;  %v9081_v10 = vpop.f32.mrb[169].mxu1 }
0x17e4   : > { %5599 = vmatprep.mubr.bf16.mxu0 %v10199_v41  ;;  %v6006_v19 = vpack.c.bf16 %v9079_v48, %v11733_v45  ;;  %v9082_v18 = vadd.f32 %v9081_v10, %v9080_v36  ;;  %v9083_v22 = vpop.f32.mrb[170].mxu1 }
0x17e5   : > { %v9084_v0 = vpop.f32.mrb[171].mxu1 }
0x17e6   : > { %v9085_v59 = vadd.f32 %v9084_v0, %v9083_v22 }
0x17e8   : > { %v6007_v16 = vpack.c.bf16 %v9085_v59, %v9082_v18 }
0x17eb   : > { %8411 = vmatmul.mubr.msk.bf16.gmra.mrb[192].mxu0 %vm5502_vm5, %v5461_v30  ;;  %v9086_v30 = vpop.f32.mrb[172].mxu1 }
0x17ec   : > { %5609 = vmatprep.mubr.bf16.mxu0 %v10199_v41  ;;  %v9087_v6 = vpop.f32.mrb[173].mxu1 }
0x17ed   : > { %v9088_v5 = vadd.f32 %v9087_v6, %v9086_v30  ;;  %v9089_v20 = vpop.f32.mrb[174].mxu1 }
0x17ee   : > { %v9090_v45 = vpop.f32.mrb[175].mxu1 }
0x17ef   : > { %v9091_v35 = vadd.f32 %v9090_v45, %v9089_v20 }
0x17f1   : > { %v6008_v61 = vpack.c.bf16 %v9091_v35, %v9088_v5 }
0x17f3   : > { %8412 = vmatmul.mubr.msk.bf16.gmra.mrb[196].mxu0 %vm5502_vm5, %v5462_v63  ;;  %v9988_v63 = vld [vmem:[%s12501_s5 + $0x60] ss:$8 sps:$4 sm:$0xff]  }
0x17f4   : > { %5619 = vmatprep.mubr.bf16.mxu0 %v10199_v41 }
0x17fb   : > { %8413 = vmatmul.mubr.msk.bf16.gmra.mrb[200].mxu0 %vm5502_vm5, %v5463_v29  ;;  %v9996_v29 = vld [vmem:[%s12501_s5 + $0x84] ss:$8 sps:$4 sm:$0xff]  }
0x17fc   : > { %5629 = vmatprep.mubr.bf16.mxu0 %v10199_v41 }
0x1803   : > { %8414 = vmatmul.mubr.msk.bf16.gmra.mrb[204].mxu0 %vm5502_vm5, %v5464_v21 }
0x1804   : > { %5726 = vmatprep.mubr.bf16.mxu0 %v10199_v41 }
0x180b   : > { %8421 = vmatmul.mubr.msk.bf16.vlgmr.msra.gmra.mrb[176].mxu0 %vm5502_vm5, %v5249_v52  ;;  %v6219_v52 = vsub.s32 0, %v11842_v9 }
0x180c   : > { %6071 = vmatpush1.bf16.msra.mxu0 %v9988_v63  ;;  %5736 = vmatprep.mubr.bf16.mxu0 %v10199_v41 }
0x180d   : > { %6072 = vmatprep.subr.bf16.mxu0 %v9993_v49 }
0x1810   : > { %6073 = vmatpush1.bf16.msra.mxu0 %v9991_v26 }
0x1811   : > { %6074 = vmatprep.subr.bf16.mxu0 %v9996_v29 }
0x1813   : > { %8422 = vmatmul.mubr.msk.bf16.gmra.mrb[180].mxu0 %vm5502_vm5, %v5250_v31  ;;  %v11851_v31 = vrot.slane %v6215_v53, %v6219_v52 }
0x1814   : > { %5746 = vmatprep.mubr.bf16.mxu0 %v10199_v41  ;;  %6075 = vmatpush1.bf16.msra.mxu0 %v9994_v57 }
0x181b   : > { %8423 = vmatmul.mubr.msk.bf16.gmra.mrb[184].mxu0 %vm5502_vm5, %v5251_v23 }
0x181c   : > { %5756 = vmatprep.mubr.bf16.mxu0 %v10199_v41 }
0x1823   : > { %8424 = vmatmul.mubr.msk.bf16.gmra.mrb[188].mxu0 %vm5502_vm5, %v5252_v33 }
0x1824   : > { %5766 = vmatprep.mubr.bf16.mxu0 %v10199_v41 }
0x182b   : > { %8425 = vmatmul.mubr.msk.bf16.gmra.mrb[192].mxu0 %vm5502_vm5, %v5253_v43 }
0x182c   : > { %5776 = vmatprep.mubr.bf16.mxu0 %v10199_v41 }
0x1833   : > { %8426 = vmatmul.mubr.msk.bf16.gmra.mrb[196].mxu0 %vm5502_vm5, %v5254_v27 }
0x1834   : > { %5786 = vmatprep.mubr.bf16.mxu0 %v10199_v41 }
0x183b   : > { %8427 = vmatmul.mubr.msk.bf16.gmra.mrb[200].mxu0 %vm5502_vm5, %v5255_v15 }
0x183c   : > { %5796 = vmatprep.mubr.bf16.mxu0 %v10199_v41 }
0x1843   : > { %8428 = vmatmul.mubr.msk.bf16.gmra.mrb[204].mxu0 %vm5502_vm5, %v5256_v55 }
0x1844   : > { %6102 = vmatprep.mubr.bf16.mxu0 %v10199_v41 }
0x184b   : > { %8473 = vmatmul.mubr.msk.bf16.vlgmr.msra.gmra.mrb[176].mxu0 %vm5502_vm5, %v6001_v44 }
0x184c   : > { %6112 = vmatprep.mubr.bf16.mxu0 %v10199_v41 }
0x1853   : > { %8474 = vmatmul.mubr.msk.bf16.gmra.mrb[180].mxu0 %vm5502_vm5, %v6002_v11 }
0x1854   : > { %6122 = vmatprep.mubr.bf16.mxu0 %v10199_v41 }
0x185b   : > { %8475 = vmatmul.mubr.msk.bf16.gmra.mrb[184].mxu0 %vm5502_vm5, %v6003_v39 }
0x185c   : > { %6132 = vmatprep.mubr.bf16.mxu0 %v10199_v41 }
0x1863   : > { %8476 = vmatmul.mubr.msk.bf16.gmra.mrb[188].mxu0 %vm5502_vm5, %v6004_v51 }
0x1864   : > { %6142 = vmatprep.mubr.bf16.mxu0 %v10199_v41 }
0x186b   : > { %8477 = vmatmul.mubr.msk.bf16.gmra.mrb[192].mxu0 %vm5502_vm5, %v6005_v32 }
0x186c   : > { %6152 = vmatprep.mubr.bf16.mxu0 %v10199_v41 }
0x1873   : > { %8478 = vmatmul.mubr.msk.bf16.gmra.mrb[196].mxu0 %vm5502_vm5, %v6006_v19 }
0x1874   : > { %6162 = vmatprep.mubr.bf16.mxu0 %v10199_v41 }
0x187b   : > { %8479 = vmatmul.mubr.msk.bf16.gmra.mrb[200].mxu0 %vm5502_vm5, %v6007_v16 }
0x187c   : > { %6172 = vmatprep.mubr.bf16.mxu0 %v10199_v41 }
0x1883   : > { %8480 = vmatmul.mubr.msk.bf16.gmra.mrb[204].mxu0 %vm5502_vm5, %v6008_v61 }
0x1884   : > { %7130 = vmatprep.mubr.bf16.mxu0 %v10199_v41 }
0x191e   : > { %v6104_v50 = vpop.f32.mrb[176].mxu0 }
0x191f   : > { %v6227_v23 = vadd.f32 %v11851_v31, %v6104_v50  ;;  %v6106_v54 = vpop.f32.mrb[177].mxu0 }
0x1920   : > { %v6228_v25 = vadd.f32 %v11855_v38, %v6106_v54  ;;  %v6108_v28 = vpop.f32.mrb[178].mxu0 }
0x1921   : > { %v6229_v33 = vadd.f32 %v11851_v31, %v6108_v28  ;;  %v6110_v21 = vpop.f32.mrb[179].mxu0  ;;  %v6259_v60 = vmax.f32 %v6227_v23, 0.0 }
0x1922   : > { %v6230_v34 = vadd.f32 %v11855_v38, %v6110_v21  ;;  %v6260_v13 = vmax.f32 %v6228_v25, 0.0 }
0x1923   : > { %v6261_v43 = vmax.f32 %v6229_v33, 0.0 }
0x1924   : > { %v6262_v62 = vmax.f32 %v6230_v34, 0.0 }
0x1925   : > { %v11861_v27 = vpack.c.bf16 %v6261_v43, %v6259_v60 }
0x1926   : > { %v11863_v56 = vpack.c.bf16 %v6262_v62, %v6260_v13  ;;  %v6114_v7 = vpop.f32.mrb[180].mxu0 }
0x1927   : > { %v6231_v15 = vadd.f32 %v11851_v31, %v6114_v7  ;;  %v6116_v3 = vpop.f32.mrb[181].mxu0 }
0x1928   : > { %v6232_v40 = vadd.f32 %v11855_v38, %v6116_v3  ;;  %v6118_v14 = vpop.f32.mrb[182].mxu0  ;;  %6339 = vmatprep.subr.bf16.mxu1 %v11863_v56  ;;  %7098 = vmatprep.subr.bf16.mxu0 %v11863_v56 }
0x1929   : > { %v6233_v55 = vadd.f32 %v11851_v31, %v6118_v14  ;;  %v6120_v4 = vpop.f32.mrb[183].mxu0  ;;  %6340 = vmatpush1.bf16.msra.mxu1 %v11861_v27  ;;  %7099 = vmatpush1.bf16.msra.mxu0 %v11861_v27  ;;  %v6263_v12 = vmax.f32 %v6231_v15, 0.0 }
0x192a   : > { %v6234_v44 = vadd.f32 %v11855_v38, %v6120_v4  ;;  %v6264_v11 = vmax.f32 %v6232_v40, 0.0 }
0x192b   : > { %v6265_v1 = vmax.f32 %v6233_v55, 0.0 }
0x192c   : > { %v6266_v8 = vmax.f32 %v6234_v44, 0.0 }
0x192d   : > { %v11873_v24 = vpack.c.bf16 %v6265_v1, %v6263_v12 }
0x192e   : > { %v11875_v39 = vpack.c.bf16 %v6266_v8, %v6264_v11  ;;  %v6124_v37 = vpop.f32.mrb[184].mxu0 }
0x192f   : > { %v6235_v17 = vadd.f32 %v11851_v31, %v6124_v37  ;;  %v6126_v51 = vpop.f32.mrb[185].mxu0 }
0x1930   : > { %v6236_v2 = vadd.f32 %v11855_v38, %v6126_v51  ;;  %v6128_v42 = vpop.f32.mrb[186].mxu0  ;;  %6341 = vmatprep.subr.bf16.mxu1 %v11875_v39  ;;  %7100 = vmatprep.subr.bf16.mxu0 %v11875_v39 }
0x1931   : > { %v6237_v32 = vadd.f32 %v11851_v31, %v6128_v42  ;;  %v6130_v47 = vpop.f32.mrb[187].mxu0  ;;  %6342 = vmatpush1.bf16.msra.mxu1 %v11873_v24  ;;  %7101 = vmatpush1.bf16.msra.mxu0 %v11873_v24  ;;  %v6267_v19 = vmax.f32 %v6235_v17, 0.0 }
0x1932   : > { %v6238_v48 = vadd.f32 %v11855_v38, %v6130_v47  ;;  %v6268_v10 = vmax.f32 %v6236_v2, 0.0 }
0x1933   : > { %v6269_v36 = vmax.f32 %v6237_v32, 0.0 }
0x1934   : > { %v6270_v18 = vmax.f32 %v6238_v48, 0.0 }
0x1935   : > { %v11885_v22 = vpack.c.bf16 %v6269_v36, %v6267_v19 }
0x1936   : > { %v11887_v0 = vpack.c.bf16 %v6270_v18, %v6268_v10  ;;  %v6134_v59 = vpop.f32.mrb[188].mxu0 }
0x1937   : > { %v6239_v16 = vadd.f32 %v11851_v31, %v6134_v59  ;;  %v6136_v30 = vpop.f32.mrb[189].mxu0 }
0x1938   : > { %v6240_v6 = vadd.f32 %v11855_v38, %v6136_v30  ;;  %v6138_v5 = vpop.f32.mrb[190].mxu0  ;;  %6343 = vmatprep.subr.bf16.mxu1 %v11887_v0  ;;  %7102 = vmatprep.subr.bf16.mxu0 %v11887_v0 }
0x1939   : > { %v6241_v20 = vadd.f32 %v11851_v31, %v6138_v5  ;;  %v6140_v45 = vpop.f32.mrb[191].mxu0  ;;  %6344 = vmatpush1.bf16.msra.mxu1 %v11885_v22  ;;  %7103 = vmatpush1.bf16.msra.mxu0 %v11885_v22  ;;  %v6271_v61 = vmax.f32 %v6239_v16, 0.0 }
0x193a   : > { %v6242_v35 = vadd.f32 %v11855_v38, %v6140_v45  ;;  %v6272_v49 = vmax.f32 %v6240_v6, 0.0 }
0x193b   : > { %v6273_v63 = vmax.f32 %v6241_v20, 0.0 }
0x193c   : > { %v6274_v26 = vmax.f32 %v6242_v35, 0.0 }
0x193d   : > { %v11897_v29 = vpack.c.bf16 %v6273_v63, %v6271_v61 }
0x193e   : > { %v11899_v57 = vpack.c.bf16 %v6274_v26, %v6272_v49  ;;  %v6144_v46 = vpop.f32.mrb[192].mxu0 }
0x193f   : > { %v6243_v53 = vadd.f32 %v11851_v31, %v6144_v46  ;;  %v6146_v50 = vpop.f32.mrb[193].mxu0 }
0x1940   : > { %v6244_v23 = vadd.f32 %v11855_v38, %v6146_v50  ;;  %v6148_v54 = vpop.f32.mrb[194].mxu0  ;;  %6345 = vmatprep.subr.bf16.mxu1 %v11899_v57  ;;  %7104 = vmatprep.subr.bf16.mxu0 %v11899_v57 }
0x1941   : > { %v6245_v25 = vadd.f32 %v11851_v31, %v6148_v54  ;;  %v6150_v28 = vpop.f32.mrb[195].mxu0  ;;  %6346 = vmatpush1.bf16.msra.mxu1 %v11897_v29  ;;  %7105 = vmatpush1.bf16.msra.mxu0 %v11897_v29  ;;  %v6275_v21 = vmax.f32 %v6243_v53, 0.0 }
0x1942   : > { %v6246_v33 = vadd.f32 %v11855_v38, %v6150_v28  ;;  %v6276_v60 = vmax.f32 %v6244_v23, 0.0  ;;  %v9997_v28 = vld [vmem:[%s12503_s7] sm:$0xff]  }
0x1943   : > { %v6277_v34 = vmax.f32 %v6245_v25, 0.0 }
0x1944   : > { %v6278_v43 = vmax.f32 %v6246_v33, 0.0  ;;  %v10006_v33 = vld [vmem:[%s12503_s7 + $0x48] sm:$0xff]  }
0x1945   : > { %v11909_v13 = vpack.c.bf16 %v6277_v34, %v6275_v21  ;;  %v10012_v21 = vld [vmem:[%s12504_s8 + $0x110] ss:$8 sps:$4 sm:$0xff]   ;;  %v10017_v34 = vld [vmem:[%s12504_s8 + $0x124] ss:$8 sps:$4 sm:$0xff]  }
0x1946   : > { %v11911_v62 = vpack.c.bf16 %v6278_v43, %v6276_v60  ;;  %v6154_v7 = vpop.f32.mrb[196].mxu0  ;;  %v10002_v60 = vld [vmem:[%s12503_s7 + $0x28] sm:$0xff]  }
0x1947   : > { %v6247_v15 = vadd.f32 %v11851_v31, %v6154_v7  ;;  %v6156_v3 = vpop.f32.mrb[197].mxu0  ;;  %v10015_v43 = vld [vmem:[%s12504_s8 + $0x120] ss:$8 sps:$4 sm:$0xff]   ;;  %v10023_v7 = vld [vmem:[%s12504_s8 + $0x144] ss:$8 sps:$4 sm:$0xff]  }
0x1948   : > { %v6248_v40 = vadd.f32 %v11855_v38, %v6156_v3  ;;  %v6158_v14 = vpop.f32.mrb[198].mxu0  ;;  %6347 = vmatprep.subr.bf16.mxu1 %v11911_v62  ;;  %7106 = vmatprep.subr.bf16.mxu0 %v11911_v62  ;;  %v10021_v3 = vld [vmem:[%s12504_s8 + $0x140] ss:$8 sps:$4 sm:$0xff]  }
0x1949   : > { %v6249_v55 = vadd.f32 %v11851_v31, %v6158_v14  ;;  %v6160_v4 = vpop.f32.mrb[199].mxu0  ;;  %6348 = vmatpush1.bf16.msra.mxu1 %v11909_v13  ;;  %7107 = vmatpush1.bf16.msra.mxu0 %v11909_v13  ;;  %v6279_v12 = vmax.f32 %v6247_v15, 0.0  ;;  %v10003_v15 = vld [vmem:[%s12503_s7 + $0x30] sm:$0xff]  }
0x194a   : > { %v6250_v44 = vadd.f32 %v11855_v38, %v6160_v4  ;;  %v6280_v11 = vmax.f32 %v6248_v40, 0.0  ;;  %v10026_v40 = vld [vmem:[%s12504_s8 + $0x154] ss:$8 sps:$4 sm:$0xff]   ;;  %v10024_v14 = vld [vmem:[%s12504_s8 + $0x150] ss:$8 sps:$4 sm:$0xff]  }
0x194b   : > { %v6281_v1 = vmax.f32 %v6249_v55, 0.0  ;;  %v10029_v55 = vld [vmem:[%s12504_s8 + $0x164] ss:$8 sps:$4 sm:$0xff]   ;;  %v10004_v4 = vld [vmem:[%s12503_s7 + $0x38] sm:$0xff]  }
0x194c   : > { %v6282_v8 = vmax.f32 %v6250_v44, 0.0  ;;  %v10027_v44 = vld [vmem:[%s12504_s8 + $0x160] ss:$8 sps:$4 sm:$0xff]  }
0x194d   : > { %v11921_v37 = vpack.c.bf16 %v6281_v1, %v6279_v12  ;;  %v10030_v12 = vld [vmem:[%s12504_s8 + $0x170] ss:$8 sps:$4 sm:$0xff]   ;;  %v10033_v1 = vld [vmem:[%s12504_s8 + $0x180] ss:$8 sps:$4 sm:$0xff]  }
0x194e   : > { %v11923_v17 = vpack.c.bf16 %v6282_v8, %v6280_v11  ;;  %v6164_v51 = vpop.f32.mrb[200].mxu0  ;;  %v10035_v11 = vld [vmem:[%s12504_s8 + $0x184] ss:$8 sps:$4 sm:$0xff]   ;;  %v10038_v8 = vld [vmem:[%s12504_s8 + $0x194] ss:$8 sps:$4 sm:$0xff]  }
0x194f   : > { %v6251_v2 = vadd.f32 %v11851_v31, %v6164_v51  ;;  %v6166_v42 = vpop.f32.mrb[201].mxu0  ;;  %v10041_v51 = vld [vmem:[%s12504_s8 + $0x1a4] ss:$8 sps:$4 sm:$0xff]  }
0x1950   : > { %v6252_v32 = vadd.f32 %v11855_v38, %v6166_v42  ;;  %v6168_v47 = vpop.f32.mrb[202].mxu0  ;;  %6349 = vmatprep.subr.bf16.mxu1 %v11923_v17  ;;  %7108 = vmatprep.subr.bf16.mxu0 %v11923_v17  ;;  %v10042_v42 = vld [vmem:[%s12504_s8 + $0x1b0] ss:$8 sps:$4 sm:$0xff]  }
0x1951   : > { %v6253_v48 = vadd.f32 %v11851_v31, %v6168_v47  ;;  %v6170_v19 = vpop.f32.mrb[203].mxu0  ;;  %6350 = vmatpush1.bf16.msra.mxu1 %v11921_v37  ;;  %7109 = vmatpush1.bf16.msra.mxu0 %v11921_v37  ;;  %v6283_v10 = vmax.f32 %v6251_v2, 0.0  ;;  %v10044_v2 = vld [vmem:[%s12504_s8 + $0x1b4] ss:$8 sps:$4 sm:$0xff]   ;;  %v10047_v47 = vld [vmem:[%s12504_s8 + $0x1c4] ss:$8 sps:$4 sm:$0xff]  }
0x1952   : > { %v6254_v36 = vadd.f32 %v11855_v38, %v6170_v19  ;;  %v6284_v59 = vmax.f32 %v6252_v32, 0.0  ;;  %v10045_v32 = vld [vmem:[%s12504_s8 + $0x1c0] ss:$8 sps:$4 sm:$0xff]   ;;  %v10048_v19 = vld [vmem:[%s12504_s8 + $0x1d0] ss:$8 sps:$4 sm:$0xff]  }
0x1953   : > { %v6285_v18 = vmax.f32 %v6253_v48, 0.0  ;;  %v10050_v48 = vld [vmem:[%s12504_s8 + $0x1d4] ss:$8 sps:$4 sm:$0xff]  }
0x1954   : > { %v6286_v16 = vmax.f32 %v6254_v36, 0.0  ;;  %v10051_v36 = vld [vmem:[%s12504_s8 + $0x1e0] ss:$8 sps:$4 sm:$0xff]  }
0x1955   : > { %v6303_v30 = vpack.c.bf16 %v6285_v18, %v6283_v10  ;;  %v10053_v10 = vld [vmem:[%s12504_s8 + $0x1e4] ss:$8 sps:$4 sm:$0xff]   ;;  %v10056_v18 = vld [vmem:[%s12504_s8 + $0x1f4] ss:$8 sps:$4 sm:$0xff]  }
0x1956   : > { %v6304_v6 = vpack.c.bf16 %v6286_v16, %v6284_v59  ;;  %v6174_v5 = vpop.f32.mrb[204].mxu0  ;;  %v10054_v59 = vld [vmem:[%s12504_s8 + $0x1f0] ss:$8 sps:$4 sm:$0xff]   ;;  %v10059_v16 = vld [vmem:[%s12504_s8 + $0x4] ss:$8 sps:$4 sm:$0xff]  }
0x1957   : > { %v6255_v20 = vadd.f32 %v11851_v31, %v6174_v5  ;;  %v6176_v45 = vpop.f32.mrb[205].mxu0 }
0x1958   : > { %v6256_v35 = vadd.f32 %v11855_v38, %v6176_v45  ;;  %v6178_v61 = vpop.f32.mrb[206].mxu0  ;;  %6351 = vmatprep.subr.bf16.mxu1 %v6304_v6  ;;  %7110 = vmatprep.subr.bf16.mxu0 %v6304_v6 }
0x1959   : > { %v6257_v63 = vadd.f32 %v11851_v31, %v6178_v61  ;;  %v6180_v49 = vpop.f32.mrb[207].mxu0  ;;  %6352 = vmatpush1.bf16.msra.mxu1 %v6303_v30  ;;  %7111 = vmatpush1.bf16.msra.mxu0 %v6303_v30  ;;  %v6287_v46 = vmax.f32 %v6255_v20, 0.0  ;;  %v10005_v31 = vld [vmem:[%s12503_s7 + $0x40] sm:$0xff]  }
0x195a   : > { %v6258_v26 = vadd.f32 %v11855_v38, %v6180_v49  ;;  %v6288_v50 = vmax.f32 %v6256_v35, 0.0  ;;  %v9998_v38 = vld [vmem:[%s12503_s7 + $0x8] sm:$0xff]  }
0x195b   : > { %v6289_v53 = vmax.f32 %v6257_v63, 0.0 }
0x195c   : > { %v6290_v23 = vmax.f32 %v6258_v26, 0.0 }
0x195d   : > { %v6305_v54 = vpack.c.bf16 %v6289_v53, %v6287_v46 }
0x195e   : > { %v6306_v25 = vpack.c.bf16 %v6290_v23, %v6288_v50 }
0x1960   : > { %6353 = vmatprep.subr.bf16.mxu1 %v6306_v25  ;;  %7112 = vmatprep.subr.bf16.mxu0 %v6306_v25 }
0x1961   : > { %6354 = vmatpush1.bf16.msra.mxu1 %v6305_v54  ;;  %7113 = vmatpush1.bf16.msra.mxu0 %v6305_v54 }
0x1962   : > { %6485 = vmatprep.subr.bf16.mxu1 %v11863_v56  ;;  %v10007_v56 = vld [vmem:[%s12503_s7 + $0x50] sm:$0xff]  }
0x1964   : > { %6372 = vmatmul.mubr.bf16.vlgmr.msra.gmra.mrb[176].mxu1 %v9997_v28  ;;  %7131 = vmatmul.mubr.bf16.vlgmr.msra.gmra.mrb[208].mxu0 %v10005_v31 }
0x1965   : > { %6486 = vmatpush1.bf16.msra.mxu1 %v11861_v27  ;;  %6381 = vmatprep.mubr.bf16.mxu1 %v10199_v41  ;;  %v9999_v27 = vld [vmem:[%s12503_s7 + $0x10] sm:$0xff]  }
0x1966   : > { %6487 = vmatprep.subr.bf16.mxu1 %v11875_v39  ;;  %7140 = vmatprep.mubr.bf16.mxu0 %v10199_v41  ;;  %v10008_v39 = vld [vmem:[%s12503_s7 + $0x58] sm:$0xff]  }
0x1969   : > { %6488 = vmatpush1.bf16.msra.mxu1 %v11873_v24  ;;  %v10000_v24 = vld [vmem:[%s12503_s7 + $0x18] sm:$0xff]  }
0x196a   : > { %6489 = vmatprep.subr.bf16.mxu1 %v11887_v0  ;;  %v10001_v0 = vld [vmem:[%s12503_s7 + $0x20] sm:$0xff]  }
0x196c   : > { %6382 = vmatmul.mubr.bf16.gmra.mrb[180].mxu1 %v9998_v38  ;;  %7141 = vmatmul.mubr.bf16.gmra.mrb[212].mxu0 %v10006_v33 }
0x196d   : > { %6490 = vmatpush1.bf16.msra.mxu1 %v11885_v22  ;;  %6391 = vmatprep.mubr.bf16.mxu1 %v10199_v41  ;;  %v10011_v22 = vld [vmem:[%s12504_s8 + $0x104] ss:$8 sps:$4 sm:$0xff]  }
0x196e   : > { %6491 = vmatprep.subr.bf16.mxu1 %v11899_v57  ;;  %7150 = vmatprep.mubr.bf16.mxu0 %v10199_v41  ;;  %v10014_v57 = vld [vmem:[%s12504_s8 + $0x114] ss:$8 sps:$4 sm:$0xff]  }
0x1971   : > { %6492 = vmatpush1.bf16.msra.mxu1 %v11897_v29  ;;  %v10009_v29 = vld [vmem:[%s12504_s8 + $0x100] ss:$8 sps:$4 sm:$0xff]  }
0x1972   : > { %6493 = vmatprep.subr.bf16.mxu1 %v11911_v62  ;;  %v10018_v62 = vld [vmem:[%s12504_s8 + $0x130] ss:$8 sps:$4 sm:$0xff]  }
0x1974   : > { %6392 = vmatmul.mubr.bf16.gmra.mrb[184].mxu1 %v9999_v27  ;;  %7151 = vmatmul.mubr.bf16.gmra.mrb[216].mxu0 %v10007_v56 }
0x1975   : > { %6494 = vmatpush1.bf16.msra.mxu1 %v11909_v13  ;;  %6401 = vmatprep.mubr.bf16.mxu1 %v10199_v41  ;;  %v10020_v13 = vld [vmem:[%s12504_s8 + $0x134] ss:$8 sps:$4 sm:$0xff]  }
0x1976   : > { %6495 = vmatprep.subr.bf16.mxu1 %v11923_v17  ;;  %7160 = vmatprep.mubr.bf16.mxu0 %v10199_v41  ;;  %v10039_v17 = vld [vmem:[%s12504_s8 + $0x1a0] ss:$8 sps:$4 sm:$0xff]  }
0x1979   : > { %6496 = vmatpush1.bf16.msra.mxu1 %v11921_v37  ;;  %v10036_v37 = vld [vmem:[%s12504_s8 + $0x190] ss:$8 sps:$4 sm:$0xff]  }
0x197a   : > { %6497 = vmatprep.subr.bf16.mxu1 %v6304_v6 }
0x197c   : > { %6402 = vmatmul.mubr.bf16.gmra.mrb[188].mxu1 %v10000_v24  ;;  %7161 = vmatmul.mubr.bf16.gmra.mrb[220].mxu0 %v10008_v39 }
0x197d   : > { %6498 = vmatpush1.bf16.msra.mxu1 %v6303_v30  ;;  %6517 = vmatprep.mubr.bf16.mxu1 %v10199_v41 }
0x197e   : > { %6499 = vmatprep.subr.bf16.mxu1 %v6306_v25  ;;  %7556 = vmatprep.mubr.bf16.mxu0 %v10199_v41 }
0x1981   : > { %6500 = vmatpush1.bf16.msra.mxu1 %v6305_v54 }
0x1982   : > { %6759 = vmatprep.subr.bf16.mxu1 %v10011_v22 }
0x1984   : > { %6518 = vmatmul.mubr.bf16.vlgmr.msra.gmra.mrb[192].mxu1 %v10001_v0 }
0x1985   : > { %6527 = vmatprep.mubr.bf16.mxu1 %v10199_v41  ;;  %6760 = vmatpush1.bf16.msra.mxu1 %v10009_v29 }
0x1986   : > { %6761 = vmatprep.subr.bf16.mxu1 %v10014_v57 }
0x1989   : > { %6762 = vmatpush1.bf16.msra.mxu1 %v10012_v21 }
0x198a   : > { %6763 = vmatprep.subr.bf16.mxu1 %v10017_v34 }
0x198c   : > { %6528 = vmatmul.mubr.bf16.gmra.mrb[196].mxu1 %v10002_v60 }
0x198d   : > { %6537 = vmatprep.mubr.bf16.mxu1 %v10199_v41  ;;  %6764 = vmatpush1.bf16.msra.mxu1 %v10015_v43 }
0x198e   : > { %6765 = vmatprep.subr.bf16.mxu1 %v10020_v13 }
0x1991   : > { %6766 = vmatpush1.bf16.msra.mxu1 %v10018_v62 }
0x1992   : > { %6767 = vmatprep.subr.bf16.mxu1 %v10023_v7 }
0x1994   : > { %6538 = vmatmul.mubr.bf16.gmra.mrb[200].mxu1 %v10003_v15 }
0x1995   : > { %6547 = vmatprep.mubr.bf16.mxu1 %v10199_v41  ;;  %6768 = vmatpush1.bf16.msra.mxu1 %v10021_v3  ;;  %v10032_v41 = vld [vmem:[%s12504_s8 + $0x174] ss:$8 sps:$4 sm:$0xff]   ;;  %v10057_v3 = vld [vmem:[%s12504_s8] ss:$8 sps:$4 sm:$0xff]  }
0x1996   : > { %6769 = vmatprep.subr.bf16.mxu1 %v10026_v40 }
0x1999   : > { %6770 = vmatpush1.bf16.msra.mxu1 %v10024_v14  ;;  %v10062_v14 = vld [vmem:[%s12504_s8 + $0x14] ss:$8 sps:$4 sm:$0xff]  }
0x199a   : > { %6771 = vmatprep.subr.bf16.mxu1 %v10029_v55 }
0x199c   : > { %6548 = vmatmul.mubr.bf16.gmra.mrb[204].mxu1 %v10004_v4 }
0x199d   : > { %6772 = vmatpush1.bf16.msra.mxu1 %v10027_v44 }
0x199e   : > { %6773 = vmatprep.subr.bf16.mxu1 %v10032_v41 }
0x19a1   : > { %6774 = vmatpush1.bf16.msra.mxu1 %v10030_v12 }
0x19a2   : > { %6775 = vmatprep.subr.bf16.mxu1 %v10035_v11 }
0x19a5   : > { %6776 = vmatpush1.bf16.msra.mxu1 %v10033_v1  ;;  %v10060_v1 = vld [vmem:[%s12504_s8 + $0x10] ss:$8 sps:$4 sm:$0xff]  }
0x19a6   : > { %6777 = vmatprep.subr.bf16.mxu1 %v10038_v8 }
0x19a9   : > { %6778 = vmatpush1.bf16.msra.mxu1 %v10036_v37 }
0x19aa   : > { %6779 = vmatprep.subr.bf16.mxu1 %v10041_v51 }
0x19ad   : > { %6780 = vmatpush1.bf16.msra.mxu1 %v10039_v17  ;;  %v10065_v17 = vld [vmem:[%s12504_s8 + $0x24] ss:$8 sps:$4 sm:$0xff]  }
0x19ae   : > { %6781 = vmatprep.subr.bf16.mxu1 %v10044_v2 }
0x19b1   : > { %6782 = vmatpush1.bf16.msra.mxu1 %v10042_v42 }
0x19b2   : > { %6783 = vmatprep.subr.bf16.mxu1 %v10047_v47 }
0x19b5   : > { %6784 = vmatpush1.bf16.msra.mxu1 %v10045_v32 }
0x19b6   : > { %6785 = vmatprep.subr.bf16.mxu1 %v10050_v48 }
0x19b9   : > { %6786 = vmatpush1.bf16.msra.mxu1 %v10048_v19 }
0x19ba   : > { %6787 = vmatprep.subr.bf16.mxu1 %v10053_v10  ;;  %v10068_v10 = vld [vmem:[%s12504_s8 + $0x34] ss:$8 sps:$4 sm:$0xff]  }
0x19bd   : > { %6788 = vmatpush1.bf16.msra.mxu1 %v10051_v36  ;;  %v10063_v36 = vld [vmem:[%s12504_s8 + $0x20] ss:$8 sps:$4 sm:$0xff]  }
0x19be   : > { %6789 = vmatprep.subr.bf16.mxu1 %v10056_v18 }
0x19c1   : > { %6790 = vmatpush1.bf16.msra.mxu1 %v10054_v59 }
0x19c2   : > { %6992 = vmatprep.subr.bf16.mxu1 %v10059_v16  ;;  %v10066_v16 = vld [vmem:[%s12504_s8 + $0x30] ss:$8 sps:$4 sm:$0xff]  }
0x1a37   : > { %v12095_v30 = vpop.f32.mrb[176].mxu1  ;;  %v12143_v22 = vpop.f32.mrb[208].mxu0 }
0x1a38   : > { %v12097_v6 = vpop.f32.mrb[177].mxu1  ;;  %v12145_v0 = vpop.f32.mrb[209].mxu0 }
0x1a39   : > { %v12099_v5 = vpop.f32.mrb[178].mxu1  ;;  %v12147_v29 = vpop.f32.mrb[210].mxu0 }
0x1a3a   : > { %v6412_v20 = vpack.c.bf16 %v12099_v5, %v12095_v30  ;;  %v12103_v45 = vpop.f32.mrb[179].mxu1  ;;  %v7171_v57 = vpack.c.bf16 %v12147_v29, %v12143_v22  ;;  %v12151_v21 = vpop.f32.mrb[211].mxu0  ;;  %v10111_v30 = vld [vmem:[%s12504_s8 + $0x220] ss:$8 sps:$4 sm:$0xff]   ;;  %v10116_v5 = vld [vmem:[%s12504_s8 + $0x234] ss:$8 sps:$4 sm:$0xff]  }
0x1a3b   : > { %v6413_v35 = vpack.c.bf16 %v12103_v45, %v12097_v6  ;;  %v7172_v60 = vpack.c.bf16 %v12151_v21, %v12145_v0  ;;  %v10086_v6 = vld [vmem:[%s12504_s8 + $0x94] ss:$8 sps:$4 sm:$0xff]   ;;  %v10084_v45 = vld [vmem:[%s12504_s8 + $0x90] ss:$8 sps:$4 sm:$0xff]   ;;  %v7461_v22 = vld [vmem:[%s12505_s9] sm:$0x3] }
0x1a3c   : > { %v10146_v0 = vld [vmem:[%s12504_s8 + $0x2d4] ss:$8 sps:$4 sm:$0xff]   ;;  %v10144_v21 = vld [vmem:[%s12504_s8 + $0x2d0] ss:$8 sps:$4 sm:$0xff]   ;;  %v7466_v29 = vrot.slane %v7461_v22, %v6219_v52 }
0x1a3f   : > { %v12107_v61 = vpop.f32.mrb[180].mxu1  ;;  %v12158_v40 = vpop.f32.mrb[212].mxu0 }
0x1a40   : > { %v12109_v63 = vpop.f32.mrb[181].mxu1  ;;  %v12163_v55 = vpop.f32.mrb[213].mxu0 }
0x1a41   : > { %v12111_v49 = vpop.f32.mrb[182].mxu1  ;;  %v12165_v4 = vpop.f32.mrb[214].mxu0 }
0x1a42   : > { %v6414_v26 = vpack.c.bf16 %v12111_v49, %v12107_v61  ;;  %v12115_v46 = vpop.f32.mrb[183].mxu1  ;;  %v7173_v44 = vpack.c.bf16 %v12165_v4, %v12158_v40  ;;  %v12169_v41 = vpop.f32.mrb[215].mxu0  ;;  %v10117_v61 = vld [vmem:[%s12504_s8 + $0x240] ss:$8 sps:$4 sm:$0xff]   ;;  %v10122_v49 = vld [vmem:[%s12504_s8 + $0x254] ss:$8 sps:$4 sm:$0xff]  }
0x1a43   : > { %v6415_v53 = vpack.c.bf16 %v12115_v46, %v12109_v63  ;;  %v7174_v11 = vpack.c.bf16 %v12169_v41, %v12163_v55  ;;  %v10119_v63 = vld [vmem:[%s12504_s8 + $0x244] ss:$8 sps:$4 sm:$0xff]  }
0x1a44   : > { %v10125_v46 = vld [vmem:[%s12504_s8 + $0x264] ss:$8 sps:$4 sm:$0xff]  }
0x1a47   : > { %v12119_v50 = vpop.f32.mrb[184].mxu1  ;;  %v12176_v8 = vpop.f32.mrb[216].mxu0 }
0x1a48   : > { %v12121_v23 = vpop.f32.mrb[185].mxu1  ;;  %v12181_v51 = vpop.f32.mrb[217].mxu0 }
0x1a49   : > { %v12123_v54 = vpop.f32.mrb[186].mxu1  ;;  %v12183_v42 = vpop.f32.mrb[218].mxu0 }
0x1a4a   : > { %v6416_v25 = vpack.c.bf16 %v12123_v54, %v12119_v50  ;;  %v12127_v28 = vpop.f32.mrb[187].mxu1  ;;  %v7175_v48 = vpack.c.bf16 %v12183_v42, %v12176_v8  ;;  %v12193_v18 = vpop.f32.mrb[219].mxu0  ;;  %v10128_v50 = vld [vmem:[%s12504_s8 + $0x274] ss:$8 sps:$4 sm:$0xff]   ;;  %v10131_v54 = vld [vmem:[%s12504_s8 + $0x284] ss:$8 sps:$4 sm:$0xff]  }
0x1a4b   : > { %v6417_v31 = vpack.c.bf16 %v12127_v28, %v12121_v23  ;;  %v10126_v23 = vld [vmem:[%s12504_s8 + $0x270] ss:$8 sps:$4 sm:$0xff]   ;;  %v10134_v28 = vld [vmem:[%s12504_s8 + $0x294] ss:$8 sps:$4 sm:$0xff]  }
0x1a4f   : > { %v12131_v38 = vpop.f32.mrb[188].mxu1 }
0x1a50   : > { %v12133_v33 = vpop.f32.mrb[189].mxu1 }
0x1a51   : > { %v12135_v27 = vpop.f32.mrb[190].mxu1 }
0x1a52   : > { %v6418_v56 = vpack.c.bf16 %v12135_v27, %v12131_v38  ;;  %v12139_v24 = vpop.f32.mrb[191].mxu1  ;;  %v10137_v38 = vld [vmem:[%s12504_s8 + $0x2a4] ss:$8 sps:$4 sm:$0xff]   ;;  %v10140_v27 = vld [vmem:[%s12504_s8 + $0x2b4] ss:$8 sps:$4 sm:$0xff]  }
0x1a53   : > { %v6419_v39 = vpack.c.bf16 %v12139_v24, %v12133_v33  ;;  %v10135_v33 = vld [vmem:[%s12504_s8 + $0x2a0] ss:$8 sps:$4 sm:$0xff]   ;;  %v10143_v24 = vld [vmem:[%s12504_s8 + $0x2c4] ss:$8 sps:$4 sm:$0xff]  }
0x1a57   : > { %v6519_v34 = vpop.f32.mrb[192].mxu1 }
0x1a58   : > { %v6521_v43 = vpop.f32.mrb[193].mxu1 }
0x1a59   : > { %v6523_v13 = vpop.f32.mrb[194].mxu1 }
0x1a5a   : > { %v6558_v62 = vpack.c.bf16 %v6523_v13, %v6519_v34  ;;  %v6525_v7 = vpop.f32.mrb[195].mxu1  ;;  %v7176_v34 = vpack.c.bf16 %v12193_v18, %v12181_v51 }
0x1a5b   : > { %v6559_v15 = vpack.c.bf16 %v6525_v7, %v6521_v43  ;;  %v12200_v43 = vpop.f32.mrb[220].mxu0 }
0x1a5c   : > { %v12205_v7 = vpop.f32.mrb[221].mxu0 }
0x1a5d   : > { %6791 = vmatprep.mubr.bf16.mxu1 %v6559_v15 }
0x1a5e   : > { %6792 = vmatmul.mubr.bf16.vlgmr.msra.gmra.mrb[208].mxu1 %v6558_v62  ;;  %v10071_v62 = vld [vmem:[%s12504_s8 + $0x44] ss:$8 sps:$4 sm:$0xff]  }
0x1a5f   : > { %6993 = vmatpush1.bf16.msra.mxu1 %v10057_v3  ;;  %v6529_v12 = vpop.f32.mrb[196].mxu1  ;;  %v12207_v3 = vpop.f32.mrb[222].mxu0 }
0x1a60   : > { %v6531_v37 = vpop.f32.mrb[197].mxu1  ;;  %6994 = vmatprep.subr.bf16.mxu1 %v10062_v14 }
0x1a61   : > { %v6533_v2 = vpop.f32.mrb[198].mxu1 }
0x1a62   : > { %v6560_v32 = vpack.c.bf16 %v6533_v2, %v6529_v12  ;;  %v6535_v47 = vpop.f32.mrb[199].mxu1  ;;  %v10074_v2 = vld [vmem:[%s12504_s8 + $0x54] ss:$8 sps:$4 sm:$0xff]  }
0x1a63   : > { %v6561_v19 = vpack.c.bf16 %v6535_v47, %v6531_v37  ;;  %6995 = vmatpush1.bf16.msra.mxu1 %v10060_v1  ;;  %v7177_v1 = vpack.c.bf16 %v12207_v3, %v12200_v43 }
0x1a64   : > { %6996 = vmatprep.subr.bf16.mxu1 %v10065_v17  ;;  %v10069_v17 = vld [vmem:[%s12504_s8 + $0x40] ss:$8 sps:$4 sm:$0xff]  }
0x1a65   : > { %6801 = vmatprep.mubr.bf16.mxu1 %v6561_v19  ;;  %v10072_v19 = vld [vmem:[%s12504_s8 + $0x50] ss:$8 sps:$4 sm:$0xff]  }
0x1a66   : > { %6802 = vmatmul.mubr.bf16.gmra.mrb[212].mxu1 %v6560_v32  ;;  %v12217_v32 = vpop.f32.mrb[223].mxu0 }
0x1a67   : > { %6997 = vmatpush1.bf16.msra.mxu1 %v10063_v36  ;;  %v6539_v59 = vpop.f32.mrb[200].mxu1  ;;  %v7178_v36 = vpack.c.bf16 %v12217_v32, %v12205_v7 }
0x1a68   : > { %v6541_v13 = vpop.f32.mrb[201].mxu1  ;;  %6998 = vmatprep.subr.bf16.mxu1 %v10068_v10 }
0x1a69   : > { %v6543_v15 = vpop.f32.mrb[202].mxu1 }
0x1a6a   : > { %v6562_v14 = vpack.c.bf16 %v6543_v15, %v6539_v59  ;;  %v6545_v12 = vpop.f32.mrb[203].mxu1  ;;  %v10077_v59 = vld [vmem:[%s12504_s8 + $0x64] ss:$8 sps:$4 sm:$0xff]  }
0x1a6b   : > { %v6563_v37 = vpack.c.bf16 %v6545_v12, %v6541_v13  ;;  %6999 = vmatpush1.bf16.msra.mxu1 %v10066_v16  ;;  %v10080_v12 = vld [vmem:[%s12504_s8 + $0x74] ss:$8 sps:$4 sm:$0xff]  }
0x1a6c   : > { %7000 = vmatprep.subr.bf16.mxu1 %v10071_v62 }
0x1a6d   : > { %6811 = vmatprep.mubr.bf16.mxu1 %v6563_v37  ;;  %v10078_v37 = vld [vmem:[%s12504_s8 + $0x70] ss:$8 sps:$4 sm:$0xff]  }
0x1a6e   : > { %6812 = vmatmul.mubr.bf16.gmra.mrb[216].mxu1 %v6562_v14  ;;  %v10075_v14 = vld [vmem:[%s12504_s8 + $0x60] ss:$8 sps:$4 sm:$0xff]  }
0x1a6f   : > { %7001 = vmatpush1.bf16.msra.mxu1 %v10069_v17  ;;  %v6549_v47 = vpop.f32.mrb[204].mxu1  ;;  %v10083_v17 = vld [vmem:[%s12504_s8 + $0x84] ss:$8 sps:$4 sm:$0xff]  }
0x1a70   : > { %v6551_v10 = vpop.f32.mrb[205].mxu1  ;;  %7002 = vmatprep.subr.bf16.mxu1 %v10074_v2  ;;  %v10081_v2 = vld [vmem:[%s12504_s8 + $0x80] ss:$8 sps:$4 sm:$0xff]  }
0x1a71   : > { %v6553_v16 = vpop.f32.mrb[206].mxu1 }
0x1a72   : > { %v6564_v13 = vpack.c.bf16 %v6553_v16, %v6549_v47  ;;  %v6555_v62 = vpop.f32.mrb[207].mxu1  ;;  %v10087_v47 = vld [vmem:[%s12504_s8 + $0xa0] ss:$8 sps:$4 sm:$0xff]  }
0x1a73   : > { %v6565_v15 = vpack.c.bf16 %v6555_v62, %v6551_v10  ;;  %7003 = vmatpush1.bf16.msra.mxu1 %v10072_v19  ;;  %v10092_v19 = vld [vmem:[%s12504_s8 + $0xb4] ss:$8 sps:$4 sm:$0xff]   ;;  %v10090_v10 = vld [vmem:[%s12504_s8 + $0xb0] ss:$8 sps:$4 sm:$0xff]   ;;  %v10093_v16 = vld [vmem:[%s12504_s8 + $0xc0] ss:$8 sps:$4 sm:$0xff]  }
0x1a74   : > { %7004 = vmatprep.subr.bf16.mxu1 %v10077_v59  ;;  %v10095_v59 = vld [vmem:[%s12504_s8 + $0xc4] ss:$8 sps:$4 sm:$0xff]   ;;  %v10096_v62 = vld [vmem:[%s12504_s8 + $0xd0] ss:$8 sps:$4 sm:$0xff]  }
0x1a75   : > { %6821 = vmatprep.mubr.bf16.mxu1 %v6565_v15  ;;  %v10101_v15 = vld [vmem:[%s12504_s8 + $0xe4] ss:$8 sps:$4 sm:$0xff]  }
0x1a76   : > { %6822 = vmatmul.mubr.bf16.gmra.mrb[220].mxu1 %v6564_v13  ;;  %v10098_v13 = vld [vmem:[%s12504_s8 + $0xd4] ss:$8 sps:$4 sm:$0xff]  }
0x1a77   : > { %7005 = vmatpush1.bf16.msra.mxu1 %v10075_v14  ;;  %7024 = vmatprep.mubr.bf16.mxu1 %v6413_v35  ;;  %v10089_v35 = vld [vmem:[%s12504_s8 + $0xa4] ss:$8 sps:$4 sm:$0xff]   ;;  %v10099_v14 = vld [vmem:[%s12504_s8 + $0xe0] ss:$8 sps:$4 sm:$0xff]  }
0x1a78   : > { %7006 = vmatprep.subr.bf16.mxu1 %v10080_v12  ;;  %v10104_v12 = vld [vmem:[%s12504_s8 + $0xf4] ss:$8 sps:$4 sm:$0xff]  }
0x1a7b   : > { %7007 = vmatpush1.bf16.msra.mxu1 %v10078_v37  ;;  %v10102_v37 = vld [vmem:[%s12504_s8 + $0xf0] ss:$8 sps:$4 sm:$0xff]  }
0x1a7c   : > { %7008 = vmatprep.subr.bf16.mxu1 %v10083_v17  ;;  %v10107_v17 = vld [vmem:[%s12504_s8 + $0x204] ss:$8 sps:$4 sm:$0xff]  }
0x1a7f   : > { %7009 = vmatpush1.bf16.msra.mxu1 %v10081_v2  ;;  %v10105_v2 = vld [vmem:[%s12504_s8 + $0x200] ss:$8 sps:$4 sm:$0xff]  }
0x1a80   : > { %7010 = vmatprep.subr.bf16.mxu1 %v10086_v6  ;;  %v10110_v6 = vld [vmem:[%s12504_s8 + $0x214] ss:$8 sps:$4 sm:$0xff]  }
0x1a83   : > { %7011 = vmatpush1.bf16.msra.mxu1 %v10084_v45  ;;  %v10108_v45 = vld [vmem:[%s12504_s8 + $0x210] ss:$8 sps:$4 sm:$0xff]  }
0x1a84   : > { %7012 = vmatprep.subr.bf16.mxu1 %v10089_v35  ;;  %v10113_v35 = vld [vmem:[%s12504_s8 + $0x224] ss:$8 sps:$4 sm:$0xff]  }
0x1a87   : > { %7013 = vmatpush1.bf16.msra.mxu1 %v10087_v47  ;;  %v10147_v47 = vld [vmem:[%s12504_s8 + $0x2e0] ss:$8 sps:$4 sm:$0xff]  }
0x1a88   : > { %7014 = vmatprep.subr.bf16.mxu1 %v10092_v19  ;;  %v10152_v19 = vld [vmem:[%s12504_s8 + $0x2f4] ss:$8 sps:$4 sm:$0xff]  }
0x1a8b   : > { %7015 = vmatpush1.bf16.msra.mxu1 %v10090_v10  ;;  %v10150_v10 = vld [vmem:[%s12504_s8 + $0x2f0] ss:$8 sps:$4 sm:$0xff]  }
0x1a8c   : > { %7016 = vmatprep.subr.bf16.mxu1 %v10095_v59 }
0x1a8f   : > { %7017 = vmatpush1.bf16.msra.mxu1 %v10093_v16 }
0x1a90   : > { %7018 = vmatprep.subr.bf16.mxu1 %v10098_v13 }
0x1a93   : > { %7019 = vmatpush1.bf16.msra.mxu1 %v10096_v62 }
0x1a94   : > { %7020 = vmatprep.subr.bf16.mxu1 %v10101_v15 }
0x1a97   : > { %7021 = vmatpush1.bf16.msra.mxu1 %v10099_v14 }
0x1a98   : > { %7022 = vmatprep.subr.bf16.mxu1 %v10104_v12 }
0x1a9b   : > { %7023 = vmatpush1.bf16.msra.mxu1 %v10102_v37 }
0x1a9c   : > { %7372 = vmatprep.subr.bf16.mxu1 %v10107_v17 }
0x1a9e   : > { %7025 = vmatmul.mubr.bf16.vlgmr.msra.gmra.mrb[208].mxu1 %v6412_v20  ;;  %v10114_v20 = vld [vmem:[%s12504_s8 + $0x230] ss:$8 sps:$4 sm:$0xff]  }
0x1a9f   : > { %7034 = vmatprep.mubr.bf16.mxu1 %v6415_v53  ;;  %7373 = vmatpush1.bf16.msra.mxu1 %v10105_v2  ;;  %v10123_v53 = vld [vmem:[%s12504_s8 + $0x260] ss:$8 sps:$4 sm:$0xff]  }
0x1aa0   : > { %7374 = vmatprep.subr.bf16.mxu1 %v10110_v6 }
0x1aa3   : > { %7375 = vmatpush1.bf16.msra.mxu1 %v10108_v45 }
0x1aa4   : > { %7376 = vmatprep.subr.bf16.mxu1 %v10113_v35 }
0x1aa6   : > { %7035 = vmatmul.mubr.bf16.gmra.mrb[212].mxu1 %v6414_v26  ;;  %v10120_v26 = vld [vmem:[%s12504_s8 + $0x250] ss:$8 sps:$4 sm:$0xff]  }
0x1aa7   : > { %7044 = vmatprep.mubr.bf16.mxu1 %v6417_v31  ;;  %7377 = vmatpush1.bf16.msra.mxu1 %v10111_v30  ;;  %v10132_v31 = vld [vmem:[%s12504_s8 + $0x290] ss:$8 sps:$4 sm:$0xff]  }
0x1aa8   : > { %7378 = vmatprep.subr.bf16.mxu1 %v10116_v5 }
0x1aab   : > { %7379 = vmatpush1.bf16.msra.mxu1 %v10114_v20 }
0x1aac   : > { %7380 = vmatprep.subr.bf16.mxu1 %v10119_v63 }
0x1aae   : > { %7045 = vmatmul.mubr.bf16.gmra.mrb[216].mxu1 %v6416_v25  ;;  %v10129_v25 = vld [vmem:[%s12504_s8 + $0x280] ss:$8 sps:$4 sm:$0xff]  }
0x1aaf   : > { %7054 = vmatprep.mubr.bf16.mxu1 %v6419_v39  ;;  %7381 = vmatpush1.bf16.msra.mxu1 %v10117_v61  ;;  %v10141_v39 = vld [vmem:[%s12504_s8 + $0x2c0] ss:$8 sps:$4 sm:$0xff]  }
0x1ab0   : > { %7382 = vmatprep.subr.bf16.mxu1 %v10122_v49 }
0x1ab3   : > { %7383 = vmatpush1.bf16.msra.mxu1 %v10120_v26 }
0x1ab4   : > { %7384 = vmatprep.subr.bf16.mxu1 %v10125_v46 }
0x1ab6   : > { %7055 = vmatmul.mubr.bf16.gmra.mrb[220].mxu1 %v6418_v56  ;;  %v10138_v56 = vld [vmem:[%s12504_s8 + $0x2b0] ss:$8 sps:$4 sm:$0xff]  }
0x1ab7   : > { %7385 = vmatpush1.bf16.msra.mxu1 %v10123_v53  ;;  %7404 = vmatprep.mubr.bf16.mxu1 %v7172_v60  ;;  %v10149_v60 = vld [vmem:[%s12504_s8 + $0x2e4] ss:$8 sps:$4 sm:$0xff]  }
0x1ab8   : > { %7386 = vmatprep.subr.bf16.mxu1 %v10128_v50 }
0x1abb   : > { %7387 = vmatpush1.bf16.msra.mxu1 %v10126_v23 }
0x1abc   : > { %7388 = vmatprep.subr.bf16.mxu1 %v10131_v54 }
0x1abf   : > { %7389 = vmatpush1.bf16.msra.mxu1 %v10129_v25 }
0x1ac0   : > { %7390 = vmatprep.subr.bf16.mxu1 %v10134_v28 }
0x1ac3   : > { %7391 = vmatpush1.bf16.msra.mxu1 %v10132_v31 }
0x1ac4   : > { %7392 = vmatprep.subr.bf16.mxu1 %v10137_v38 }
0x1ac7   : > { %7393 = vmatpush1.bf16.msra.mxu1 %v10135_v33 }
0x1ac8   : > { %7394 = vmatprep.subr.bf16.mxu1 %v10140_v27 }
0x1acb   : > { %7395 = vmatpush1.bf16.msra.mxu1 %v10138_v56 }
0x1acc   : > { %7396 = vmatprep.subr.bf16.mxu1 %v10143_v24 }
0x1acf   : > { %7397 = vmatpush1.bf16.msra.mxu1 %v10141_v39 }
0x1ad0   : > { %7398 = vmatprep.subr.bf16.mxu1 %v10146_v0 }
0x1ad3   : > { %7399 = vmatpush1.bf16.msra.mxu1 %v10144_v21  ;;  %v10154_v21 = vld [vmem:[%s12507_s11 + $0x40] sm:$0xff]  }
0x1ad4   : > { %7400 = vmatprep.subr.bf16.mxu1 %v10149_v60  ;;  %v10153_v60 = vld [vmem:[%s12506_s10] sm:$0xff]  }
0x1ad7   : > { %7401 = vmatpush1.bf16.msra.mxu1 %v10147_v47  ;;  %v10155_v47 = vld [vmem:[%s12507_s11] sm:$0xff]  }
0x1ad8   : > { %7402 = vmatprep.subr.bf16.mxu1 %v10152_v19  ;;  %v10156_v19 = vld [vmem:[%s12507_s11 + $0x48] sm:$0xff]  }
0x1adb   : > { %7403 = vmatpush1.bf16.msra.mxu1 %v10150_v10  ;;  %v10157_v10 = vld [vmem:[%s12507_s11 + $0x8] sm:$0xff]  }
0x1ade   : > { %7405 = vmatmul.mubr.bf16.vlgmr.msra.gmra.mrb[208].mxu1 %v7171_v57  ;;  %v7470_v57 = vrot.slane %v7461_v22, %v6223_v58  ;;  %v10158_v22 = vld [vmem:[%s12507_s11 + $0x50] sm:$0xff]  }
0x1adf   : > { %7414 = vmatprep.mubr.bf16.mxu1 %v7174_v11 }
0x1ae6   : > { %7415 = vmatmul.mubr.bf16.gmra.mrb[212].mxu1 %v7173_v44 }
0x1ae7   : > { %7424 = vmatprep.mubr.bf16.mxu1 %v7176_v34 }
0x1aee   : > { %7425 = vmatmul.mubr.bf16.gmra.mrb[216].mxu1 %v7175_v48 }
0x1aef   : > { %7434 = vmatprep.mubr.bf16.mxu1 %v7178_v36 }
0x1af6   : > { %7435 = vmatmul.mubr.bf16.gmra.mrb[220].mxu1 %v7177_v1 }
0x1bb1   : > { %v7406_v40 = vpop.f32.mrb[208].mxu1 }
0x1bb2   : > { %v7473_v55 = vadd.f32 %v7466_v29, %v7406_v40  ;;  %v7408_v4 = vpop.f32.mrb[209].mxu1  ;;  %v10161_v40 = vld [vmem:[%s12507_s11 + $0x18] sm:$0xff]  }
0x1bb3   : > { %v7474_v44 = vadd.f32 %v7470_v57, %v7408_v4  ;;  %v7410_v41 = vpop.f32.mrb[210].mxu1  ;;  %v10163_v4 = vld [vmem:[%s12507_s11 + $0x20] sm:$0xff]  }
0x1bb4   : > { %v7475_v11 = vadd.f32 %v7466_v29, %v7410_v41  ;;  %v7412_v8 = vpop.f32.mrb[211].mxu1  ;;  %v7489_v42 = vmax.f32 %v7473_v55, 0.0  ;;  %v10162_v55 = vld [vmem:[%s12507_s11 + $0x60] sm:$0xff]   ;;  %v10165_v41 = vld [vmem:[%s12507_s11 + $0x28] sm:$0xff]  }
0x1bb5   : > { %v7476_v51 = vadd.f32 %v7470_v57, %v7412_v8  ;;  %v7490_v18 = vmax.f32 %v7474_v44, 0.0  ;;  %v10164_v44 = vld [vmem:[%s12507_s11 + $0x68] sm:$0xff]   ;;  %v10167_v8 = vld [vmem:[%s12507_s11 + $0x30] sm:$0xff]  }
0x1bb6   : > { %v7491_v48 = vmax.f32 %v7475_v11, 0.0  ;;  %v10166_v11 = vld [vmem:[%s12507_s11 + $0x70] sm:$0xff]  }
0x1bb7   : > { %v7492_v34 = vmax.f32 %v7476_v51, 0.0  ;;  %v10168_v51 = vld [vmem:[%s12507_s11 + $0x78] sm:$0xff]  }
0x1bb8   : > { %v7505_v43 = vpack.c.bf16 %v7491_v48, %v7489_v42  ;;  %v10169_v42 = vld [vmem:[%s12507_s11 + $0x38] sm:$0xff]  }
0x1bb9   : > { %v7506_v7 = vpack.c.bf16 %v7492_v34, %v7490_v18  ;;  %v7416_v3 = vpop.f32.mrb[212].mxu1 }
0x1bba   : > { %v7477_v1 = vadd.f32 %v7466_v29, %v7416_v3  ;;  %v7418_v52 = vpop.f32.mrb[213].mxu1 }
0x1bbb   : > { %v7478_v32 = vadd.f32 %v7470_v57, %v7418_v52  ;;  %v7420_v9 = vpop.f32.mrb[214].mxu1  ;;  %7524 = vmatprep.subr.bf16.mxu0 %v7506_v7  ;;  %v8671_v52 = vld [vmem:[%s12508_s12] ss:$0 sm:$0xff] }
0x1bbc   : > { %v7479_v58 = vadd.f32 %v7466_v29, %v7420_v9  ;;  %v7422_v36 = vpop.f32.mrb[215].mxu1  ;;  %7525 = vmatpush1.bf16.msra.mxu0 %v7505_v43  ;;  %v7493_v16 = vmax.f32 %v7477_v1, 0.0 }
0x1bbd   : > { %v7480_v59 = vadd.f32 %v7470_v57, %v7422_v36  ;;  %v7494_v62 = vmax.f32 %v7478_v32, 0.0 }
0x1bbe   : > { %v7495_v13 = vmax.f32 %v7479_v58, 0.0 }
0x1bbf   : > { %v7496_v15 = vmax.f32 %v7480_v59, 0.0 }
0x1bc0   : > { %v7507_v14 = vpack.c.bf16 %v7495_v13, %v7493_v16 }
0x1bc1   : > { %v7508_v12 = vpack.c.bf16 %v7496_v15, %v7494_v62  ;;  %v7426_v37 = vpop.f32.mrb[216].mxu1 }
0x1bc2   : > { %v7481_v17 = vadd.f32 %v7466_v29, %v7426_v37  ;;  %v7428_v2 = vpop.f32.mrb[217].mxu1 }
0x1bc3   : > { %v7482_v6 = vadd.f32 %v7470_v57, %v7428_v2  ;;  %v7430_v45 = vpop.f32.mrb[218].mxu1  ;;  %7526 = vmatprep.subr.bf16.mxu0 %v7508_v12 }
0x1bc4   : > { %v7483_v35 = vadd.f32 %v7466_v29, %v7430_v45  ;;  %v7432_v30 = vpop.f32.mrb[219].mxu1  ;;  %7527 = vmatpush1.bf16.msra.mxu0 %v7507_v14  ;;  %v7497_v20 = vmax.f32 %v7481_v17, 0.0 }
0x1bc5   : > { %v7484_v5 = vadd.f32 %v7470_v57, %v7432_v30  ;;  %v7498_v61 = vmax.f32 %v7482_v6, 0.0 }
0x1bc6   : > { %v7499_v63 = vmax.f32 %v7483_v35, 0.0 }
0x1bc7   : > { %v7500_v49 = vmax.f32 %v7484_v5, 0.0 }
0x1bc8   : > { %v7509_v26 = vpack.c.bf16 %v7499_v63, %v7497_v20 }
0x1bc9   : > { %v7510_v46 = vpack.c.bf16 %v7500_v49, %v7498_v61  ;;  %v7436_v53 = vpop.f32.mrb[220].mxu1 }
0x1bca   : > { %v7485_v50 = vadd.f32 %v7466_v29, %v7436_v53  ;;  %v7438_v23 = vpop.f32.mrb[221].mxu1 }
0x1bcb   : > { %v7486_v54 = vadd.f32 %v7470_v57, %v7438_v23  ;;  %v7440_v25 = vpop.f32.mrb[222].mxu1  ;;  %7528 = vmatprep.subr.bf16.mxu0 %v7510_v46 }
0x1bcc   : > { %v7487_v28 = vadd.f32 %v7466_v29, %v7440_v25  ;;  %v7442_v31 = vpop.f32.mrb[223].mxu1  ;;  %7529 = vmatpush1.bf16.msra.mxu0 %v7509_v26  ;;  %v7501_v33 = vmax.f32 %v7485_v50, 0.0  ;;  %v10159_v29 = vld [vmem:[%s12507_s11 + $0x10] sm:$0xff]  }
0x1bcd   : > { %v7488_v38 = vadd.f32 %v7470_v57, %v7442_v31  ;;  %v7502_v56 = vmax.f32 %v7486_v54, 0.0  ;;  %v10160_v57 = vld [vmem:[%s12507_s11 + $0x58] sm:$0xff]  }
0x1bce   : > { %v7503_v27 = vmax.f32 %v7487_v28, 0.0 }
0x1bcf   : > { %v7504_v24 = vmax.f32 %v7488_v38, 0.0 }
0x1bd0   : > { %v7511_v39 = vpack.c.bf16 %v7503_v27, %v7501_v33 }
0x1bd1   : > { %v7512_v0 = vpack.c.bf16 %v7504_v24, %v7502_v56 }
0x1bd3   : > { %7530 = vmatprep.subr.bf16.mxu0 %v7512_v0 }
0x1bd4   : > { %7531 = vmatpush1.bf16.msra.mxu0 %v7511_v39 }
0x1bd5   : > { %9092 = vmatprep.subr.bf16.mxu0 %v10154_v21 }
0x1bd7   : > { %8670 = vmatmul.mubr.msk.bf16.vlgmr.msra.gmra.mrb[224].mxu0 %vm7520_vm6, %v10153_v60 }
0x1bd8   : > { %9093 = vmatpush3.bf16.msra.mxu0 %v10155_v47 }
0x1bd9   : > { %9094 = vmatprep.subr.bf16.mxu0 %v10156_v19 }
0x1bdc   : > { %9095 = vmatpush3.bf16.msra.mxu0 %v10157_v10 }
0x1bdd   : > { %9096 = vmatprep.subr.bf16.mxu0 %v10158_v22 }
0x1be0   : > { %9097 = vmatpush3.bf16.msra.mxu0 %v10159_v29 }
0x1be1   : > { %9098 = vmatprep.subr.bf16.mxu0 %v10160_v57 }
0x1be4   : > { %9099 = vmatpush3.bf16.msra.mxu0 %v10161_v40 }
0x1be5   : > { %9100 = vmatprep.subr.bf16.mxu0 %v10162_v55 }
0x1be8   : > { %9101 = vmatpush3.bf16.msra.mxu0 %v10163_v4 }
0x1be9   : > { %9102 = vmatprep.subr.bf16.mxu0 %v10164_v44 }
0x1bec   : > { %9103 = vmatpush3.bf16.msra.mxu0 %v10165_v41 }
0x1bed   : > { %9104 = vmatprep.subr.bf16.mxu0 %v10166_v11 }
0x1bf0   : > { %9105 = vmatpush3.bf16.msra.mxu0 %v10167_v8 }
0x1bf1   : > { %9106 = vmatprep.subr.bf16.mxu0 %v10168_v51 }
0x1bf4   : > { %9107 = vmatpush3.bf16.msra.mxu0 %v10169_v42 }
0x1caa   : > { %v7558_v48 = vpop.f32.mrb[224].mxu0 }
0x1cab   : > { %v7560_v18 = vpop.f32.mrb[225].mxu0 }
0x1cac   : > { %v7562_v34 = vpop.f32.mrb[226].mxu0 }
0x1cad   : > { %v7567_v43 = vpack.c.bf16 %v7562_v34, %v7558_v48  ;;  %v7564_v7 = vpop.f32.mrb[227].mxu0 }
0x1cae   : > { %v7568_v3 = vpack.c.bf16 %v7564_v7, %v7560_v18 }
0x1cb0   : > { %7736 = vmatprep.mubr.bf16.mxu0 %v7568_v3 }
0x1cb1   : > { %7737 = vmatmul.mubr.bf16.vlgmr.msra.gmra.mrb[228].mxu0 %v7567_v43 }
0x1d84   : > { %v9108_v1 = vpop.f32.mrb[228].mxu0 }
0x1d85   : > { %v9109_v32 = vpop.f32.mrb[229].mxu0 }
0x1d86   : > { %v9110_v9 = vadd.f32 %v9109_v32, %v9108_v1  ;;  %v9111_v58 = vpop.f32.mrb[230].mxu0 }
0x1d87   : > { %v9112_v36 = vpop.f32.mrb[231].mxu0 }
0x1d88   : > { %v7739_v59 = vadd.f32 %v9110_v9, %v8671_v52  ;;  %v9113_v16 = vadd.f32 %v9112_v36, %v9111_v58 }
0x1d8a   : > { %7745 = vst [vmem:[%s491_s25] sm:$0xff] %v7739_v59  ;;  %v7742_v13 = vadd.f32 %v9113_v16, %v8671_v52 }
0x1d8c   : > { %7746 = vst [vmem:[%s491_s25 + $0x8] sm:$0xff] %v7742_v13 }
0x1d8d PF: > { %s31_s18 = sadd.s32 1, %s10190_s18  }
0x1d8e   : > { %p28_p11 = scmp.ge.s32.totalorder %s31_s18, 5  }
0x1d90   :  { %30 = sbr.rel (!%p28_p11) target bundleno = 16 (0x10), region = 167 }

</bundles_post_ra>
